<compile_context>
chip_gen: v7x
topology: tpu7x:2x2x1
jax: 0.10.0
libtpu: 0.0.40
codegen_flags: <defaults>
</compile_context>

<pallas_src>
import jax
import jax.numpy as jnp
from jax.experimental import pallas as pl
from jax.experimental.pallas import tpu as pltpu

D_IN, D_H, D_OUT = 784, 800, 10
D_IN_PAD, D_H_PAD, D_OUT_PAD = 896, 896, 128  # lane-aligned (multiples of 128)


def _round_up(n, m):
    return ((n + m - 1) // m) * m


def _mlp3_kernel(x_ref, w1_ref, b1_ref, w2_ref, b2_ref, w3_ref, b3_ref, out_ref):
    # Stage 1: [TB,896]bf16 @ [896,896]bf16 -> f32, + bias
    h1 = jnp.dot(x_ref[...], w1_ref[...], preferred_element_type=jnp.float32)
    h1 = h1 + b1_ref[...]
    # Stage 2: [TB,896] @ [896,896]
    h2 = jnp.dot(h1.astype(jnp.bfloat16), w2_ref[...], preferred_element_type=jnp.float32)
    h2 = h2 + b2_ref[...]
    # Stage 3: [TB,896] @ [896,128]
    h3 = jnp.dot(h2.astype(jnp.bfloat16), w3_ref[...], preferred_element_type=jnp.float32)
    out_ref[...] = (h3 + b3_ref[...]).astype(out_ref.dtype)


def model3_forward(x, packed):
    """x: [B, 784] float32.  packed: padded bf16 weights / f32 biases (see pack_params)."""
    B = x.shape[0]
    # Batch tile: multiple of 8 (sublane), capped at 256 (bigger tile ->
    # fewer grid steps -> less per-step pipeline overhead; still tiny in VMEM).
    TB = 256 if B >= 256 else _round_up(max(B, 1), 8)
    B_pad = _round_up(B, TB)
    grid = (B_pad // TB,)

    # Pad & cast the activations once in the wrapper (lane-dense 896 input).
    x_p = jnp.zeros((B_pad, D_IN_PAD), jnp.bfloat16).at[:B, :D_IN].set(
        x.astype(jnp.bfloat16)
    )

    w1, b1, w2, b2, w3, b3 = (
        packed["w1"], packed["b1"], packed["w2"], packed["b2"], packed["w3"], packed["b3"]
    )

    # Weights/biases: constant block index -> DMA'd once, VMEM-resident across the grid.
    const2d = lambda a: pl.BlockSpec(a.shape, lambda i: (0, 0))

    out = pl.pallas_call(
        _mlp3_kernel,
        out_shape=jax.ShapeDtypeStruct((B_pad, D_OUT_PAD), jnp.float32),
        grid=grid,
        in_specs=[
            pl.BlockSpec((TB, D_IN_PAD), lambda i: (i, 0)),
            const2d(w1), const2d(b1),
            const2d(w2), const2d(b2),
            const2d(w3), const2d(b3),
        ],
        out_specs=pl.BlockSpec((TB, D_OUT_PAD), lambda i: (i, 0)),
        compiler_params=pltpu.CompilerParams(
            dimension_semantics=("parallel",),
            vmem_limit_bytes=32 << 20,
        ),
    )(x_p, w1, b1, w2, b2, w3, b3)

    return out[:B, :D_OUT]


def init_model3_params(key):
    """Init matching 'Part3 - N(0, 0.1)': weights ~ N(0, 0.1), biases = 0.

    PyTorch Linear stores weight as [out, in]; we store the transpose [in, out]
    so the kernel computes x @ W directly.
    """
    k1, k2, k3 = jax.random.split(key, 3)
    return {
        "w1": (0.1 * jax.random.normal(k1, (D_H, D_IN), jnp.float32)).T,   # [784, 800]
        "b1": jnp.zeros((D_H,), jnp.float32),
        "w2": (0.1 * jax.random.normal(k2, (D_H, D_H), jnp.float32)).T,    # [800, 800]
        "b2": jnp.zeros((D_H,), jnp.float32),
        "w3": (0.1 * jax.random.normal(k3, (D_OUT, D_H), jnp.float32)).T,  # [800, 10]
        "b3": jnp.zeros((D_OUT,), jnp.float32),
    }


def pack_params(params):
    """Zero-pad feature dims to multiples of 128 and cast weights to bf16."""
    def pad_w(w, rows, cols):
        out = jnp.zeros((rows, cols), jnp.bfloat16)
        return out.at[: w.shape[0], : w.shape[1]].set(w.astype(jnp.bfloat16))

    def pad_b(b, cols):
        out = jnp.zeros((1, cols), jnp.float32)
        return out.at[0, : b.shape[0]].set(b)

    return {
        "w1": pad_w(params["w1"], D_IN_PAD, D_H_PAD),
        "b1": pad_b(params["b1"], D_H_PAD),
        "w2": pad_w(params["w2"], D_H_PAD, D_H_PAD),
        "b2": pad_b(params["b2"], D_H_PAD),
        "w3": pad_w(params["w3"], D_H_PAD, D_OUT_PAD),
        "b3": pad_b(params["b3"], D_OUT_PAD),
    }


def _reference_forward(x, packed):
    """Pure-JAX reference with the same bf16 rounding / f32 accumulation."""
    xb = jnp.zeros((x.shape[0], D_IN_PAD), jnp.float32).at[:, :D_IN].set(
        x.astype(jnp.bfloat16).astype(jnp.float32)
    )
    h1 = xb @ packed["w1"].astype(jnp.float32) + packed["b1"]
    h2 = h1.astype(jnp.bfloat16).astype(jnp.float32) @ packed["w2"].astype(jnp.float32) + packed["b2"]
    h3 = h2.astype(jnp.bfloat16).astype(jnp.float32) @ packed["w3"].astype(jnp.float32) + packed["b3"]
    return h3[:, :D_OUT]


if __name__ == "__main__":
    key = jax.random.PRNGKey(0)
    kp, kx = jax.random.split(key)

    params = init_model3_params(kp)
    packed = pack_params(params)
    x = jax.random.normal(kx, (8, D_IN), jnp.float32)  # batch of 8 flattened 28x28 images

    out = jax.block_until_ready(model3_forward(x, packed))
    ref = _reference_forward(x, packed)

    assert out.shape == (8, D_OUT), out.shape
    assert jnp.allclose(out, ref, atol=5e-2, rtol=5e-2), float(jnp.max(jnp.abs(out - ref)))

    print("KERNEL_OK")
</pallas_src>

<mosaic_0001>
module attributes {stable_mosaic.version = 11 : i64} {
  func.func @_mlp3_kernel(%arg0: i32, %arg1: memref<8x896xbf16, #tpu.memory_space<vmem>>, %arg2: memref<896x896xbf16, #tpu.memory_space<vmem>>, %arg3: memref<1x896xf32, #tpu.memory_space<vmem>>, %arg4: memref<896x896xbf16, #tpu.memory_space<vmem>>, %arg5: memref<1x896xf32, #tpu.memory_space<vmem>>, %arg6: memref<896x128xbf16, #tpu.memory_space<vmem>>, %arg7: memref<1x128xf32, #tpu.memory_space<vmem>>, %arg8: memref<8x128xf32, #tpu.memory_space<vmem>>) attributes {dimension_semantics = [#tpu.dimension_semantics<parallel>], iteration_bounds = array<i64: 1>, scalar_prefetch = 0 : i64, scratch_operands = 0 : i64, tpu.core_type = #tpu.core_type<tc>, window_params = [{transform_indices = @transform_0, window_bounds = array<i64: 8, 896>}, {pipeline_mode = #tpu.pipeline_mode<synchronous>, transform_indices = @transform_1, window_bounds = array<i64: 896, 896>}, {pipeline_mode = #tpu.pipeline_mode<synchronous>, transform_indices = @transform_2, window_bounds = array<i64: 1, 896>}, {pipeline_mode = #tpu.pipeline_mode<synchronous>, transform_indices = @transform_3, window_bounds = array<i64: 896, 896>}, {pipeline_mode = #tpu.pipeline_mode<synchronous>, transform_indices = @transform_4, window_bounds = array<i64: 1, 896>}, {pipeline_mode = #tpu.pipeline_mode<synchronous>, transform_indices = @transform_5, window_bounds = array<i64: 896, 128>}, {pipeline_mode = #tpu.pipeline_mode<synchronous>, transform_indices = @transform_6, window_bounds = array<i64: 1, 128>}, {transform_indices = @transform_7, window_bounds = array<i64: 8, 128>}]} {
    %c0 = arith.constant 0 : index
    %c0_0 = arith.constant 0 : index
    %0 = vector.load %arg1[%c0, %c0_0] : memref<8x896xbf16, #tpu.memory_space<vmem>>, vector<8x896xbf16>
    %c0_1 = arith.constant 0 : index
    %c0_2 = arith.constant 0 : index
    %1 = vector.load %arg2[%c0_1, %c0_2] : memref<896x896xbf16, #tpu.memory_space<vmem>>, vector<896x896xbf16>
    %cst = arith.constant dense<0.000000e+00> : vector<8x896xf32>
    %2 = tpu.matmul %0, %1, %cst {dimension_numbers = #tpu.dot_dimension_numbers<[1], [0], [0], [1], [0, 0, 1, 1], [], []>} : vector<8x896xbf16>, vector<896x896xbf16>, vector<8x896xf32> -> vector<8x896xf32>
    %c0_3 = arith.constant 0 : index
    %c0_4 = arith.constant 0 : index
    %3 = vector.load %arg3[%c0_3, %c0_4] : memref<1x896xf32, #tpu.memory_space<vmem>>, vector<1x896xf32>
    %4 = vector.broadcast %3 : vector<1x896xf32> to vector<8x896xf32>
    %5 = arith.addf %2, %4 : vector<8x896xf32>
    %6 = arith.truncf %5 : vector<8x896xf32> to vector<8x896xbf16>
    %c0_5 = arith.constant 0 : index
    %c0_6 = arith.constant 0 : index
    %7 = vector.load %arg4[%c0_5, %c0_6] : memref<896x896xbf16, #tpu.memory_space<vmem>>, vector<896x896xbf16>
    %cst_7 = arith.constant dense<0.000000e+00> : vector<8x896xf32>
    %8 = tpu.matmul %6, %7, %cst_7 {dimension_numbers = #tpu.dot_dimension_numbers<[1], [0], [0], [1], [0, 0, 1, 1], [], []>} : vector<8x896xbf16>, vector<896x896xbf16>, vector<8x896xf32> -> vector<8x896xf32>
    %c0_8 = arith.constant 0 : index
    %c0_9 = arith.constant 0 : index
    %9 = vector.load %arg5[%c0_8, %c0_9] : memref<1x896xf32, #tpu.memory_space<vmem>>, vector<1x896xf32>
    %10 = vector.broadcast %9 : vector<1x896xf32> to vector<8x896xf32>
    %11 = arith.addf %8, %10 : vector<8x896xf32>
    %12 = arith.truncf %11 : vector<8x896xf32> to vector<8x896xbf16>
    %c0_10 = arith.constant 0 : index
    %c0_11 = arith.constant 0 : index
    %13 = vector.load %arg6[%c0_10, %c0_11] : memref<896x128xbf16, #tpu.memory_space<vmem>>, vector<896x128xbf16>
    %cst_12 = arith.constant dense<0.000000e+00> : vector<8x128xf32>
    %14 = tpu.matmul %12, %13, %cst_12 {dimension_numbers = #tpu.dot_dimension_numbers<[1], [0], [0], [1], [0, 0, 1, 1], [], []>} : vector<8x896xbf16>, vector<896x128xbf16>, vector<8x128xf32> -> vector<8x128xf32>
    %c0_13 = arith.constant 0 : index
    %c0_14 = arith.constant 0 : index
    %15 = vector.load %arg7[%c0_13, %c0_14] : memref<1x128xf32, #tpu.memory_space<vmem>>, vector<1x128xf32>
    %16 = vector.broadcast %15 : vector<1x128xf32> to vector<8x128xf32>
    %17 = arith.addf %14, %16 : vector<8x128xf32>
    %c0_15 = arith.constant 0 : index
    %c0_16 = arith.constant 0 : index
    %18 = vector.load %arg8[%c0_15, %c0_16] : memref<8x128xf32, #tpu.memory_space<vmem>>, vector<8x128xf32>
    tpu.vector_store %arg8[%c0_15, %c0_16], %17 {strides = array<i32>} : memref<8x128xf32, #tpu.memory_space<vmem>>, vector<8x128xf32>,
    return
  }
  func.func @transform_0(%arg0: i32) -> (i32, i32) {
    %c0_i32 = arith.constant 0 : i32
    %c0_i32_0 = arith.constant 0 : i32
    return %arg0, %c0_i32 : i32, i32
  }
  func.func @transform_1(%arg0: i32) -> (i32, i32) {
    %c0_i32 = arith.constant 0 : i32
    %c0_i32_0 = arith.constant 0 : i32
    %c0_i32_1 = arith.constant 0 : i32
    return %c0_i32, %c0_i32_0 : i32, i32
  }
  func.func @transform_2(%arg0: i32) -> (i32, i32) {
    %c0_i32 = arith.constant 0 : i32
    %c0_i32_0 = arith.constant 0 : i32
    %c0_i32_1 = arith.constant 0 : i32
    return %c0_i32, %c0_i32_0 : i32, i32
  }
  func.func @transform_3(%arg0: i32) -> (i32, i32) {
    %c0_i32 = arith.constant 0 : i32
    %c0_i32_0 = arith.constant 0 : i32
    %c0_i32_1 = arith.constant 0 : i32
    return %c0_i32, %c0_i32_0 : i32, i32
  }
  func.func @transform_4(%arg0: i32) -> (i32, i32) {
    %c0_i32 = arith.constant 0 : i32
    %c0_i32_0 = arith.constant 0 : i32
    %c0_i32_1 = arith.constant 0 : i32
    return %c0_i32, %c0_i32_0 : i32, i32
  }
  func.func @transform_5(%arg0: i32) -> (i32, i32) {
    %c0_i32 = arith.constant 0 : i32
    %c0_i32_0 = arith.constant 0 : i32
    %c0_i32_1 = arith.constant 0 : i32
    return %c0_i32, %c0_i32_0 : i32, i32
  }
  func.func @transform_6(%arg0: i32) -> (i32, i32) {
    %c0_i32 = arith.constant 0 : i32
    %c0_i32_0 = arith.constant 0 : i32
    %c0_i32_1 = arith.constant 0 : i32
    return %c0_i32, %c0_i32_0 : i32, i32
  }
  func.func @transform_7(%arg0: i32) -> (i32, i32) {
    %c0_i32 = arith.constant 0 : i32
    %c0_i32_0 = arith.constant 0 : i32
    return %arg0, %c0_i32 : i32, i32
  }
}

</mosaic_0001>

<bundles_post_ra>
// kernel: tpu_custom_call.1
= control target key start
LH: loop header
LB: loop body
LE: loop exit
PB: predicated region body
PF: predicated region fallthrough
CT: control target
= control target key end

     0   :  { %12 = vsyncpa [#allocation3], 0  ;;  %s10051_s0 = inlined_call_operand.hbm [shape: bf16[8,896], index: 0, kind: input, shape index: {}]   ;;  %s10052_s1 = inlined_call_operand.hbm [shape: bf16[896,896], index: 1, kind: input, shape index: {}]   ;;  %s10053_s2 = inlined_call_operand.hbm [shape: f32[1,896], index: 2, kind: input, shape index: {}]   ;;  %s10054_s3 = inlined_call_operand.hbm [shape: bf16[896,896], index: 3, kind: input, shape index: {}]   ;;  %s10055_s4 = inlined_call_operand.hbm [shape: f32[1,896], index: 4, kind: input, shape index: {}]   ;;  %s10056_s5 = inlined_call_operand.hbm [shape: bf16[896,128], index: 5, kind: input, shape index: {}]   ;;  %s10057_s6 = inlined_call_operand.hbm [shape: f32[1,128], index: 6, kind: input, shape index: {}]   ;;  %s10058_s7 = inlined_call_operand.hbm [shape: f32[8,128], index: 7, kind: output, shape index: {}]  }
   0x1   :  { %13 = vsyncpa [#allocation6], 0 }
   0x2   :  { %14 = vsyncpa [#allocation9], 0 }
   0x3   :  { %15 = vsyncpa [#allocation12], 0 }
   0x4   :  { %16 = vsyncpa [#allocation4], 0  ;;  %s9701_s24 = smov [#allocation5]   ;;  %s9515_s28 = scalar_lea.hbm %s10052_s1, 50176 }
   0x5   :  { %s32_s25 = sshll.u32 %s9701_s24, 4  ;;  %p9516_p0 = scmp.ne.s32.totalorder %s10052_s1, %s9515_s28  ;;  %s33_s25 = int_to_ptr.vmem [resolvable:$true] %s32_s25 }
   0x6   :  { %p9519_p1 = scmp.lt.u32.totalorder %s9515_s28, %s10052_s1 }
   0x8   :  { %p9521_p2 = pnand %p9519_p1, %p9516_p0 }
   0xa   :  { %9524 = shalt.err (!%p9521_p2)
}
   0xb   :  { %s9525_s10 = scalar_lea.vmem %s33_s25, 50176  ;;  %p9530_p4 = scmp.lt.s32.totalorder %s33_s25, %s33_s25 }
   0xc   :  { %p9526_p3 = scmp.ne.s32.totalorder %s33_s25, %s9525_s10  ;;  %p9531_p5 = scmp.lt.s32.totalorder %s9525_s10, %s9525_s10 }
   0xe   :  { %p9532_p6 = por %p9531_p5, %p9530_p4 }
  0x10   :  { %p9533_p7 = pnand %p9532_p6, %p9526_p3 }
  0x12   :  { %9536 = shalt.err (!%p9533_p7)
}
  0x13   :  { %s9702_s11 = smov 448   ;;  %s9703_s12 = smov 28  }
  0x14   :  { %38 = dma.hbm_to_vmem [thread:$0]  %s10052_s1, 50176, %s33_s25, [#allocation6], %s9702_s11, %s9702_s11, %s9703_s12  }
  0x15   :  { %s9704_s15 = smov [#allocation8]   ;;  %s9705_s17 = smov [#allocation11]  }
  0x16   :  { %s54_s16 = sshll.u32 %s9704_s15, 4  ;;  %s76_s18 = sshll.u32 %s9705_s17, 4  ;;  %s55_s16 = int_to_ptr.vmem [resolvable:$true] %s54_s16  ;;  %s77_s18 = int_to_ptr.vmem [resolvable:$true] %s76_s18 }
  0x17   :  { %s9537_s21 = scalar_lea.hbm %s10054_s3, 50176 }
  0x18   :  { %p9538_p8 = scmp.ne.s32.totalorder %s10054_s3, %s9537_s21  ;;  %p9541_p9 = scmp.lt.u32.totalorder %s9537_s21, %s10054_s3 }
  0x1a   :  { %p9543_p10 = pnand %p9541_p9, %p9538_p8 }
  0x1c   :  { %9546 = shalt.err (!%p9543_p10)
}
  0x1d   :  { %s9547_s1 = scalar_lea.vmem %s55_s16, 50176  ;;  %p9552_p12 = scmp.lt.s32.totalorder %s55_s16, %s55_s16 }
  0x1e   :  { %p9548_p11 = scmp.ne.s32.totalorder %s55_s16, %s9547_s1  ;;  %p9553_p13 = scmp.lt.s32.totalorder %s9547_s1, %s9547_s1 }
  0x20   :  { %p9554_p0 = por %p9553_p13, %p9552_p12 }
  0x22   :  { %p9555_p1 = pnand %p9554_p0, %p9548_p11 }
  0x24   :  { %9558 = shalt.err (!%p9555_p1)
}
  0x25   :  { %60 = dma.hbm_to_vmem [thread:$0]  %s10054_s3, 50176, %s55_s16, [#allocation9], %s9702_s11, %s9702_s11, %s9703_s12  }
  0x26   :  { %s9559_s30 = scalar_lea.hbm %s10056_s5, 7168 }
  0x27   :  { %p9560_p2 = scmp.ne.s32.totalorder %s10056_s5, %s9559_s30  ;;  %p9563_p3 = scmp.lt.u32.totalorder %s9559_s30, %s10056_s5 }
  0x29   :  { %p9565_p4 = pnand %p9563_p3, %p9560_p2 }
  0x2b   :  { %9568 = shalt.err (!%p9565_p4)
}
  0x2c   :  { %s9569_s14 = scalar_lea.vmem %s77_s18, 7168  ;;  %p9574_p6 = scmp.lt.s32.totalorder %s77_s18, %s77_s18 }
  0x2d   :  { %p9570_p5 = scmp.ne.s32.totalorder %s77_s18, %s9569_s14  ;;  %p9575_p7 = scmp.lt.s32.totalorder %s9569_s14, %s9569_s14 }
  0x2f   :  { %p9576_p8 = por %p9575_p7, %p9574_p6 }
  0x31   :  { %p9577_p9 = pnand %p9576_p8, %p9570_p5 }
  0x33   :  { %9580 = shalt.err (!%p9577_p9)
}
  0x34   :  { %s9706_s3 = smov 64   ;;  %s9707_s11 = smov 4  }
  0x35   :  { %82 = dma.hbm_to_vmem [thread:$0]  %s10056_s5, 7168, %s77_s18, [#allocation12], %s9706_s3, %s9706_s3, %s9707_s11  }
  0x36   :  { %s9708_s16 = smov [#allocation2]   ;;  %s9709_s19 = smov [#allocation7]  }
  0x37   :  { %s23_s17 = sshll.u32 %s9708_s16, 4  ;;  %s45_s20 = sshll.u32 %s9709_s19, 4  ;;  %s24_s17 = int_to_ptr.vmem [resolvable:$true] %s23_s17  ;;  %s46_s20 = int_to_ptr.vmem [resolvable:$true] %s45_s20 }
  0x38   :  { %s9581_s23 = scalar_lea.hbm %s10051_s0, 448 }
  0x39   :  { %p9582_p10 = scmp.ne.s32.totalorder %s10051_s0, %s9581_s23  ;;  %p9585_p11 = scmp.lt.u32.totalorder %s9581_s23, %s10051_s0 }
  0x3b   :  { %p9587_p12 = pnand %p9585_p11, %p9582_p10 }
  0x3d   :  { %9590 = shalt.err (!%p9587_p12)
}
  0x3e   :  { %s9591_s5 = scalar_lea.vmem %s24_s17, 448  ;;  %p9596_p0 = scmp.lt.s32.totalorder %s24_s17, %s24_s17 }
  0x3f   :  { %p9592_p13 = scmp.ne.s32.totalorder %s24_s17, %s9591_s5  ;;  %p9597_p1 = scmp.lt.s32.totalorder %s9591_s5, %s9591_s5 }
  0x41   :  { %p9598_p2 = por %p9597_p1, %p9596_p0 }
  0x43   :  { %p9599_p3 = pnand %p9598_p2, %p9592_p13 }
  0x45   :  { %9602 = shalt.err (!%p9599_p3)
}
  0x46   :  { %26 = dma.hbm_to_vmem [thread:$0]  %s10051_s0, 448, %s24_s17, [#allocation3]  }
  0x47   :  { %s9603_s30 = scalar_lea.hbm %s10053_s2, 112 }
  0x48   :  { %p9604_p4 = scmp.ne.s32.totalorder %s10053_s2, %s9603_s30  ;;  %p9607_p5 = scmp.lt.u32.totalorder %s9603_s30, %s10053_s2 }
  0x4a   :  { %p9609_p6 = pnand %p9607_p5, %p9604_p4 }
  0x4c   :  { %9612 = shalt.err (!%p9609_p6)
}
  0x4d   :  { %s9613_s14 = scalar_lea.vmem %s46_s20, 112  ;;  %s9617_s3 = scalar_lea.vmem %s46_s20, 128 }
  0x4e   :  { %p9614_p7 = scmp.ne.s32.totalorder %s46_s20, %s9613_s14  ;;  %p9618_p8 = scmp.lt.s32.totalorder %s46_s20, %s46_s20 }
  0x4f   :  { %p9619_p9 = scmp.lt.s32.totalorder %s9617_s3, %s9613_s14 }
  0x51   :  { %p9620_p10 = por %p9619_p9, %p9618_p8 }
  0x53   :  { %p9621_p11 = pnand %p9620_p10, %p9614_p7 }
  0x55   :  { %9624 = shalt.err (!%p9621_p11)
}
  0x56   :  { %48 = dma.hbm_to_vmem [thread:$0]  %s10053_s2, 112, %s46_s20, [#allocation6]  }
  0x57   :  { %s9710_s12 = smov [#allocation10]   ;;  %s9711_s16 = smov [#allocation13]  }
  0x58   :  { %s67_s15 = sshll.u32 %s9710_s12, 4  ;;  %s89_s17 = sshll.u32 %s9711_s16, 4  ;;  %s68_s15 = int_to_ptr.vmem [resolvable:$true] %s67_s15  ;;  %s90_s17 = int_to_ptr.vmem [resolvable:$true] %s89_s17 }
  0x59   :  { %s9625_s22 = scalar_lea.hbm %s10055_s4, 112 }
  0x5a   :  { %p9626_p12 = scmp.ne.s32.totalorder %s10055_s4, %s9625_s22  ;;  %p9629_p13 = scmp.lt.u32.totalorder %s9625_s22, %s10055_s4 }
  0x5c   :  { %p9631_p0 = pnand %p9629_p13, %p9626_p12 }
  0x5e   :  { %9634 = shalt.err (!%p9631_p0)
}
  0x5f   :  { %s9635_s2 = scalar_lea.vmem %s68_s15, 112  ;;  %s9639_s20 = scalar_lea.vmem %s68_s15, 128 }
  0x60   :  { %p9636_p1 = scmp.ne.s32.totalorder %s68_s15, %s9635_s2  ;;  %p9640_p2 = scmp.lt.s32.totalorder %s68_s15, %s68_s15 }
  0x61   :  { %p9641_p3 = scmp.lt.s32.totalorder %s9639_s20, %s9635_s2 }
  0x63   :  { %p9642_p4 = por %p9641_p3, %p9640_p2 }
  0x65   :  { %p9643_p5 = pnand %p9642_p4, %p9636_p1 }
  0x67   :  { %9646 = shalt.err (!%p9643_p5)
}
  0x68   :  { %70 = dma.hbm_to_vmem [thread:$0]  %s10055_s4, 112, %s68_s15, [#allocation9]  }
  0x69   :  { %s9647_s28 = scalar_lea.hbm %s10057_s6, 16 }
  0x6a   :  { %p9648_p6 = scmp.ne.s32.totalorder %s10057_s6, %s9647_s28  ;;  %p9651_p7 = scmp.lt.u32.totalorder %s9647_s28, %s10057_s6 }
  0x6c   :  { %p9653_p8 = pnand %p9651_p7, %p9648_p6 }
  0x6e   :  { %9656 = shalt.err (!%p9653_p8)
}
  0x6f   :  { %s9657_s10 = scalar_lea.vmem %s90_s17, 16  ;;  %s9661_s13 = scalar_lea.vmem %s90_s17, 32 }
  0x70   :  { %p9658_p9 = scmp.ne.s32.totalorder %s90_s17, %s9657_s10  ;;  %p9662_p10 = scmp.lt.s32.totalorder %s90_s17, %s90_s17 }
  0x71   :  { %p9663_p11 = scmp.lt.s32.totalorder %s9661_s13, %s9657_s10 }
  0x73   :  { %p9664_p12 = por %p9663_p11, %p9662_p10 }
  0x75   :  { %p9665_p13 = pnand %p9664_p12, %p9658_p9 }
  0x77   :  { %9668 = shalt.err (!%p9665_p13)
}
  0x78   :  { %92 = dma.hbm_to_vmem [thread:$0]  %s10057_s6, 16, %s90_s17, [#allocation12]  }
  0x79   :  { %9691 = dma.done.wait [#allocation3], 448  }
  0x7a   :  { %9692 = vsyncadd [#allocation3], 4294966848 }
  0x7b   :  { %9693 = dma.done.wait [#allocation6], 50288  }
  0x7c   :  { %9694 = vsyncadd [#allocation6], 4294917008 }
  0x7d   :  { %9695 = dma.done.wait [#allocation9], 50288  }
  0x7e   :  { %9696 = vsyncadd [#allocation9], 4294917008 }
  0x7f   :  { %9697 = dma.done.wait [#allocation12], 7184  }
  0x80   :  { %9698 = vsyncadd [#allocation12], 4294960112  ;;  %v8330_v0 = vld [vmem:[#allocation5 + $0x4] ss:$28 sps:$4 sm:$0xff]   ;;  %v8332_v1 = vld [vmem:[#allocation5 + $0xc] ss:$28 sps:$4 sm:$0xff]  }
  0x81   :  { %2645 = vmatprep.subr.bf16.mxu0 %v8330_v0  ;;  %v8334_v2 = vld [vmem:[#allocation5] ss:$28 sps:$4 sm:$0xff]   ;;  %v8335_v3 = vld [vmem:[#allocation5 + $0x8] ss:$28 sps:$4 sm:$0xff]   ;;  %2809 = vmatprep.subr.bf16.mxu1 %v8332_v1  ;;  %v8340_v6 = vld [vmem:[#allocation5 + $0x38] ss:$28 sps:$4 sm:$0xff]  }
  0x82   :  { %v8336_v4 = vld [vmem:[#allocation5 + $0x3c] ss:$28 sps:$4 sm:$0xff]   ;;  %2646 = vmatpush1.bf16.msra.mxu0 %v8334_v2  ;;  %2810 = vmatpush1.bf16.msra.mxu1 %v8335_v3  ;;  %v8338_v5 = vld [vmem:[#allocation5 + $0x44] ss:$28 sps:$4 sm:$0xff]   ;;  %v8342_v8 = vld [vmem:[#allocation5 + $0x74] ss:$28 sps:$4 sm:$0xff]  }
  0x83   :  { %2647 = vmatprep.subr.bf16.mxu0 %v8336_v4  ;;  %v8341_v7 = vld [vmem:[#allocation5 + $0x40] ss:$28 sps:$4 sm:$0xff]   ;;  %2811 = vmatprep.subr.bf16.mxu1 %v8338_v5  ;;  %v8346_v10 = vld [vmem:[#allocation5 + $0x70] ss:$28 sps:$4 sm:$0xff]   ;;  %v8347_v11 = vld [vmem:[#allocation5 + $0x78] ss:$28 sps:$4 sm:$0xff]  }
  0x84   :  { %v8344_v9 = vld [vmem:[#allocation5 + $0x7c] ss:$28 sps:$4 sm:$0xff]   ;;  %v8348_v12 = vld [vmem:[#allocation5 + $0xac] ss:$28 sps:$4 sm:$0xff]   ;;  %v8350_v13 = vld [vmem:[#allocation5 + $0xb4] ss:$28 sps:$4 sm:$0xff]  }
  0x85   :  { %v8352_v14 = vld [vmem:[#allocation5 + $0xa8] ss:$28 sps:$4 sm:$0xff]   ;;  %v8353_v15 = vld [vmem:[#allocation5 + $0xb0] ss:$28 sps:$4 sm:$0xff]   ;;  %v8358_v18 = vld [vmem:[#allocation5 + $0xe0] ss:$28 sps:$4 sm:$0xff]  }
  0x86   :  { %2648 = vmatpush1.bf16.msra.mxu0 %v8340_v6  ;;  %2812 = vmatpush1.bf16.msra.mxu1 %v8341_v7  ;;  %v8354_v16 = vld [vmem:[#allocation5 + $0xe4] ss:$28 sps:$4 sm:$0xff]   ;;  %v8356_v17 = vld [vmem:[#allocation5 + $0xec] ss:$28 sps:$4 sm:$0xff]   ;;  %v8360_v20 = vld [vmem:[#allocation5 + $0x11c] ss:$28 sps:$4 sm:$0xff]  }
  0x87   :  { %2649 = vmatprep.subr.bf16.mxu0 %v8342_v8  ;;  %2813 = vmatprep.subr.bf16.mxu1 %v8344_v9  ;;  %v8359_v19 = vld [vmem:[#allocation5 + $0xe8] ss:$28 sps:$4 sm:$0xff]   ;;  %v8364_v22 = vld [vmem:[#allocation5 + $0x118] ss:$28 sps:$4 sm:$0xff]   ;;  %v8365_v23 = vld [vmem:[#allocation5 + $0x120] ss:$28 sps:$4 sm:$0xff]  }
  0x88   :  { %v8362_v21 = vld [vmem:[#allocation5 + $0x124] ss:$28 sps:$4 sm:$0xff]   ;;  %v8366_v24 = vld [vmem:[#allocation5 + $0x154] ss:$28 sps:$4 sm:$0xff]   ;;  %v8368_v25 = vld [vmem:[#allocation5 + $0x15c] ss:$28 sps:$4 sm:$0xff]  }
  0x89   :  { %v8370_v26 = vld [vmem:[#allocation5 + $0x150] ss:$28 sps:$4 sm:$0xff]   ;;  %v8371_v27 = vld [vmem:[#allocation5 + $0x158] ss:$28 sps:$4 sm:$0xff]   ;;  %v8376_v30 = vld [vmem:[#allocation5 + $0x188] ss:$28 sps:$4 sm:$0xff]  }
  0x8a   :  { %2650 = vmatpush1.bf16.msra.mxu0 %v8346_v10  ;;  %2814 = vmatpush1.bf16.msra.mxu1 %v8347_v11  ;;  %v8372_v28 = vld [vmem:[#allocation5 + $0x18c] ss:$28 sps:$4 sm:$0xff]   ;;  %v8374_v29 = vld [vmem:[#allocation5 + $0x194] ss:$28 sps:$4 sm:$0xff]   ;;  %v8378_v32 = vld [vmem:[#allocation5 + $0x1c4] ss:$28 sps:$4 sm:$0xff]  }
  0x8b   :  { %2651 = vmatprep.subr.bf16.mxu0 %v8348_v12  ;;  %2815 = vmatprep.subr.bf16.mxu1 %v8350_v13  ;;  %v8377_v31 = vld [vmem:[#allocation5 + $0x190] ss:$28 sps:$4 sm:$0xff]   ;;  %v8382_v34 = vld [vmem:[#allocation5 + $0x1c0] ss:$28 sps:$4 sm:$0xff]   ;;  %v8383_v35 = vld [vmem:[#allocation5 + $0x1c8] ss:$28 sps:$4 sm:$0xff]  }
  0x8c   :  { %v8380_v33 = vld [vmem:[#allocation5 + $0x1cc] ss:$28 sps:$4 sm:$0xff]   ;;  %v8384_v36 = vld [vmem:[#allocation5 + $0x1fc] ss:$28 sps:$4 sm:$0xff]   ;;  %v8386_v37 = vld [vmem:[#allocation5 + $0x204] ss:$28 sps:$4 sm:$0xff]  }
  0x8d   :  { %v8388_v38 = vld [vmem:[#allocation5 + $0x1f8] ss:$28 sps:$4 sm:$0xff]   ;;  %v8389_v39 = vld [vmem:[#allocation5 + $0x200] ss:$28 sps:$4 sm:$0xff]   ;;  %v8394_v42 = vld [vmem:[#allocation5 + $0x230] ss:$28 sps:$4 sm:$0xff]  }
  0x8e   :  { %2652 = vmatpush1.bf16.msra.mxu0 %v8352_v14  ;;  %2816 = vmatpush1.bf16.msra.mxu1 %v8353_v15  ;;  %v8390_v40 = vld [vmem:[#allocation5 + $0x234] ss:$28 sps:$4 sm:$0xff]   ;;  %v8392_v41 = vld [vmem:[#allocation5 + $0x23c] ss:$28 sps:$4 sm:$0xff]   ;;  %v8396_v44 = vld [vmem:[#allocation5 + $0x26c] ss:$28 sps:$4 sm:$0xff]  }
  0x8f   :  { %2653 = vmatprep.subr.bf16.mxu0 %v8354_v16  ;;  %2817 = vmatprep.subr.bf16.mxu1 %v8356_v17  ;;  %v8395_v43 = vld [vmem:[#allocation5 + $0x238] ss:$28 sps:$4 sm:$0xff]   ;;  %v115_v46 = vld [vmem:[#allocation2] sm:$0xff]  ;;  %v8401_v49 = vld [vmem:[#allocation5 + $0x270] ss:$28 sps:$4 sm:$0xff]   ;;  %vm9714_vm0 = vmmov 0  }
  0x90   :  { %v8398_v45 = vld [vmem:[#allocation5 + $0x274] ss:$28 sps:$4 sm:$0xff]   ;;  %v8400_v47 = vld [vmem:[#allocation5 + $0x268] ss:$28 sps:$4 sm:$0xff]   ;;  %v9840_v48 = vcombine.high %v115_v46, %v115_v46  ;;  %v8406_v52 = vld [vmem:[#allocation5 + $0x2a0] ss:$28 sps:$4 sm:$0xff]   ;;  %v9844_v5 = vcombine.low %v115_v46, %v115_v46 }
  0x91   :  { %v8402_v50 = vld [vmem:[#allocation5 + $0x2a4] ss:$28 sps:$4 sm:$0xff]   ;;  %v8404_v51 = vld [vmem:[#allocation5 + $0x2ac] ss:$28 sps:$4 sm:$0xff]   ;;  %v8408_v54 = vld [vmem:[#allocation5 + $0x2dc] ss:$28 sps:$4 sm:$0xff]  }
  0x92   :  { %2654 = vmatpush1.bf16.msra.mxu0 %v8358_v18  ;;  %2818 = vmatpush1.bf16.msra.mxu1 %v8359_v19  ;;  %v8407_v53 = vld [vmem:[#allocation5 + $0x2a8] ss:$28 sps:$4 sm:$0xff]   ;;  %v8412_v56 = vld [vmem:[#allocation5 + $0x2d8] ss:$28 sps:$4 sm:$0xff]   ;;  %v8413_v57 = vld [vmem:[#allocation5 + $0x2e0] ss:$28 sps:$4 sm:$0xff]  }
  0x93   :  { %2655 = vmatprep.subr.bf16.mxu0 %v8360_v20  ;;  %2819 = vmatprep.subr.bf16.mxu1 %v8362_v21  ;;  %v8410_v55 = vld [vmem:[#allocation5 + $0x2e4] ss:$28 sps:$4 sm:$0xff]   ;;  %v8414_v58 = vld [vmem:[#allocation5 + $0x314] ss:$28 sps:$4 sm:$0xff]   ;;  %v8416_v59 = vld [vmem:[#allocation5 + $0x31c] ss:$28 sps:$4 sm:$0xff]  }
  0x94   :  { %2677 = vmatprep.mubr.bf16.mxu0 %v9840_v48  ;;  %2841 = vmatprep.mubr.bf16.mxu1 %v9840_v48  ;;  %v8418_v60 = vld [vmem:[#allocation5 + $0x310] ss:$28 sps:$4 sm:$0xff]   ;;  %v8419_v61 = vld [vmem:[#allocation5 + $0x318] ss:$28 sps:$4 sm:$0xff]   ;;  %v8424_v0 = vld [vmem:[#allocation5 + $0x348] ss:$28 sps:$4 sm:$0xff]  }
  0x95   :  { %v8420_v62 = vld [vmem:[#allocation5 + $0x34c] ss:$28 sps:$4 sm:$0xff]   ;;  %v8422_v63 = vld [vmem:[#allocation5 + $0x354] ss:$28 sps:$4 sm:$0xff]   ;;  %v8429_v2 = vld [vmem:[#allocation5 + $0x384] ss:$28 sps:$4 sm:$0xff]  }
  0x96   :  { %2656 = vmatpush1.bf16.msra.mxu0 %v8364_v22  ;;  %2820 = vmatpush1.bf16.msra.mxu1 %v8365_v23  ;;  %v8425_v1 = vld [vmem:[#allocation5 + $0x350] ss:$28 sps:$4 sm:$0xff]   ;;  %v8427_v4 = vld [vmem:[#allocation5 + $0x380] ss:$28 sps:$4 sm:$0xff]   ;;  %v8430_v6 = vld [vmem:[#allocation5 + $0x388] ss:$28 sps:$4 sm:$0xff]  }
  0x97   :  { %2657 = vmatprep.subr.bf16.mxu0 %v8366_v24  ;;  %2821 = vmatprep.subr.bf16.mxu1 %v8368_v25  ;;  %v8432_v3 = vld [vmem:[#allocation5 + $0x38c] ss:$28 sps:$4 sm:$0xff]   ;;  %v8436_v7 = vld [vmem:[#allocation5 + $0x3bc] ss:$28 sps:$4 sm:$0xff]   ;;  %v8439_v8 = vld [vmem:[#allocation5 + $0x3c4] ss:$28 sps:$4 sm:$0xff]  }
  0x98   :  { %v8434_v9 = vld [vmem:[#allocation5 + $0x3b8] ss:$28 sps:$4 sm:$0xff]   ;;  %v8437_v10 = vld [vmem:[#allocation5 + $0x3c0] ss:$28 sps:$4 sm:$0xff]   ;;  %v8440_v13 = vld [vmem:[#allocation5 + $0x3f0] ss:$28 sps:$4 sm:$0xff]  }
  0x99   :  { %v8442_v11 = vld [vmem:[#allocation5 + $0x3f4] ss:$28 sps:$4 sm:$0xff]   ;;  %v8445_v12 = vld [vmem:[#allocation5 + $0x3fc] ss:$28 sps:$4 sm:$0xff]   ;;  %v8448_v15 = vld [vmem:[#allocation5 + $0x42c] ss:$28 sps:$4 sm:$0xff]  }
  0x9a   :  { %2658 = vmatpush1.bf16.msra.mxu0 %v8370_v26  ;;  %2822 = vmatpush1.bf16.msra.mxu1 %v8371_v27  ;;  %v8443_v14 = vld [vmem:[#allocation5 + $0x3f8] ss:$28 sps:$4 sm:$0xff]   ;;  %v8446_v17 = vld [vmem:[#allocation5 + $0x428] ss:$28 sps:$4 sm:$0xff]   ;;  %v8449_v18 = vld [vmem:[#allocation5 + $0x430] ss:$28 sps:$4 sm:$0xff]  }
  0x9b   :  { %2659 = vmatprep.subr.bf16.mxu0 %v8372_v28  ;;  %2823 = vmatprep.subr.bf16.mxu1 %v8374_v29  ;;  %v8451_v16 = vld [vmem:[#allocation5 + $0x434] ss:$28 sps:$4 sm:$0xff]   ;;  %v8454_v19 = vld [vmem:[#allocation5 + $0x464] ss:$28 sps:$4 sm:$0xff]   ;;  %v8457_v20 = vld [vmem:[#allocation5 + $0x46c] ss:$28 sps:$4 sm:$0xff]  }
  0x9c   :  { %v8452_v21 = vld [vmem:[#allocation5 + $0x460] ss:$28 sps:$4 sm:$0xff]   ;;  %v8455_v22 = vld [vmem:[#allocation5 + $0x468] ss:$28 sps:$4 sm:$0xff]   ;;  %v8458_v25 = vld [vmem:[#allocation5 + $0x498] ss:$28 sps:$4 sm:$0xff]  }
  0x9d   :  { %v8460_v23 = vld [vmem:[#allocation5 + $0x49c] ss:$28 sps:$4 sm:$0xff]   ;;  %v8463_v24 = vld [vmem:[#allocation5 + $0x4a4] ss:$28 sps:$4 sm:$0xff]   ;;  %v8466_v27 = vld [vmem:[#allocation5 + $0x4d4] ss:$28 sps:$4 sm:$0xff]  }
  0x9e   :  { %2660 = vmatpush1.bf16.msra.mxu0 %v8376_v30  ;;  %2824 = vmatpush1.bf16.msra.mxu1 %v8377_v31  ;;  %v8461_v26 = vld [vmem:[#allocation5 + $0x4a0] ss:$28 sps:$4 sm:$0xff]   ;;  %v9848_v29 = vld [vmem:[#allocation2 + $0x8] sm:$0xff]  ;;  %s9715_s6 = smov [#allocation14]  }
  0x9f   :  { %2661 = vmatprep.subr.bf16.mxu0 %v8378_v32  ;;  %2825 = vmatprep.subr.bf16.mxu1 %v8380_v33  ;;  %v8469_v28 = vld [vmem:[#allocation5 + $0x4dc] ss:$28 sps:$4 sm:$0xff]   ;;  %v9852_v30 = vcombine.high %v9848_v29, %v9848_v29  ;;  %v8464_v31 = vld [vmem:[#allocation5 + $0x4d0] ss:$28 sps:$4 sm:$0xff]   ;;  %s7086_s3 = sshll.u32 %s9715_s6, 4  ;;  %s7087_s3 = int_to_ptr.vmem [resolvable:$true] %s7086_s3 }
  0xa0   :  { %v8467_v32 = vld [vmem:[#allocation5 + $0x4d8] ss:$28 sps:$4 sm:$0xff]   ;;  %v8472_v33 = vld [vmem:[#allocation5 + $0x50c] ss:$28 sps:$4 sm:$0xff]   ;;  %s9669_s0 = scalar_lea.vmem %s7087_s3, 128  ;;  %p9674_p1 = scmp.lt.s32.totalorder %s7087_s3, %s7087_s3 }
  0xa1   :  { %v8493_v46 = vld [vmem:[#allocation5 + $0x5bc] ss:$28 sps:$4 sm:$0xff]   ;;  %p9670_p0 = scmp.ne.s32.totalorder %s7087_s3, %s9669_s0  ;;  %p9675_p2 = scmp.lt.s32.totalorder %s9669_s0, %s9669_s0 }
  0xa2   :  { %2662 = vmatpush1.bf16.msra.mxu0 %v8382_v34  ;;  %2826 = vmatpush1.bf16.msra.mxu1 %v8383_v35  ;;  %v8475_v34 = vld [vmem:[#allocation5 + $0x514] ss:$28 sps:$4 sm:$0xff]   ;;  %v8470_v35 = vld [vmem:[#allocation5 + $0x508] ss:$28 sps:$4 sm:$0xff]  }
  0xa3   :  { %2663 = vmatprep.subr.bf16.mxu0 %v8384_v36  ;;  %2827 = vmatprep.subr.bf16.mxu1 %v8386_v37  ;;  %v8473_v36 = vld [vmem:[#allocation5 + $0x510] ss:$28 sps:$4 sm:$0xff]   ;;  %v8478_v37 = vld [vmem:[#allocation5 + $0x544] ss:$28 sps:$4 sm:$0xff]   ;;  %p9676_p3 = por %p9675_p2, %p9674_p1 }
  0xa5   :  { %p9677_p4 = pnand %p9676_p3, %p9670_p0 }
  0xa6   :  { %2664 = vmatpush1.bf16.msra.mxu0 %v8388_v38  ;;  %2828 = vmatpush1.bf16.msra.mxu1 %v8389_v39  ;;  %v8481_v38 = vld [vmem:[#allocation5 + $0x54c] ss:$28 sps:$4 sm:$0xff]   ;;  %v8476_v39 = vld [vmem:[#allocation5 + $0x540] ss:$28 sps:$4 sm:$0xff]  }
  0xa7   :  { %2665 = vmatprep.subr.bf16.mxu0 %v8390_v40  ;;  %2829 = vmatprep.subr.bf16.mxu1 %v8392_v41  ;;  %v8479_v40 = vld [vmem:[#allocation5 + $0x548] ss:$28 sps:$4 sm:$0xff]   ;;  %v8484_v41 = vld [vmem:[#allocation5 + $0x57c] ss:$28 sps:$4 sm:$0xff]  }
  0xaa   :  { %2666 = vmatpush1.bf16.msra.mxu0 %v8394_v42  ;;  %2830 = vmatpush1.bf16.msra.mxu1 %v8395_v43  ;;  %v8487_v42 = vld [vmem:[#allocation5 + $0x584] ss:$28 sps:$4 sm:$0xff]   ;;  %v8482_v43 = vld [vmem:[#allocation5 + $0x578] ss:$28 sps:$4 sm:$0xff]  }
  0xab   :  { %2667 = vmatprep.subr.bf16.mxu0 %v8396_v44  ;;  %2831 = vmatprep.subr.bf16.mxu1 %v8398_v45  ;;  %v8485_v44 = vld [vmem:[#allocation5 + $0x580] ss:$28 sps:$4 sm:$0xff]   ;;  %v8490_v45 = vld [vmem:[#allocation5 + $0x5b4] ss:$28 sps:$4 sm:$0xff]  }
  0xae   :  { %2668 = vmatpush1.bf16.msra.mxu0 %v8400_v47  ;;  %2832 = vmatpush1.bf16.msra.mxu1 %v8401_v49  ;;  %v8488_v47 = vld [vmem:[#allocation5 + $0x5b0] ss:$28 sps:$4 sm:$0xff]   ;;  %v8491_v49 = vld [vmem:[#allocation5 + $0x5b8] ss:$28 sps:$4 sm:$0xff]  }
  0xaf   :  { %2669 = vmatprep.subr.bf16.mxu0 %v8402_v50  ;;  %2833 = vmatprep.subr.bf16.mxu1 %v8404_v51  ;;  %v8496_v50 = vld [vmem:[#allocation5 + $0x5ec] ss:$28 sps:$4 sm:$0xff]   ;;  %v8499_v51 = vld [vmem:[#allocation5 + $0x5f4] ss:$28 sps:$4 sm:$0xff]  }
  0xb2   :  { %2670 = vmatpush1.bf16.msra.mxu0 %v8406_v52  ;;  %2834 = vmatpush1.bf16.msra.mxu1 %v8407_v53  ;;  %v8494_v52 = vld [vmem:[#allocation5 + $0x5e8] ss:$28 sps:$4 sm:$0xff]   ;;  %v8497_v53 = vld [vmem:[#allocation5 + $0x5f0] ss:$28 sps:$4 sm:$0xff]  }
  0xb3   :  { %2671 = vmatprep.subr.bf16.mxu0 %v8408_v54  ;;  %2835 = vmatprep.subr.bf16.mxu1 %v8410_v55  ;;  %v8502_v54 = vld [vmem:[#allocation5 + $0x624] ss:$28 sps:$4 sm:$0xff]   ;;  %v8505_v55 = vld [vmem:[#allocation5 + $0x62c] ss:$28 sps:$4 sm:$0xff]  }
  0xb6   :  { %2672 = vmatpush1.bf16.msra.mxu0 %v8412_v56  ;;  %2836 = vmatpush1.bf16.msra.mxu1 %v8413_v57  ;;  %v8500_v56 = vld [vmem:[#allocation5 + $0x620] ss:$28 sps:$4 sm:$0xff]   ;;  %v8503_v57 = vld [vmem:[#allocation5 + $0x628] ss:$28 sps:$4 sm:$0xff]  }
  0xb7   :  { %2673 = vmatprep.subr.bf16.mxu0 %v8414_v58  ;;  %2837 = vmatprep.subr.bf16.mxu1 %v8416_v59  ;;  %v8508_v58 = vld [vmem:[#allocation5 + $0x65c] ss:$28 sps:$4 sm:$0xff]   ;;  %v8511_v59 = vld [vmem:[#allocation5 + $0x664] ss:$28 sps:$4 sm:$0xff]  }
  0xba   :  { %2674 = vmatpush1.bf16.msra.mxu0 %v8418_v60  ;;  %2838 = vmatpush1.bf16.msra.mxu1 %v8419_v61  ;;  %v8506_v60 = vld [vmem:[#allocation5 + $0x658] ss:$28 sps:$4 sm:$0xff]   ;;  %v8509_v61 = vld [vmem:[#allocation5 + $0x660] ss:$28 sps:$4 sm:$0xff]  }
  0xbb   :  { %2675 = vmatprep.subr.bf16.mxu0 %v8420_v62  ;;  %2839 = vmatprep.subr.bf16.mxu1 %v8422_v63  ;;  %v8514_v62 = vld [vmem:[#allocation5 + $0x694] ss:$28 sps:$4 sm:$0xff]   ;;  %v8517_v63 = vld [vmem:[#allocation5 + $0x69c] ss:$28 sps:$4 sm:$0xff]  }
  0xbe   :  { %2676 = vmatpush1.bf16.msra.mxu0 %v8424_v0  ;;  %2840 = vmatpush1.bf16.msra.mxu1 %v8425_v1  ;;  %v8512_v0 = vld [vmem:[#allocation5 + $0x690] ss:$28 sps:$4 sm:$0xff]   ;;  %v8515_v1 = vld [vmem:[#allocation5 + $0x698] ss:$28 sps:$4 sm:$0xff]  }
  0xbf   :  { %2686 = vmatprep.subr.bf16.mxu0 %v8429_v2  ;;  %2850 = vmatprep.subr.bf16.mxu1 %v8432_v3  ;;  %v8520_v2 = vld [vmem:[#allocation5 + $0x6cc] ss:$28 sps:$4 sm:$0xff]   ;;  %v8523_v3 = vld [vmem:[#allocation5 + $0x6d4] ss:$28 sps:$4 sm:$0xff]  }
  0xc1   :  { %2678 = vmatmul.mubr.bf16.vlgmr.msra.gmra.mrb[0].mxu0 %v9844_v5  ;;  %2842 = vmatmul.mubr.bf16.vlgmr.msra.gmra.mrb[0].mxu1 %v9844_v5 }
  0xc2   :  { %2687 = vmatpush1.bf16.msra.mxu0 %v8427_v4  ;;  %2851 = vmatpush1.bf16.msra.mxu1 %v8430_v6  ;;  %v8518_v4 = vld [vmem:[#allocation5 + $0x6c8] ss:$28 sps:$4 sm:$0xff]   ;;  %v8521_v6 = vld [vmem:[#allocation5 + $0x6d0] ss:$28 sps:$4 sm:$0xff]  }
  0xc3   :  { %2688 = vmatprep.subr.bf16.mxu0 %v8436_v7  ;;  %2852 = vmatprep.subr.bf16.mxu1 %v8439_v8  ;;  %v8527_v7 = vld [vmem:[#allocation5 + $0x704] ss:$28 sps:$4 sm:$0xff]   ;;  %v8530_v8 = vld [vmem:[#allocation5 + $0x70c] ss:$28 sps:$4 sm:$0xff]  }
  0xc4   :  { %2718 = vmatprep.mubr.bf16.mxu0 %v9852_v30  ;;  %2882 = vmatprep.mubr.bf16.mxu1 %v9852_v30 }
  0xc6   :  { %2689 = vmatpush1.bf16.msra.mxu0 %v8434_v9  ;;  %2853 = vmatpush1.bf16.msra.mxu1 %v8437_v10  ;;  %v8525_v9 = vld [vmem:[#allocation5 + $0x700] ss:$28 sps:$4 sm:$0xff]   ;;  %v9858_v10 = vcombine.low %v9848_v29, %v9848_v29  ;;  %v8553_v29 = vld [vmem:[#allocation5 + $0x7e8] ss:$28 sps:$4 sm:$0xff]  }
  0xc7   :  { %2690 = vmatprep.subr.bf16.mxu0 %v8442_v11  ;;  %2854 = vmatprep.subr.bf16.mxu1 %v8445_v12  ;;  %v8528_v11 = vld [vmem:[#allocation5 + $0x708] ss:$28 sps:$4 sm:$0xff]   ;;  %v8534_v12 = vld [vmem:[#allocation5 + $0x73c] ss:$28 sps:$4 sm:$0xff]  }
  0xca   :  { %2691 = vmatpush1.bf16.msra.mxu0 %v8440_v13  ;;  %2855 = vmatpush1.bf16.msra.mxu1 %v8443_v14  ;;  %v9860_v13 = vld [vmem:[#allocation2 + $0x10] sm:$0xff]  ;;  %v8537_v14 = vld [vmem:[#allocation5 + $0x744] ss:$28 sps:$4 sm:$0xff]  }
  0xcb   :  { %2692 = vmatprep.subr.bf16.mxu0 %v8448_v15  ;;  %2856 = vmatprep.subr.bf16.mxu1 %v8451_v16  ;;  %v9864_v15 = vcombine.high %v9860_v13, %v9860_v13  ;;  %v8532_v16 = vld [vmem:[#allocation5 + $0x738] ss:$28 sps:$4 sm:$0xff]  }
  0xce   :  { %2693 = vmatpush1.bf16.msra.mxu0 %v8446_v17  ;;  %2857 = vmatpush1.bf16.msra.mxu1 %v8449_v18  ;;  %v8535_v17 = vld [vmem:[#allocation5 + $0x740] ss:$28 sps:$4 sm:$0xff]   ;;  %v8540_v18 = vld [vmem:[#allocation5 + $0x774] ss:$28 sps:$4 sm:$0xff]  }
  0xcf   :  { %2694 = vmatprep.subr.bf16.mxu0 %v8454_v19  ;;  %2858 = vmatprep.subr.bf16.mxu1 %v8457_v20  ;;  %v8543_v19 = vld [vmem:[#allocation5 + $0x77c] ss:$28 sps:$4 sm:$0xff]   ;;  %v8538_v20 = vld [vmem:[#allocation5 + $0x770] ss:$28 sps:$4 sm:$0xff]  }
  0xd2   :  { %2695 = vmatpush1.bf16.msra.mxu0 %v8452_v21  ;;  %2859 = vmatpush1.bf16.msra.mxu1 %v8455_v22  ;;  %v8541_v21 = vld [vmem:[#allocation5 + $0x778] ss:$28 sps:$4 sm:$0xff]   ;;  %v8546_v22 = vld [vmem:[#allocation5 + $0x7ac] ss:$28 sps:$4 sm:$0xff]  }
  0xd3   :  { %2696 = vmatprep.subr.bf16.mxu0 %v8460_v23  ;;  %2860 = vmatprep.subr.bf16.mxu1 %v8463_v24  ;;  %v8549_v23 = vld [vmem:[#allocation5 + $0x7b4] ss:$28 sps:$4 sm:$0xff]   ;;  %v8544_v24 = vld [vmem:[#allocation5 + $0x7a8] ss:$28 sps:$4 sm:$0xff]  }
  0xd6   :  { %2697 = vmatpush1.bf16.msra.mxu0 %v8458_v25  ;;  %2861 = vmatpush1.bf16.msra.mxu1 %v8461_v26  ;;  %v8547_v25 = vld [vmem:[#allocation5 + $0x7b0] ss:$28 sps:$4 sm:$0xff]   ;;  %v8552_v26 = vld [vmem:[#allocation5 + $0x7e4] ss:$28 sps:$4 sm:$0xff]  }
  0xd7   :  { %2698 = vmatprep.subr.bf16.mxu0 %v8466_v27  ;;  %2862 = vmatprep.subr.bf16.mxu1 %v8469_v28  ;;  %v8555_v27 = vld [vmem:[#allocation5 + $0x7ec] ss:$28 sps:$4 sm:$0xff]   ;;  %v8550_v28 = vld [vmem:[#allocation5 + $0x7e0] ss:$28 sps:$4 sm:$0xff]  }
  0xda   :  { %2699 = vmatpush1.bf16.msra.mxu0 %v8464_v31  ;;  %2863 = vmatpush1.bf16.msra.mxu1 %v8467_v32  ;;  %v8558_v31 = vld [vmem:[#allocation5 + $0x81c] ss:$28 sps:$4 sm:$0xff]   ;;  %v8561_v32 = vld [vmem:[#allocation5 + $0x824] ss:$28 sps:$4 sm:$0xff]  }
  0xdb   :  { %2700 = vmatprep.subr.bf16.mxu0 %v8472_v33  ;;  %2864 = vmatprep.subr.bf16.mxu1 %v8475_v34  ;;  %v8556_v33 = vld [vmem:[#allocation5 + $0x818] ss:$28 sps:$4 sm:$0xff]   ;;  %v8559_v34 = vld [vmem:[#allocation5 + $0x820] ss:$28 sps:$4 sm:$0xff]  }
  0xde   :  { %2701 = vmatpush1.bf16.msra.mxu0 %v8470_v35  ;;  %2865 = vmatpush1.bf16.msra.mxu1 %v8473_v36  ;;  %v8564_v35 = vld [vmem:[#allocation5 + $0x854] ss:$28 sps:$4 sm:$0xff]   ;;  %v8567_v36 = vld [vmem:[#allocation5 + $0x85c] ss:$28 sps:$4 sm:$0xff]  }
  0xdf   :  { %2702 = vmatprep.subr.bf16.mxu0 %v8478_v37  ;;  %2866 = vmatprep.subr.bf16.mxu1 %v8481_v38  ;;  %v8562_v37 = vld [vmem:[#allocation5 + $0x850] ss:$28 sps:$4 sm:$0xff]   ;;  %v8565_v38 = vld [vmem:[#allocation5 + $0x858] ss:$28 sps:$4 sm:$0xff]  }
  0xe2   :  { %2703 = vmatpush1.bf16.msra.mxu0 %v8476_v39  ;;  %2867 = vmatpush1.bf16.msra.mxu1 %v8479_v40  ;;  %v8570_v39 = vld [vmem:[#allocation5 + $0x88c] ss:$28 sps:$4 sm:$0xff]   ;;  %v8573_v40 = vld [vmem:[#allocation5 + $0x894] ss:$28 sps:$4 sm:$0xff]  }
  0xe3   :  { %2704 = vmatprep.subr.bf16.mxu0 %v8484_v41  ;;  %2868 = vmatprep.subr.bf16.mxu1 %v8487_v42  ;;  %v8568_v41 = vld [vmem:[#allocation5 + $0x888] ss:$28 sps:$4 sm:$0xff]   ;;  %v8571_v42 = vld [vmem:[#allocation5 + $0x890] ss:$28 sps:$4 sm:$0xff]  }
  0xe6   :  { %2705 = vmatpush1.bf16.msra.mxu0 %v8482_v43  ;;  %2869 = vmatpush1.bf16.msra.mxu1 %v8485_v44  ;;  %v8576_v43 = vld [vmem:[#allocation5 + $0x8c4] ss:$28 sps:$4 sm:$0xff]   ;;  %v8579_v44 = vld [vmem:[#allocation5 + $0x8cc] ss:$28 sps:$4 sm:$0xff]  }
  0xe7   :  { %2706 = vmatprep.subr.bf16.mxu0 %v8490_v45  ;;  %2870 = vmatprep.subr.bf16.mxu1 %v8493_v46  ;;  %v8574_v45 = vld [vmem:[#allocation5 + $0x8c0] ss:$28 sps:$4 sm:$0xff]   ;;  %v8577_v46 = vld [vmem:[#allocation5 + $0x8c8] ss:$28 sps:$4 sm:$0xff]  }
  0xea   :  { %2707 = vmatpush1.bf16.msra.mxu0 %v8488_v47  ;;  %2871 = vmatpush1.bf16.msra.mxu1 %v8491_v49  ;;  %v8582_v47 = vld [vmem:[#allocation5 + $0x8fc] ss:$28 sps:$4 sm:$0xff]   ;;  %v8585_v49 = vld [vmem:[#allocation5 + $0x904] ss:$28 sps:$4 sm:$0xff]  }
  0xeb   :  { %2708 = vmatprep.subr.bf16.mxu0 %v8496_v50  ;;  %2872 = vmatprep.subr.bf16.mxu1 %v8499_v51  ;;  %v8580_v50 = vld [vmem:[#allocation5 + $0x8f8] ss:$28 sps:$4 sm:$0xff]   ;;  %v8583_v51 = vld [vmem:[#allocation5 + $0x900] ss:$28 sps:$4 sm:$0xff]  }
  0xee   :  { %2709 = vmatpush1.bf16.msra.mxu0 %v8494_v52  ;;  %2873 = vmatpush1.bf16.msra.mxu1 %v8497_v53  ;;  %v8588_v52 = vld [vmem:[#allocation5 + $0x934] ss:$28 sps:$4 sm:$0xff]   ;;  %v8591_v53 = vld [vmem:[#allocation5 + $0x93c] ss:$28 sps:$4 sm:$0xff]  }
  0xef   :  { %2710 = vmatprep.subr.bf16.mxu0 %v8502_v54  ;;  %2874 = vmatprep.subr.bf16.mxu1 %v8505_v55  ;;  %v8586_v54 = vld [vmem:[#allocation5 + $0x930] ss:$28 sps:$4 sm:$0xff]   ;;  %v8589_v55 = vld [vmem:[#allocation5 + $0x938] ss:$28 sps:$4 sm:$0xff]  }
  0xf2   :  { %2711 = vmatpush1.bf16.msra.mxu0 %v8500_v56  ;;  %2875 = vmatpush1.bf16.msra.mxu1 %v8503_v57  ;;  %v8594_v56 = vld [vmem:[#allocation5 + $0x96c] ss:$28 sps:$4 sm:$0xff]   ;;  %v8597_v57 = vld [vmem:[#allocation5 + $0x974] ss:$28 sps:$4 sm:$0xff]  }
  0xf3   :  { %2712 = vmatprep.subr.bf16.mxu0 %v8508_v58  ;;  %2876 = vmatprep.subr.bf16.mxu1 %v8511_v59  ;;  %v8592_v58 = vld [vmem:[#allocation5 + $0x968] ss:$28 sps:$4 sm:$0xff]   ;;  %v8595_v59 = vld [vmem:[#allocation5 + $0x970] ss:$28 sps:$4 sm:$0xff]  }
  0xf6   :  { %2713 = vmatpush1.bf16.msra.mxu0 %v8506_v60  ;;  %2877 = vmatpush1.bf16.msra.mxu1 %v8509_v61  ;;  %v8600_v60 = vld [vmem:[#allocation5 + $0x9a4] ss:$28 sps:$4 sm:$0xff]   ;;  %v8603_v61 = vld [vmem:[#allocation5 + $0x9ac] ss:$28 sps:$4 sm:$0xff]  }
  0xf7   :  { %2714 = vmatprep.subr.bf16.mxu0 %v8514_v62  ;;  %2878 = vmatprep.subr.bf16.mxu1 %v8517_v63  ;;  %v8598_v62 = vld [vmem:[#allocation5 + $0x9a0] ss:$28 sps:$4 sm:$0xff]   ;;  %v8601_v63 = vld [vmem:[#allocation5 + $0x9a8] ss:$28 sps:$4 sm:$0xff]  }
  0xfa   :  { %2715 = vmatpush1.bf16.msra.mxu0 %v8512_v0  ;;  %2879 = vmatpush1.bf16.msra.mxu1 %v8515_v1  ;;  %v8606_v0 = vld [vmem:[#allocation5 + $0x9dc] ss:$28 sps:$4 sm:$0xff]   ;;  %v8609_v1 = vld [vmem:[#allocation5 + $0x9e4] ss:$28 sps:$4 sm:$0xff]  }
  0xfb   :  { %2716 = vmatprep.subr.bf16.mxu0 %v8520_v2  ;;  %2880 = vmatprep.subr.bf16.mxu1 %v8523_v3  ;;  %v8604_v2 = vld [vmem:[#allocation5 + $0x9d8] ss:$28 sps:$4 sm:$0xff]   ;;  %v8607_v3 = vld [vmem:[#allocation5 + $0x9e0] ss:$28 sps:$4 sm:$0xff]  }
  0xfe   :  { %2717 = vmatpush1.bf16.msra.mxu0 %v8518_v4  ;;  %2881 = vmatpush1.bf16.msra.mxu1 %v8521_v6  ;;  %v8612_v4 = vld [vmem:[#allocation5 + $0xa14] ss:$28 sps:$4 sm:$0xff]   ;;  %v8615_v6 = vld [vmem:[#allocation5 + $0xa1c] ss:$28 sps:$4 sm:$0xff]  }
  0xff   :  { %2727 = vmatprep.subr.bf16.mxu0 %v8527_v7  ;;  %2891 = vmatprep.subr.bf16.mxu1 %v8530_v8  ;;  %v8610_v7 = vld [vmem:[#allocation5 + $0xa10] ss:$28 sps:$4 sm:$0xff]   ;;  %v8613_v8 = vld [vmem:[#allocation5 + $0xa18] ss:$28 sps:$4 sm:$0xff]  }
 0x101   :  { %2719 = vmatmul.mubr.bf16.vlgmr.msra.gmra.mrb[0].mxu0 %v9858_v10  ;;  %2883 = vmatmul.mubr.bf16.vlgmr.msra.gmra.mrb[0].mxu1 %v9858_v10 }
 0x102   :  { %2728 = vmatpush1.bf16.msra.mxu0 %v8525_v9  ;;  %2892 = vmatpush1.bf16.msra.mxu1 %v8528_v11  ;;  %v8618_v9 = vld [vmem:[#allocation5 + $0xa4c] ss:$28 sps:$4 sm:$0xff]   ;;  %v8621_v11 = vld [vmem:[#allocation5 + $0xa54] ss:$28 sps:$4 sm:$0xff]  }
 0x103   :  { %2729 = vmatprep.subr.bf16.mxu0 %v8534_v12  ;;  %2893 = vmatprep.subr.bf16.mxu1 %v8537_v14  ;;  %v8616_v12 = vld [vmem:[#allocation5 + $0xa48] ss:$28 sps:$4 sm:$0xff]   ;;  %v8619_v14 = vld [vmem:[#allocation5 + $0xa50] ss:$28 sps:$4 sm:$0xff]  }
 0x104   :  { %2759 = vmatprep.mubr.bf16.mxu0 %v9864_v15  ;;  %2923 = vmatprep.mubr.bf16.mxu1 %v9864_v15 }
 0x106   :  { %2730 = vmatpush1.bf16.msra.mxu0 %v8532_v16  ;;  %2894 = vmatpush1.bf16.msra.mxu1 %v8535_v17  ;;  %v8625_v16 = vld [vmem:[#allocation5 + $0xa84] ss:$28 sps:$4 sm:$0xff]   ;;  %v8628_v17 = vld [vmem:[#allocation5 + $0xa8c] ss:$28 sps:$4 sm:$0xff]  }
 0x107   :  { %2731 = vmatprep.subr.bf16.mxu0 %v8540_v18  ;;  %2895 = vmatprep.subr.bf16.mxu1 %v8543_v19  ;;  %v8623_v18 = vld [vmem:[#allocation5 + $0xa80] ss:$28 sps:$4 sm:$0xff]   ;;  %v9872_v19 = vcombine.low %v9860_v13, %v9860_v13 }
 0x108   :  { %v8641_v13 = vld [vmem:[#allocation5 + $0xafc] ss:$28 sps:$4 sm:$0xff]  }
 0x10a   :  { %2732 = vmatpush1.bf16.msra.mxu0 %v8538_v20  ;;  %2896 = vmatpush1.bf16.msra.mxu1 %v8541_v21  ;;  %v8626_v20 = vld [vmem:[#allocation5 + $0xa88] ss:$28 sps:$4 sm:$0xff]   ;;  %v8632_v21 = vld [vmem:[#allocation5 + $0xabc] ss:$28 sps:$4 sm:$0xff]  }
 0x10b   :  { %2733 = vmatprep.subr.bf16.mxu0 %v8546_v22  ;;  %2897 = vmatprep.subr.bf16.mxu1 %v8549_v23  ;;  %v8635_v22 = vld [vmem:[#allocation5 + $0xac4] ss:$28 sps:$4 sm:$0xff]   ;;  %v8630_v23 = vld [vmem:[#allocation5 + $0xab8] ss:$28 sps:$4 sm:$0xff]  }
 0x10e   :  { %2734 = vmatpush1.bf16.msra.mxu0 %v8544_v24  ;;  %2898 = vmatpush1.bf16.msra.mxu1 %v8547_v25  ;;  %v8633_v24 = vld [vmem:[#allocation5 + $0xac0] ss:$28 sps:$4 sm:$0xff]   ;;  %v8638_v25 = vld [vmem:[#allocation5 + $0xaf4] ss:$28 sps:$4 sm:$0xff]  }
 0x10f   :  { %2735 = vmatprep.subr.bf16.mxu0 %v8552_v26  ;;  %2899 = vmatprep.subr.bf16.mxu1 %v8555_v27  ;;  %v8636_v26 = vld [vmem:[#allocation5 + $0xaf0] ss:$28 sps:$4 sm:$0xff]   ;;  %v9712_v27 = vmov 0  }
 0x112   :  { %2736 = vmatpush1.bf16.msra.mxu0 %v8550_v28  ;;  %2900 = vmatpush1.bf16.msra.mxu1 %v8553_v29  ;;  %v8639_v28 = vld [vmem:[#allocation5 + $0xaf8] ss:$28 sps:$4 sm:$0xff]   ;;  %v8644_v29 = vld [vmem:[#allocation5 + $0xb2c] ss:$28 sps:$4 sm:$0xff]  }
 0x113   :  { %2737 = vmatprep.subr.bf16.mxu0 %v8558_v31  ;;  %2901 = vmatprep.subr.bf16.mxu1 %v8561_v32  ;;  %v8647_v31 = vld [vmem:[#allocation5 + $0xb34] ss:$28 sps:$4 sm:$0xff]   ;;  %v8642_v32 = vld [vmem:[#allocation5 + $0xb28] ss:$28 sps:$4 sm:$0xff]  }
 0x116   :  { %2738 = vmatpush1.bf16.msra.mxu0 %v8556_v33  ;;  %2902 = vmatpush1.bf16.msra.mxu1 %v8559_v34  ;;  %v8645_v33 = vld [vmem:[#allocation5 + $0xb30] ss:$28 sps:$4 sm:$0xff]   ;;  %v8650_v34 = vld [vmem:[#allocation5 + $0xb64] ss:$28 sps:$4 sm:$0xff]  }
 0x117   :  { %2739 = vmatprep.subr.bf16.mxu0 %v8564_v35  ;;  %2903 = vmatprep.subr.bf16.mxu1 %v8567_v36  ;;  %v8653_v35 = vld [vmem:[#allocation5 + $0xb6c] ss:$28 sps:$4 sm:$0xff]   ;;  %v8648_v36 = vld [vmem:[#allocation5 + $0xb60] ss:$28 sps:$4 sm:$0xff]  }
 0x11a   :  { %2740 = vmatpush1.bf16.msra.mxu0 %v8562_v37  ;;  %2904 = vmatpush1.bf16.msra.mxu1 %v8565_v38  ;;  %v8651_v37 = vld [vmem:[#allocation5 + $0xb68] ss:$28 sps:$4 sm:$0xff]   ;;  %v8656_v38 = vld [vmem:[#allocation5 + $0xb9c] ss:$28 sps:$4 sm:$0xff]  }
 0x11b   :  { %2741 = vmatprep.subr.bf16.mxu0 %v8570_v39  ;;  %2905 = vmatprep.subr.bf16.mxu1 %v8573_v40  ;;  %v8659_v39 = vld [vmem:[#allocation5 + $0xba4] ss:$28 sps:$4 sm:$0xff]   ;;  %v8654_v40 = vld [vmem:[#allocation5 + $0xb98] ss:$28 sps:$4 sm:$0xff]  }
 0x11e   :  { %2742 = vmatpush1.bf16.msra.mxu0 %v8568_v41  ;;  %2906 = vmatpush1.bf16.msra.mxu1 %v8571_v42  ;;  %v8657_v41 = vld [vmem:[#allocation5 + $0xba0] ss:$28 sps:$4 sm:$0xff]   ;;  %v8662_v42 = vld [vmem:[#allocation5 + $0xbd4] ss:$28 sps:$4 sm:$0xff]  }
 0x11f   :  { %2743 = vmatprep.subr.bf16.mxu0 %v8576_v43  ;;  %2907 = vmatprep.subr.bf16.mxu1 %v8579_v44  ;;  %v8665_v43 = vld [vmem:[#allocation5 + $0xbdc] ss:$28 sps:$4 sm:$0xff]   ;;  %v8660_v44 = vld [vmem:[#allocation5 + $0xbd0] ss:$28 sps:$4 sm:$0xff]  }
 0x122   :  { %2744 = vmatpush1.bf16.msra.mxu0 %v8574_v45  ;;  %2908 = vmatpush1.bf16.msra.mxu1 %v8577_v46  ;;  %v8663_v45 = vld [vmem:[#allocation5 + $0xbd8] ss:$28 sps:$4 sm:$0xff]   ;;  %v8668_v46 = vld [vmem:[#allocation5 + $0xc0c] ss:$28 sps:$4 sm:$0xff]  }
 0x123   :  { %2745 = vmatprep.subr.bf16.mxu0 %v8582_v47  ;;  %2909 = vmatprep.subr.bf16.mxu1 %v8585_v49  ;;  %v8671_v47 = vld [vmem:[#allocation5 + $0xc14] ss:$28 sps:$4 sm:$0xff]   ;;  %v8666_v49 = vld [vmem:[#allocation5 + $0xc08] ss:$28 sps:$4 sm:$0xff]  }
 0x126   :  { %2746 = vmatpush1.bf16.msra.mxu0 %v8580_v50  ;;  %2910 = vmatpush1.bf16.msra.mxu1 %v8583_v51  ;;  %v8669_v50 = vld [vmem:[#allocation5 + $0xc10] ss:$28 sps:$4 sm:$0xff]  }
 0x127   :  { %2747 = vmatprep.subr.bf16.mxu0 %v8588_v52  ;;  %2911 = vmatprep.subr.bf16.mxu1 %v8591_v53  ;;  %v8675_v51 = vld [vmem:[#allocation5 + $0x14] ss:$28 sps:$4 sm:$0xff]   ;;  %v8672_v53 = vld [vmem:[#allocation2 + $0x18] ss:$0 sps:$4 sm:$0xff]  }
 0x128   :  { %v8694_v52 = vld [vmem:[#allocation5 + $0x1d8] ss:$28 sps:$4 sm:$0xff]  }
 0x12a   :  { %2748 = vmatpush1.bf16.msra.mxu0 %v8586_v54  ;;  %2912 = vmatpush1.bf16.msra.mxu1 %v8589_v55  ;;  %v8673_v54 = vld [vmem:[#allocation5 + $0x10] ss:$28 sps:$4 sm:$0xff]  }
 0x12b   :  { %2749 = vmatprep.subr.bf16.mxu0 %v8594_v56  ;;  %2913 = vmatprep.subr.bf16.mxu1 %v8597_v57  ;;  %v8678_v55 = vld [vmem:[#allocation5 + $0x4c] ss:$28 sps:$4 sm:$0xff]   ;;  %v8695_v56 = vld [vmem:[#allocation5 + $0x18] ss:$28 sps:$4 sm:$0xff]  }
 0x12c   :  { %v8699_v57 = vld [vmem:[#allocation5 + $0x210] ss:$28 sps:$4 sm:$0xff]  }
 0x12e   :  { %2750 = vmatpush1.bf16.msra.mxu0 %v8592_v58  ;;  %2914 = vmatpush1.bf16.msra.mxu1 %v8595_v59  ;;  %v8676_v58 = vld [vmem:[#allocation5 + $0x48] ss:$28 sps:$4 sm:$0xff]  }
 0x12f   :  { %2751 = vmatprep.subr.bf16.mxu0 %v8600_v60  ;;  %2915 = vmatprep.subr.bf16.mxu1 %v8603_v61  ;;  %v8681_v59 = vld [vmem:[#allocation5 + $0x84] ss:$28 sps:$4 sm:$0xff]   ;;  %v8700_v60 = vld [vmem:[#allocation5 + $0x50] ss:$28 sps:$4 sm:$0xff]  }
 0x130   :  { %v8704_v61 = vld [vmem:[#allocation5 + $0x248] ss:$28 sps:$4 sm:$0xff]  }
 0x132   :  { %2752 = vmatpush1.bf16.msra.mxu0 %v8598_v62  ;;  %2916 = vmatpush1.bf16.msra.mxu1 %v8601_v63  ;;  %v8679_v62 = vld [vmem:[#allocation5 + $0x80] ss:$28 sps:$4 sm:$0xff]   ;;  %v8705_v63 = vld [vmem:[#allocation5 + $0x88] ss:$28 sps:$4 sm:$0xff]  }
 0x133   :  { %2753 = vmatprep.subr.bf16.mxu0 %v8606_v0  ;;  %2917 = vmatprep.subr.bf16.mxu1 %v8609_v1  ;;  %v8684_v0 = vld [vmem:[#allocation5 + $0xbc] ss:$28 sps:$4 sm:$0xff]  }
 0x134   :  { %v8709_v1 = vld [vmem:[#allocation5 + $0x280] ss:$28 sps:$4 sm:$0xff]  }
 0x136   :  { %2754 = vmatpush1.bf16.msra.mxu0 %v8604_v2  ;;  %2918 = vmatpush1.bf16.msra.mxu1 %v8607_v3  ;;  %v8682_v2 = vld [vmem:[#allocation5 + $0xb8] ss:$28 sps:$4 sm:$0xff]  }
 0x137   :  { %2755 = vmatprep.subr.bf16.mxu0 %v8612_v4  ;;  %2919 = vmatprep.subr.bf16.mxu1 %v8615_v6  ;;  %v8687_v3 = vld [vmem:[#allocation5 + $0xf4] ss:$28 sps:$4 sm:$0xff]   ;;  %v8710_v4 = vld [vmem:[#allocation5 + $0xc0] ss:$28 sps:$4 sm:$0xff]  }
 0x138   :  { %v8714_v6 = vld [vmem:[#allocation5 + $0x2b8] ss:$28 sps:$4 sm:$0xff]  }
 0x13a   :  { %2756 = vmatpush1.bf16.msra.mxu0 %v8610_v7  ;;  %2920 = vmatpush1.bf16.msra.mxu1 %v8613_v8  ;;  %v8685_v7 = vld [vmem:[#allocation5 + $0xf0] ss:$28 sps:$4 sm:$0xff]  }
 0x13b   :  { %2757 = vmatprep.subr.bf16.mxu0 %v8618_v9  ;;  %2921 = vmatprep.subr.bf16.mxu1 %v8621_v11  ;;  %v8690_v8 = vld [vmem:[#allocation5 + $0x12c] ss:$28 sps:$4 sm:$0xff]  }
 0x13c   :  { %v8719_v9 = vld [vmem:[#allocation5 + $0x2f0] ss:$28 sps:$4 sm:$0xff]   ;;  %v8688_v11 = vld [vmem:[#allocation5 + $0x128] ss:$28 sps:$4 sm:$0xff]  }
 0x13e   :  { %2758 = vmatpush1.bf16.msra.mxu0 %v8616_v12  ;;  %2922 = vmatpush1.bf16.msra.mxu1 %v8619_v14  ;;  %v8693_v12 = vld [vmem:[#allocation5 + $0x164] ss:$28 sps:$4 sm:$0xff]   ;;  %v8720_v14 = vld [vmem:[#allocation5 + $0x130] ss:$28 sps:$4 sm:$0xff]  }
 0x13f   :  { %2768 = vmatprep.subr.bf16.mxu0 %v8625_v16  ;;  %2932 = vmatprep.subr.bf16.mxu1 %v8628_v17  ;;  %v8724_v16 = vld [vmem:[#allocation5 + $0x328] ss:$28 sps:$4 sm:$0xff]   ;;  %v8691_v17 = vld [vmem:[#allocation5 + $0x160] ss:$28 sps:$4 sm:$0xff]  }
 0x141   :  { %2760 = vmatmul.mubr.bf16.vlgmr.msra.gmra.mrb[0].mxu0 %v9872_v19  ;;  %2924 = vmatmul.mubr.bf16.vlgmr.msra.gmra.mrb[0].mxu1 %v9872_v19 }
 0x142   :  { %2769 = vmatpush1.bf16.msra.mxu0 %v8623_v18  ;;  %2933 = vmatpush1.bf16.msra.mxu1 %v8626_v20  ;;  %v8725_v18 = vld [vmem:[#allocation5 + $0x168] ss:$28 sps:$4 sm:$0xff]   ;;  %v8698_v20 = vld [vmem:[#allocation5 + $0x19c] ss:$28 sps:$4 sm:$0xff]  }
 0x143   :  { %2770 = vmatprep.subr.bf16.mxu0 %v8632_v21  ;;  %2934 = vmatprep.subr.bf16.mxu1 %v8635_v22  ;;  %v8729_v21 = vld [vmem:[#allocation5 + $0x360] ss:$28 sps:$4 sm:$0xff]   ;;  %v8696_v22 = vld [vmem:[#allocation5 + $0x198] ss:$28 sps:$4 sm:$0xff]  }
 0x144   :  { %2800 = vmatprep.mubr.bf16.mxu0 %v9712_v27  ;;  %2964 = vmatprep.mubr.bf16.mxu1 %v9712_v27 }
 0x146   :  { %2771 = vmatpush1.bf16.msra.mxu0 %v8630_v23  ;;  %2935 = vmatpush1.bf16.msra.mxu1 %v8633_v24  ;;  %v8703_v23 = vld [vmem:[#allocation5 + $0x1d4] ss:$28 sps:$4 sm:$0xff]   ;;  %v8730_v24 = vld [vmem:[#allocation5 + $0x1a0] ss:$28 sps:$4 sm:$0xff]  }
 0x147   :  { %2772 = vmatprep.subr.bf16.mxu0 %v8638_v25  ;;  %2936 = vmatprep.subr.bf16.mxu1 %v8641_v13  ;;  %v8734_v25 = vld [vmem:[#allocation5 + $0x558] ss:$28 sps:$4 sm:$0xff]   ;;  %v8701_v13 = vld [vmem:[#allocation5 + $0x1d0] ss:$28 sps:$4 sm:$0xff]  }
 0x14a   :  { %2773 = vmatpush1.bf16.msra.mxu0 %v8636_v26  ;;  %2937 = vmatpush1.bf16.msra.mxu1 %v8639_v28  ;;  %v8708_v26 = vld [vmem:[#allocation5 + $0x20c] ss:$28 sps:$4 sm:$0xff]   ;;  %v8735_v28 = vld [vmem:[#allocation5 + $0x398] ss:$28 sps:$4 sm:$0xff]  }
 0x14b   :  { %2774 = vmatprep.subr.bf16.mxu0 %v8644_v29  ;;  %2938 = vmatprep.subr.bf16.mxu1 %v8647_v31  ;;  %v8739_v29 = vld [vmem:[#allocation5 + $0x590] ss:$28 sps:$4 sm:$0xff]   ;;  %v8706_v31 = vld [vmem:[#allocation5 + $0x208] ss:$28 sps:$4 sm:$0xff]  }
 0x14e   :  { %2775 = vmatpush1.bf16.msra.mxu0 %v8642_v32  ;;  %2939 = vmatpush1.bf16.msra.mxu1 %v8645_v33  ;;  %v8740_v32 = vld [vmem:[#allocation5 + $0x3d0] ss:$28 sps:$4 sm:$0xff]   ;;  %v8713_v33 = vld [vmem:[#allocation5 + $0x244] ss:$28 sps:$4 sm:$0xff]  }
 0x14f   :  { %2776 = vmatprep.subr.bf16.mxu0 %v8650_v34  ;;  %2940 = vmatprep.subr.bf16.mxu1 %v8653_v35  ;;  %v8744_v34 = vld [vmem:[#allocation5 + $0x5c8] ss:$28 sps:$4 sm:$0xff]   ;;  %v8711_v35 = vld [vmem:[#allocation5 + $0x240] ss:$28 sps:$4 sm:$0xff]  }
 0x152   :  { %2777 = vmatpush1.bf16.msra.mxu0 %v8648_v36  ;;  %2941 = vmatpush1.bf16.msra.mxu1 %v8651_v37  ;;  %v8745_v36 = vld [vmem:[#allocation5 + $0x408] ss:$28 sps:$4 sm:$0xff]   ;;  %v8718_v37 = vld [vmem:[#allocation5 + $0x27c] ss:$28 sps:$4 sm:$0xff]  }
 0x153   :  { %2778 = vmatprep.subr.bf16.mxu0 %v8656_v38  ;;  %2942 = vmatprep.subr.bf16.mxu1 %v8659_v39  ;;  %v8749_v38 = vld [vmem:[#allocation5 + $0x600] ss:$28 sps:$4 sm:$0xff]   ;;  %v8716_v39 = vld [vmem:[#allocation5 + $0x278] ss:$28 sps:$4 sm:$0xff]  }
 0x156   :  { %2779 = vmatpush1.bf16.msra.mxu0 %v8654_v40  ;;  %2943 = vmatpush1.bf16.msra.mxu1 %v8657_v41  ;;  %v8750_v40 = vld [vmem:[#allocation5 + $0x440] ss:$28 sps:$4 sm:$0xff]   ;;  %v8723_v41 = vld [vmem:[#allocation5 + $0x2b4] ss:$28 sps:$4 sm:$0xff]  }
 0x157   :  { %2780 = vmatprep.subr.bf16.mxu0 %v8662_v42  ;;  %2944 = vmatprep.subr.bf16.mxu1 %v8665_v43  ;;  %v8754_v42 = vld [vmem:[#allocation5 + $0x638] ss:$28 sps:$4 sm:$0xff]   ;;  %v8721_v43 = vld [vmem:[#allocation5 + $0x2b0] ss:$28 sps:$4 sm:$0xff]  }
 0x15a   :  { %2781 = vmatpush1.bf16.msra.mxu0 %v8660_v44  ;;  %2945 = vmatpush1.bf16.msra.mxu1 %v8663_v45  ;;  %v8755_v44 = vld [vmem:[#allocation5 + $0x478] ss:$28 sps:$4 sm:$0xff]   ;;  %v8728_v45 = vld [vmem:[#allocation5 + $0x2ec] ss:$28 sps:$4 sm:$0xff]  }
 0x15b   :  { %2782 = vmatprep.subr.bf16.mxu0 %v8668_v46  ;;  %2946 = vmatprep.subr.bf16.mxu1 %v8671_v47  ;;  %v8759_v46 = vld [vmem:[#allocation5 + $0x670] ss:$28 sps:$4 sm:$0xff]   ;;  %v8726_v47 = vld [vmem:[#allocation5 + $0x2e8] ss:$28 sps:$4 sm:$0xff]  }
 0x15e   :  { %2783 = vmatpush1.bf16.msra.mxu0 %v8666_v49  ;;  %2947 = vmatpush1.bf16.msra.mxu1 %v8669_v50  ;;  %v8760_v49 = vld [vmem:[#allocation5 + $0x4b0] ss:$28 sps:$4 sm:$0xff]   ;;  %v8733_v50 = vld [vmem:[#allocation5 + $0x324] ss:$28 sps:$4 sm:$0xff]  }
 0x15f   :  { %2973 = vmatprep.subr.bf16.mxu0 %v8675_v51  ;;  %7946 = vmatprep.subr.bf16.mxu1 %v8694_v52  ;;  %v8764_v51 = vld [vmem:[#allocation5 + $0x6a8] ss:$28 sps:$4 sm:$0xff]   ;;  %v8731_v52 = vld [vmem:[#allocation5 + $0x320] ss:$28 sps:$4 sm:$0xff]  }
 0x161   :  { %2801 = vmatmul.mubr.bf16.vlgmr.msra.gmra.mrb[0].mxu0 %v8672_v53  ;;  %2965 = vmatmul.mubr.bf16.vlgmr.msra.gmra.mrb[0].mxu1 %v8672_v53  ;;  %v8738_v53 = vld [vmem:[#allocation5 + $0x35c] ss:$28 sps:$4 sm:$0xff]  }
 0x162   :  { %2974 = vmatpush1.bf16.msra.mxu0 %v8673_v54  ;;  %7947 = vmatpush3.bf16.msra.mxu1 %v8695_v56  ;;  %v8765_v54 = vld [vmem:[#allocation5 + $0x4e8] ss:$28 sps:$4 sm:$0xff]   ;;  %v8736_v56 = vld [vmem:[#allocation5 + $0x358] ss:$28 sps:$4 sm:$0xff]  }
 0x163   :  { %2975 = vmatprep.subr.bf16.mxu0 %v8678_v55  ;;  %7948 = vmatprep.subr.bf16.mxu1 %v8699_v57  ;;  %v8769_v55 = vld [vmem:[#allocation5 + $0x6e0] ss:$28 sps:$4 sm:$0xff]   ;;  %v8743_v57 = vld [vmem:[#allocation5 + $0x394] ss:$28 sps:$4 sm:$0xff]  }
 0x164   :  { %3169 = vmatprep.mubr.bf16.mxu1 %v9840_v48  ;;  %3005 = vmatprep.mubr.bf16.mxu0 %v9840_v48  ;;  %v8715_v48 = vld [vmem:[#allocation5 + $0xf8] ss:$28 sps:$4 sm:$0xff]  }
 0x166   :  { %2976 = vmatpush1.bf16.msra.mxu0 %v8676_v58  ;;  %7949 = vmatpush3.bf16.msra.mxu1 %v8700_v60  ;;  %v8770_v58 = vld [vmem:[#allocation5 + $0x520] ss:$28 sps:$4 sm:$0xff]   ;;  %v8741_v60 = vld [vmem:[#allocation5 + $0x390] ss:$28 sps:$4 sm:$0xff]  }
 0x167   :  { %2977 = vmatprep.subr.bf16.mxu0 %v8681_v59  ;;  %7950 = vmatprep.subr.bf16.mxu1 %v8704_v61  ;;  %v8774_v59 = vld [vmem:[#allocation5 + $0x8d8] ss:$28 sps:$4 sm:$0xff]   ;;  %v8748_v61 = vld [vmem:[#allocation5 + $0x3cc] ss:$28 sps:$4 sm:$0xff]  }
 0x16a   :  { %2978 = vmatpush1.bf16.msra.mxu0 %v8679_v62  ;;  %7951 = vmatpush3.bf16.msra.mxu1 %v8705_v63  ;;  %v8775_v62 = vld [vmem:[#allocation5 + $0x718] ss:$28 sps:$4 sm:$0xff]   ;;  %v8779_v63 = vld [vmem:[#allocation5 + $0x910] ss:$28 sps:$4 sm:$0xff]  }
 0x16b   :  { %2979 = vmatprep.subr.bf16.mxu0 %v8684_v0  ;;  %7952 = vmatprep.subr.bf16.mxu1 %v8709_v1  ;;  %v8746_v0 = vld [vmem:[#allocation5 + $0x3c8] ss:$28 sps:$4 sm:$0xff]  }
 0x16c   :  { %v8753_v1 = vld [vmem:[#allocation5 + $0x404] ss:$28 sps:$4 sm:$0xff]  }
 0x16e   :  { %2980 = vmatpush1.bf16.msra.mxu0 %v8682_v2  ;;  %7953 = vmatpush3.bf16.msra.mxu1 %v8710_v4  ;;  %v8780_v2 = vld [vmem:[#allocation5 + $0x750] ss:$28 sps:$4 sm:$0xff]   ;;  %v8751_v4 = vld [vmem:[#allocation5 + $0x400] ss:$28 sps:$4 sm:$0xff]  }
 0x16f   :  { %2981 = vmatprep.subr.bf16.mxu0 %v8687_v3  ;;  %7954 = vmatprep.subr.bf16.mxu1 %v8714_v6  ;;  %v8784_v3 = vld [vmem:[#allocation5 + $0x948] ss:$28 sps:$4 sm:$0xff]   ;;  %v8758_v6 = vld [vmem:[#allocation5 + $0x43c] ss:$28 sps:$4 sm:$0xff]  }
 0x172   :  { %2982 = vmatpush1.bf16.msra.mxu0 %v8685_v7  ;;  %7955 = vmatpush3.bf16.msra.mxu1 %v8715_v48  ;;  %v8785_v7 = vld [vmem:[#allocation5 + $0x788] ss:$28 sps:$4 sm:$0xff]   ;;  %v8763_v48 = vld [vmem:[#allocation5 + $0x474] ss:$28 sps:$4 sm:$0xff]  }
 0x173   :  { %2983 = vmatprep.subr.bf16.mxu0 %v8690_v8  ;;  %7956 = vmatprep.subr.bf16.mxu1 %v8719_v9  ;;  %v8789_v8 = vld [vmem:[#allocation5 + $0x980] ss:$28 sps:$4 sm:$0xff]  }
 0x174   :  { %v8790_v9 = vld [vmem:[#allocation5 + $0x7c0] ss:$28 sps:$4 sm:$0xff]  }
 0x176   :  { %2984 = vmatpush1.bf16.msra.mxu0 %v8688_v11  ;;  %7957 = vmatpush3.bf16.msra.mxu1 %v8720_v14  ;;  %v8794_v11 = vld [vmem:[#allocation5 + $0x9b8] ss:$28 sps:$4 sm:$0xff]   ;;  %v8768_v14 = vld [vmem:[#allocation5 + $0x4ac] ss:$28 sps:$4 sm:$0xff]  }
 0x177   :  { %2985 = vmatprep.subr.bf16.mxu0 %v8693_v12  ;;  %7958 = vmatprep.subr.bf16.mxu1 %v8724_v16  ;;  %v8761_v12 = vld [vmem:[#allocation5 + $0x470] ss:$28 sps:$4 sm:$0xff]  }
 0x178   :  { %v8799_v16 = vld [vmem:[#allocation5 + $0x9f0] ss:$28 sps:$4 sm:$0xff]  }
 0x17a   :  { %2986 = vmatpush1.bf16.msra.mxu0 %v8691_v17  ;;  %7959 = vmatpush3.bf16.msra.mxu1 %v8725_v18  ;;  %v8766_v17 = vld [vmem:[#allocation5 + $0x4a8] ss:$28 sps:$4 sm:$0xff]  }
 0x17b   :  { %2987 = vmatprep.subr.bf16.mxu0 %v8698_v20  ;;  %7960 = vmatprep.subr.bf16.mxu1 %v8729_v21  ;;  %v8773_v18 = vld [vmem:[#allocation5 + $0x4e4] ss:$28 sps:$4 sm:$0xff]   ;;  %v8800_v20 = vld [vmem:[#allocation5 + $0x830] ss:$28 sps:$4 sm:$0xff]  }
 0x17c   :  { %v8804_v21 = vld [vmem:[#allocation5 + $0xa28] ss:$28 sps:$4 sm:$0xff]  }
 0x17e   :  { %2988 = vmatpush1.bf16.msra.mxu0 %v8696_v22  ;;  %7961 = vmatpush3.bf16.msra.mxu1 %v8730_v24  ;;  %v8771_v22 = vld [vmem:[#allocation5 + $0x4e0] ss:$28 sps:$4 sm:$0xff]   ;;  %v8805_v24 = vld [vmem:[#allocation5 + $0x868] ss:$28 sps:$4 sm:$0xff]  }
 0x17f   :  { %2989 = vmatprep.subr.bf16.mxu0 %v8703_v23  ;;  %7968 = vmatprep.subr.bf16.mxu1 %v8734_v25  ;;  %v8778_v23 = vld [vmem:[#allocation5 + $0x51c] ss:$28 sps:$4 sm:$0xff]  }
 0x180   :  { %v8809_v25 = vld [vmem:[#allocation5 + $0xa60] ss:$28 sps:$4 sm:$0xff]  }
 0x181   :  { %3170 = vmatmul.mubr.bf16.vlgmr.msra.gmra.mrb[4].mxu1 %v9844_v5 }
 0x182   :  { %2990 = vmatpush1.bf16.msra.mxu0 %v8701_v13  ;;  %7969 = vmatpush3.bf16.msra.mxu1 %v8735_v28  ;;  %v8776_v13 = vld [vmem:[#allocation5 + $0x518] ss:$28 sps:$4 sm:$0xff]   ;;  %v8810_v28 = vld [vmem:[#allocation5 + $0x8a0] ss:$28 sps:$4 sm:$0xff]  }
 0x183   :  { %2991 = vmatprep.subr.bf16.mxu0 %v8708_v26  ;;  %7970 = vmatprep.subr.bf16.mxu1 %v8739_v29  ;;  %v8783_v26 = vld [vmem:[#allocation5 + $0x554] ss:$28 sps:$4 sm:$0xff]  }
 0x184   :  { %3209 = vmatprep.mubr.bf16.mxu1 %v9852_v30  ;;  %v8781_v29 = vld [vmem:[#allocation5 + $0x550] ss:$28 sps:$4 sm:$0xff]  }
 0x186   :  { %2992 = vmatpush1.bf16.msra.mxu0 %v8706_v31  ;;  %7971 = vmatpush3.bf16.msra.mxu1 %v8740_v32  ;;  %v8788_v31 = vld [vmem:[#allocation5 + $0x58c] ss:$28 sps:$4 sm:$0xff]   ;;  %v8814_v32 = vld [vmem:[#allocation5 + $0xa98] ss:$28 sps:$4 sm:$0xff]  }
 0x187   :  { %2993 = vmatprep.subr.bf16.mxu0 %v8713_v33  ;;  %7972 = vmatprep.subr.bf16.mxu1 %v8744_v34  ;;  %v9713_v33 = vmov 0.0   ;;  %v8786_v34 = vld [vmem:[#allocation5 + $0x588] ss:$28 sps:$4 sm:$0xff]  }
 0x18a   :  { %2994 = vmatpush1.bf16.msra.mxu0 %v8711_v35  ;;  %7973 = vmatpush3.bf16.msra.mxu1 %v8745_v36  ;;  %v8793_v35 = vld [vmem:[#allocation5 + $0x5c4] ss:$28 sps:$4 sm:$0xff]   ;;  %v8818_v36 = vld [vmem:[#allocation5 + $0xad0] ss:$28 sps:$4 sm:$0xff]  }
 0x18b   :  { %2995 = vmatprep.subr.bf16.mxu0 %v8718_v37  ;;  %7974 = vmatprep.subr.bf16.mxu1 %v8749_v38  ;;  %v8791_v37 = vld [vmem:[#allocation5 + $0x5c0] ss:$28 sps:$4 sm:$0xff]  }
 0x18c   :  { %v8798_v38 = vld [vmem:[#allocation5 + $0x5fc] ss:$28 sps:$4 sm:$0xff]  }
 0x18e   :  { %2996 = vmatpush1.bf16.msra.mxu0 %v8716_v39  ;;  %7975 = vmatpush3.bf16.msra.mxu1 %v8750_v40  ;;  %v8822_v39 = vld [vmem:[#allocation5 + $0xb08] ss:$28 sps:$4 sm:$0xff]   ;;  %v8796_v40 = vld [vmem:[#allocation5 + $0x5f8] ss:$28 sps:$4 sm:$0xff]  }
 0x18f   :  { %2997 = vmatprep.subr.bf16.mxu0 %v8723_v41  ;;  %7976 = vmatprep.subr.bf16.mxu1 %v8754_v42  ;;  %v8803_v41 = vld [vmem:[#allocation5 + $0x634] ss:$28 sps:$4 sm:$0xff]   ;;  %v8826_v42 = vld [vmem:[#allocation5 + $0xb40] ss:$28 sps:$4 sm:$0xff]  }
 0x192   :  { %2998 = vmatpush1.bf16.msra.mxu0 %v8721_v43  ;;  %7977 = vmatpush3.bf16.msra.mxu1 %v8755_v44  ;;  %v8801_v43 = vld [vmem:[#allocation5 + $0x630] ss:$28 sps:$4 sm:$0xff]  }
 0x193   :  { %2999 = vmatprep.subr.bf16.mxu0 %v8728_v45  ;;  %7978 = vmatprep.subr.bf16.mxu1 %v8759_v46  ;;  %v8808_v44 = vld [vmem:[#allocation5 + $0x66c] ss:$28 sps:$4 sm:$0xff]   ;;  %v8830_v45 = vld [vmem:[#allocation5 + $0xb78] ss:$28 sps:$4 sm:$0xff]  }
 0x194   :  { %v8806_v46 = vld [vmem:[#allocation5 + $0x668] ss:$28 sps:$4 sm:$0xff]  }
 0x196   :  { %3000 = vmatpush1.bf16.msra.mxu0 %v8726_v47  ;;  %7979 = vmatpush3.bf16.msra.mxu1 %v8760_v49  ;;  %v8813_v47 = vld [vmem:[#allocation5 + $0x6a4] ss:$28 sps:$4 sm:$0xff]   ;;  %v8834_v49 = vld [vmem:[#allocation5 + $0xbb0] ss:$28 sps:$4 sm:$0xff]  }
 0x197   :  { %3001 = vmatprep.subr.bf16.mxu0 %v8733_v50  ;;  %7980 = vmatprep.subr.bf16.mxu1 %v8764_v51  ;;  %v8811_v50 = vld [vmem:[#allocation5 + $0x6a0] ss:$28 sps:$4 sm:$0xff]  }
 0x198   :  { %v8817_v51 = vld [vmem:[#allocation5 + $0x6dc] ss:$28 sps:$4 sm:$0xff]  }
 0x19a   :  { %3002 = vmatpush1.bf16.msra.mxu0 %v8731_v52  ;;  %7981 = vmatpush3.bf16.msra.mxu1 %v8765_v54  ;;  %v8838_v52 = vld [vmem:[#allocation5 + $0xbe8] ss:$28 sps:$4 sm:$0xff]   ;;  %v8842_v54 = vld [vmem:[#allocation5 + $0xc20] ss:$28 sps:$4 sm:$0xff]  }
 0x19b   :  { %3003 = vmatprep.subr.bf16.mxu0 %v8738_v53  ;;  %7982 = vmatprep.subr.bf16.mxu1 %v8769_v55  ;;  %v8815_v53 = vld [vmem:[#allocation5 + $0x6d8] ss:$28 sps:$4 sm:$0xff]  }
 0x19c   :  { %v8821_v55 = vld [vmem:[#allocation5 + $0x714] ss:$28 sps:$4 sm:$0xff]  }
 0x19e   :  { %3004 = vmatpush1.bf16.msra.mxu0 %v8736_v56  ;;  %7983 = vmatpush3.bf16.msra.mxu1 %v8770_v58  ;;  %v8848_v56 = vld [vmem:[#allocation8 + $0x4] ss:$28 sps:$4 sm:$0xff]  }
 0x19f   :  { %3014 = vmatprep.subr.bf16.mxu0 %v8743_v57  ;;  %7990 = vmatprep.subr.bf16.mxu1 %v8774_v59  ;;  %v8819_v57 = vld [vmem:[#allocation5 + $0x710] ss:$28 sps:$4 sm:$0xff]   ;;  %v8846_v58 = vld [vmem:[#allocation8] ss:$28 sps:$4 sm:$0xff]  }
 0x1a0   :  { %v8825_v59 = vld [vmem:[#allocation5 + $0x74c] ss:$28 sps:$4 sm:$0xff]  }
 0x1a1   :  { %3006 = vmatmul.mubr.bf16.vlgmr.msra.gmra.mrb[4].mxu0 %v9844_v5  ;;  %3210 = vmatmul.mubr.bf16.vlgmr.msra.gmra.mrb[8].mxu1 %v9858_v10  ;;  %v8756_v5 = vld [vmem:[#allocation5 + $0x438] ss:$28 sps:$4 sm:$0xff]  }
 0x1a2   :  { %3015 = vmatpush1.bf16.msra.mxu0 %v8741_v60  ;;  %7991 = vmatpush3.bf16.msra.mxu1 %v8775_v62  ;;  %v8854_v60 = vld [vmem:[#allocation8 + $0x3c] ss:$28 sps:$4 sm:$0xff]  }
 0x1a3   :  { %3016 = vmatprep.subr.bf16.mxu0 %v8748_v61  ;;  %7992 = vmatprep.subr.bf16.mxu1 %v8779_v63  ;;  %v8823_v61 = vld [vmem:[#allocation5 + $0x748] ss:$28 sps:$4 sm:$0xff]   ;;  %v8852_v62 = vld [vmem:[#allocation8 + $0x38] ss:$28 sps:$4 sm:$0xff]  }
 0x1a4   :  { %3249 = vmatprep.mubr.bf16.mxu1 %v9864_v15  ;;  %3046 = vmatprep.mubr.bf16.mxu0 %v9852_v30  ;;  %v8795_v30 = vld [vmem:[#allocation5 + $0x7f8] ss:$28 sps:$4 sm:$0xff]   ;;  %v8829_v63 = vld [vmem:[#allocation5 + $0x784] ss:$28 sps:$4 sm:$0xff]  }
 0x1a6   :  { %3017 = vmatpush1.bf16.msra.mxu0 %v8746_v0  ;;  %7993 = vmatpush3.bf16.msra.mxu1 %v8780_v2  ;;  %v9898_v0 = vld [vmem:[#allocation2 + $0x18] ss:$0 sps:$4 sm:$0xff]  }
 0x1a7   :  { %3018 = vmatprep.subr.bf16.mxu0 %v8753_v1  ;;  %7994 = vmatprep.subr.bf16.mxu1 %v8784_v3  ;;  %v8860_v1 = vld [vmem:[#allocation8 + $0x74] ss:$28 sps:$4 sm:$0xff]  }
 0x1a8   :  { %v8827_v2 = vld [vmem:[#allocation5 + $0x780] ss:$28 sps:$4 sm:$0xff]   ;;  %v8858_v3 = vld [vmem:[#allocation8 + $0x70] ss:$28 sps:$4 sm:$0xff]  }
 0x1aa   :  { %3019 = vmatpush1.bf16.msra.mxu0 %v8751_v4  ;;  %7995 = vmatpush3.bf16.msra.mxu1 %v8785_v7  ;;  %v8833_v4 = vld [vmem:[#allocation5 + $0x7bc] ss:$28 sps:$4 sm:$0xff]   ;;  %v8864_v7 = vld [vmem:[#allocation8 + $0xa8] ss:$28 sps:$4 sm:$0xff]  }
 0x1ab   :  { %3020 = vmatprep.subr.bf16.mxu0 %v8758_v6  ;;  %7996 = vmatprep.subr.bf16.mxu1 %v8789_v8  ;;  %v8866_v6 = vld [vmem:[#allocation8 + $0xac] ss:$28 sps:$4 sm:$0xff]  }
 0x1ac   :  { %v8837_v8 = vld [vmem:[#allocation5 + $0x7f4] ss:$28 sps:$4 sm:$0xff]  }
 0x1ae   :  { %3021 = vmatpush1.bf16.msra.mxu0 %v8756_v5  ;;  %7997 = vmatpush3.bf16.msra.mxu1 %v8790_v9  ;;  %v8872_v5 = vld [vmem:[#allocation8 + $0xe4] ss:$28 sps:$4 sm:$0xff]  }
 0x1af   :  { %3022 = vmatprep.subr.bf16.mxu0 %v8763_v48  ;;  %7998 = vmatprep.subr.bf16.mxu1 %v8794_v11  ;;  %v8835_v48 = vld [vmem:[#allocation5 + $0x7f0] ss:$28 sps:$4 sm:$0xff]   ;;  %v8870_v9 = vld [vmem:[#allocation8 + $0xe0] ss:$28 sps:$4 sm:$0xff]  }
 0x1b0   :  { %v8841_v11 = vld [vmem:[#allocation5 + $0x82c] ss:$28 sps:$4 sm:$0xff]  }
 0x1b2   :  { %3023 = vmatpush1.bf16.msra.mxu0 %v8761_v12  ;;  %7999 = vmatpush3.bf16.msra.mxu1 %v8795_v30  ;;  %v8878_v12 = vld [vmem:[#allocation8 + $0x11c] ss:$28 sps:$4 sm:$0xff]  }
 0x1b3   :  { %3024 = vmatprep.subr.bf16.mxu0 %v8768_v14  ;;  %8000 = vmatprep.subr.bf16.mxu1 %v8799_v16  ;;  %v8876_v14 = vld [vmem:[#allocation8 + $0x118] ss:$28 sps:$4 sm:$0xff]  }
 0x1b4   :  { %v8845_v30 = vld [vmem:[#allocation5 + $0x864] ss:$28 sps:$4 sm:$0xff]   ;;  %v8884_v16 = vld [vmem:[#allocation8 + $0x154] ss:$28 sps:$4 sm:$0xff]  }
 0x1b6   :  { %3025 = vmatpush1.bf16.msra.mxu0 %v8766_v17  ;;  %8001 = vmatpush3.bf16.msra.mxu1 %v8800_v20  ;;  %v8843_v17 = vld [vmem:[#allocation5 + $0x860] ss:$28 sps:$4 sm:$0xff]  }
 0x1b7   :  { %3026 = vmatprep.subr.bf16.mxu0 %v8773_v18  ;;  %8002 = vmatprep.subr.bf16.mxu1 %v8804_v21  ;;  %v8882_v18 = vld [vmem:[#allocation8 + $0x150] ss:$28 sps:$4 sm:$0xff]  }
 0x1b8   :  { %v8851_v20 = vld [vmem:[#allocation5 + $0x89c] ss:$28 sps:$4 sm:$0xff]   ;;  %v8890_v21 = vld [vmem:[#allocation8 + $0x18c] ss:$28 sps:$4 sm:$0xff]  }
 0x1ba   :  { %3027 = vmatpush1.bf16.msra.mxu0 %v8771_v22  ;;  %8003 = vmatpush3.bf16.msra.mxu1 %v8805_v24  ;;  %v8849_v22 = vld [vmem:[#allocation5 + $0x898] ss:$28 sps:$4 sm:$0xff]  }
 0x1bb   :  { %3028 = vmatprep.subr.bf16.mxu0 %v8778_v23  ;;  %8004 = vmatprep.subr.bf16.mxu1 %v8809_v25  ;;  %v8888_v23 = vld [vmem:[#allocation8 + $0x188] ss:$28 sps:$4 sm:$0xff]  }
 0x1bc   :  { %v8857_v24 = vld [vmem:[#allocation5 + $0x8d4] ss:$28 sps:$4 sm:$0xff]   ;;  %v8896_v25 = vld [vmem:[#allocation8 + $0x1c4] ss:$28 sps:$4 sm:$0xff]  }
 0x1be   :  { %3029 = vmatpush1.bf16.msra.mxu0 %v8776_v13  ;;  %8005 = vmatpush3.bf16.msra.mxu1 %v8810_v28  ;;  %v8855_v13 = vld [vmem:[#allocation5 + $0x8d0] ss:$28 sps:$4 sm:$0xff]  }
 0x1bf   :  { %3030 = vmatprep.subr.bf16.mxu0 %v8783_v26  ;;  %8171 = vmatprep.subr.bf16.mxu1 %v9713_v33  ;;  %v8894_v26 = vld [vmem:[#allocation8 + $0x1c0] ss:$28 sps:$4 sm:$0xff]  }
 0x1c0   :  { %v8863_v28 = vld [vmem:[#allocation5 + $0x90c] ss:$28 sps:$4 sm:$0xff]  }
 0x1c1   :  { %3250 = vmatmul.mubr.bf16.vlgmr.msra.gmra.mrb[12].mxu1 %v9872_v19 }
 0x1c2   :  { %3031 = vmatpush1.bf16.msra.mxu0 %v8781_v29  ;;  %8172 = vmatpush3.bf16.msra.mxu1 %v8814_v32  ;;  %v8902_v29 = vld [vmem:[#allocation8 + $0x1fc] ss:$28 sps:$4 sm:$0xff]  }
 0x1c3   :  { %3032 = vmatprep.subr.bf16.mxu0 %v8788_v31  ;;  %8173 = vmatprep.subr.bf16.mxu1 %v9713_v33  ;;  %v8861_v31 = vld [vmem:[#allocation5 + $0x908] ss:$28 sps:$4 sm:$0xff]  }
 0x1c4   :  { %8187 = vmatprep.mubr.msk.bf16.mxu1 %vm9714_vm0, %v9713_v33  ;;  %v8869_v32 = vld [vmem:[#allocation5 + $0x944] ss:$28 sps:$4 sm:$0xff]  }
 0x1c6   :  { %3033 = vmatpush1.bf16.msra.mxu0 %v8786_v34  ;;  %8174 = vmatpush3.bf16.msra.mxu1 %v8818_v36  ;;  %v8900_v34 = vld [vmem:[#allocation8 + $0x1f8] ss:$28 sps:$4 sm:$0xff]  }
 0x1c7   :  { %3034 = vmatprep.subr.bf16.mxu0 %v8793_v35  ;;  %8175 = vmatprep.subr.bf16.mxu1 %v9713_v33  ;;  %v8908_v35 = vld [vmem:[#allocation8 + $0x234] ss:$28 sps:$4 sm:$0xff]  }
 0x1c8   :  { %v8867_v36 = vld [vmem:[#allocation5 + $0x940] ss:$28 sps:$4 sm:$0xff]  }
 0x1ca   :  { %3035 = vmatpush1.bf16.msra.mxu0 %v8791_v37  ;;  %8176 = vmatpush3.bf16.msra.mxu1 %v8822_v39  ;;  %v8875_v37 = vld [vmem:[#allocation5 + $0x97c] ss:$28 sps:$4 sm:$0xff]   ;;  %v8914_v39 = vld [vmem:[#allocation8 + $0x26c] ss:$28 sps:$4 sm:$0xff]  }
 0x1cb   :  { %3036 = vmatprep.subr.bf16.mxu0 %v8798_v38  ;;  %8177 = vmatprep.subr.bf16.mxu1 %v9713_v33  ;;  %v8906_v38 = vld [vmem:[#allocation8 + $0x230] ss:$28 sps:$4 sm:$0xff]  }
 0x1ce   :  { %3037 = vmatpush1.bf16.msra.mxu0 %v8796_v40  ;;  %8178 = vmatpush3.bf16.msra.mxu1 %v8826_v42  ;;  %v8873_v40 = vld [vmem:[#allocation5 + $0x978] ss:$28 sps:$4 sm:$0xff]   ;;  %v8912_v42 = vld [vmem:[#allocation8 + $0x268] ss:$28 sps:$4 sm:$0xff]  }
 0x1cf   :  { %3038 = vmatprep.subr.bf16.mxu0 %v8803_v41  ;;  %8179 = vmatprep.subr.bf16.mxu1 %v9713_v33  ;;  %v8881_v41 = vld [vmem:[#allocation5 + $0x9b4] ss:$28 sps:$4 sm:$0xff]  }
 0x1d2   :  { %3039 = vmatpush1.bf16.msra.mxu0 %v8801_v43  ;;  %8180 = vmatpush3.bf16.msra.mxu1 %v8830_v45  ;;  %v8920_v43 = vld [vmem:[#allocation8 + $0x2a4] ss:$28 sps:$4 sm:$0xff]  }
 0x1d3   :  { %3040 = vmatprep.subr.bf16.mxu0 %v8808_v44  ;;  %8181 = vmatprep.subr.bf16.mxu1 %v9713_v33  ;;  %v8879_v44 = vld [vmem:[#allocation5 + $0x9b0] ss:$28 sps:$4 sm:$0xff]  }
 0x1d4   :  { %v8887_v45 = vld [vmem:[#allocation5 + $0x9ec] ss:$28 sps:$4 sm:$0xff]  }
 0x1d6   :  { %3041 = vmatpush1.bf16.msra.mxu0 %v8806_v46  ;;  %8182 = vmatpush3.bf16.msra.mxu1 %v8834_v49  ;;  %v8918_v46 = vld [vmem:[#allocation8 + $0x2a0] ss:$28 sps:$4 sm:$0xff]  }
 0x1d7   :  { %3042 = vmatprep.subr.bf16.mxu0 %v8813_v47  ;;  %8183 = vmatprep.subr.bf16.mxu1 %v9713_v33  ;;  %v8926_v47 = vld [vmem:[#allocation8 + $0x2dc] ss:$28 sps:$4 sm:$0xff]  }
 0x1d8   :  { %v8885_v49 = vld [vmem:[#allocation5 + $0x9e8] ss:$28 sps:$4 sm:$0xff]  }
 0x1da   :  { %3043 = vmatpush1.bf16.msra.mxu0 %v8811_v50  ;;  %8184 = vmatpush3.bf16.msra.mxu1 %v8838_v52  ;;  %v8893_v50 = vld [vmem:[#allocation5 + $0xa24] ss:$28 sps:$4 sm:$0xff]   ;;  %v8932_v52 = vld [vmem:[#allocation8 + $0x314] ss:$28 sps:$4 sm:$0xff]  }
 0x1db   :  { %3044 = vmatprep.subr.bf16.mxu0 %v8817_v51  ;;  %8185 = vmatprep.subr.bf16.mxu1 %v9713_v33  ;;  %v8924_v51 = vld [vmem:[#allocation8 + $0x2d8] ss:$28 sps:$4 sm:$0xff]  }
 0x1de   :  { %3045 = vmatpush1.bf16.msra.mxu0 %v8815_v53  ;;  %8186 = vmatpush3.bf16.msra.mxu1 %v8842_v54  ;;  %v8891_v53 = vld [vmem:[#allocation5 + $0xa20] ss:$28 sps:$4 sm:$0xff]  }
 0x1df   :  { %3055 = vmatprep.subr.bf16.mxu0 %v8821_v55  ;;  %5805 = vmatprep.subr.bf16.mxu1 %v8848_v56  ;;  %v8899_v54 = vld [vmem:[#allocation5 + $0xa5c] ss:$28 sps:$4 sm:$0xff]   ;;  %v8938_v56 = vld [vmem:[#allocation8 + $0x34c] ss:$28 sps:$4 sm:$0xff]  }
 0x1e0   :  { %v8930_v55 = vld [vmem:[#allocation8 + $0x310] ss:$28 sps:$4 sm:$0xff]  }
 0x1e1   :  { %3047 = vmatmul.mubr.bf16.vlgmr.msra.gmra.mrb[4].mxu0 %v9858_v10  ;;  %8188 = vmatmul.mubr.bf16.vlgmr.msra.gmra.mrb[16].mxu1 %v9898_v0  ;;  %v8831_v10 = vld [vmem:[#allocation5 + $0x7b8] ss:$28 sps:$4 sm:$0xff]  }
 0x1e2   :  { %3056 = vmatpush1.bf16.msra.mxu0 %v8819_v57  ;;  %5806 = vmatpush1.bf16.msra.mxu1 %v8846_v58  ;;  %v8897_v57 = vld [vmem:[#allocation5 + $0xa58] ss:$28 sps:$4 sm:$0xff]  }
 0x1e3   :  { %3057 = vmatprep.subr.bf16.mxu0 %v8825_v59  ;;  %5807 = vmatprep.subr.bf16.mxu1 %v8854_v60  ;;  %v8905_v58 = vld [vmem:[#allocation5 + $0xa94] ss:$28 sps:$4 sm:$0xff]   ;;  %v8944_v60 = vld [vmem:[#allocation8 + $0x384] ss:$28 sps:$4 sm:$0xff]  }
 0x1e4   :  { %3087 = vmatprep.mubr.bf16.mxu0 %v9864_v15  ;;  %v8839_v15 = vld [vmem:[#allocation5 + $0x828] ss:$28 sps:$4 sm:$0xff]   ;;  %v8936_v59 = vld [vmem:[#allocation8 + $0x348] ss:$28 sps:$4 sm:$0xff]  }
 0x1e6   :  { %3058 = vmatpush1.bf16.msra.mxu0 %v8823_v61  ;;  %5808 = vmatpush1.bf16.msra.mxu1 %v8852_v62  ;;  %v8903_v61 = vld [vmem:[#allocation5 + $0xa90] ss:$28 sps:$4 sm:$0xff]  }
 0x1e7   :  { %3059 = vmatprep.subr.bf16.mxu0 %v8829_v63  ;;  %5809 = vmatprep.subr.bf16.mxu1 %v8860_v1  ;;  %v8911_v62 = vld [vmem:[#allocation5 + $0xacc] ss:$28 sps:$4 sm:$0xff]   ;;  %v8917_v1 = vld [vmem:[#allocation5 + $0xb04] ss:$28 sps:$4 sm:$0xff]  }
 0x1e8   :  { %v8909_v63 = vld [vmem:[#allocation5 + $0xac8] ss:$28 sps:$4 sm:$0xff]  }
 0x1ea   :  { %3060 = vmatpush1.bf16.msra.mxu0 %v8827_v2  ;;  %5810 = vmatpush1.bf16.msra.mxu1 %v8858_v3  ;;  %v569_v2 = vlaneseq  ;;  %v8915_v3 = vld [vmem:[#allocation5 + $0xb00] ss:$28 sps:$4 sm:$0xff]  }
 0x1eb   :  { %3061 = vmatprep.subr.bf16.mxu0 %v8833_v4  ;;  %5811 = vmatprep.subr.bf16.mxu1 %v8866_v6  ;;  %v8923_v4 = vld [vmem:[#allocation5 + $0xb3c] ss:$28 sps:$4 sm:$0xff]  }
 0x1ec   :  { %v9904_v6 = vshrl.u32 %v569_v2, 7  ;;  %v8992_v2 = vld [vmem:[#allocation8 + $0x544] ss:$28 sps:$4 sm:$0xff]  }
 0x1ee   :  { %3062 = vmatpush1.bf16.msra.mxu0 %v8831_v10  ;;  %5812 = vmatpush1.bf16.msra.mxu1 %v8864_v7  ;;  %v8921_v10 = vld [vmem:[#allocation5 + $0xb38] ss:$28 sps:$4 sm:$0xff]  }
 0x1ef   :  { %3063 = vmatprep.subr.bf16.mxu0 %v8837_v8  ;;  %5813 = vmatprep.subr.bf16.mxu1 %v8872_v5  ;;  %v8929_v7 = vld [vmem:[#allocation5 + $0xb74] ss:$28 sps:$4 sm:$0xff]   ;;  %v9906_v5 = vld [vmem:[#allocation7] sm:$0xff] }
 0x1f0   :  { %v8927_v8 = vld [vmem:[#allocation5 + $0xb70] ss:$28 sps:$4 sm:$0xff]  }
 0x1f2   :  { %3064 = vmatpush1.bf16.msra.mxu0 %v8835_v48  ;;  %5814 = vmatpush1.bf16.msra.mxu1 %v8870_v9  ;;  %v575_v48 = vsub.s32 1, %v9904_v6  ;;  %v583_v9 = vsub.s32 3, %v9904_v6 }
 0x1f3   :  { %3065 = vmatprep.subr.bf16.mxu0 %v8841_v11  ;;  %5815 = vmatprep.subr.bf16.mxu1 %v8878_v12  ;;  %v8935_v11 = vld [vmem:[#allocation5 + $0xbac] ss:$28 sps:$4 sm:$0xff]  }
 0x1f6   :  { %3066 = vmatpush1.bf16.msra.mxu0 %v8839_v15  ;;  %5816 = vmatpush1.bf16.msra.mxu1 %v8876_v14  ;;  %v576_v15 = vrot.slane %v9906_v5, %v575_v48  ;;  %v584_v14 = vrot.slane %v9906_v5, %v583_v9 }
 0x1f7   :  { %3067 = vmatprep.subr.bf16.mxu0 %v8845_v30  ;;  %5817 = vmatprep.subr.bf16.mxu1 %v8884_v16  ;;  %v8933_v30 = vld [vmem:[#allocation5 + $0xba8] ss:$28 sps:$4 sm:$0xff]  }
 0x1f8   :  { %v8941_v16 = vld [vmem:[#allocation5 + $0xbe4] ss:$28 sps:$4 sm:$0xff]  }
 0x1fa   :  { %3068 = vmatpush1.bf16.msra.mxu0 %v8843_v17  ;;  %5818 = vmatpush1.bf16.msra.mxu1 %v8882_v18 }
 0x1fb   :  { %3069 = vmatprep.subr.bf16.mxu0 %v8851_v20  ;;  %5819 = vmatprep.subr.bf16.mxu1 %v8890_v21  ;;  %v8939_v20 = vld [vmem:[#allocation5 + $0xbe0] ss:$28 sps:$4 sm:$0xff]  }
 0x1fe   :  { %3070 = vmatpush1.bf16.msra.mxu0 %v8849_v22  ;;  %5820 = vmatpush1.bf16.msra.mxu1 %v8888_v23 }
 0x1ff   :  { %3071 = vmatprep.subr.bf16.mxu0 %v8857_v24  ;;  %5821 = vmatprep.subr.bf16.mxu1 %v8896_v25 }
 0x202   :  { %3072 = vmatpush1.bf16.msra.mxu0 %v8855_v13  ;;  %5822 = vmatpush1.bf16.msra.mxu1 %v8894_v26 }
 0x203   :  { %3073 = vmatprep.subr.bf16.mxu0 %v8863_v28  ;;  %5823 = vmatprep.subr.bf16.mxu1 %v8902_v29  ;;  %v8942_v28 = vld [vmem:[#allocation8 + $0x380] ss:$28 sps:$4 sm:$0xff]   ;;  %v8947_v29 = vld [vmem:[#allocation5 + $0xc1c] ss:$28 sps:$4 sm:$0xff]  }
 0x206   :  { %3074 = vmatpush1.bf16.msra.mxu0 %v8861_v31  ;;  %5824 = vmatpush1.bf16.msra.mxu1 %v8900_v34  ;;  %v8950_v34 = vld [vmem:[#allocation8 + $0x3bc] ss:$28 sps:$4 sm:$0xff]  }
 0x207   :  { %3075 = vmatprep.subr.bf16.mxu0 %v8869_v32  ;;  %5825 = vmatprep.subr.bf16.mxu1 %v8908_v35 }
 0x20a   :  { %3076 = vmatpush1.bf16.msra.mxu0 %v8867_v36  ;;  %5826 = vmatpush1.bf16.msra.mxu1 %v8906_v38  ;;  %v8945_v36 = vld [vmem:[#allocation5 + $0xc18] ss:$28 sps:$4 sm:$0xff]  }
 0x20b   :  { %3077 = vmatprep.subr.bf16.mxu0 %v8875_v37  ;;  %5827 = vmatprep.subr.bf16.mxu1 %v8914_v39  ;;  %v8948_v39 = vld [vmem:[#allocation8 + $0x3b8] ss:$28 sps:$4 sm:$0xff]  }
 0x20e   :  { %3078 = vmatpush1.bf16.msra.mxu0 %v8873_v40  ;;  %5828 = vmatpush1.bf16.msra.mxu1 %v8912_v42  ;;  %v8953_v40 = vld [vmem:[#allocation8 + $0xc] ss:$28 sps:$4 sm:$0xff]  }
 0x20f   :  { %3079 = vmatprep.subr.bf16.mxu0 %v8881_v41  ;;  %5829 = vmatprep.subr.bf16.mxu1 %v8920_v43  ;;  %v8956_v41 = vld [vmem:[#allocation8 + $0x3f4] ss:$28 sps:$4 sm:$0xff]   ;;  %v8951_v42 = vld [vmem:[#allocation8 + $0x8] ss:$28 sps:$4 sm:$0xff]  }
 0x210   :  { %v8959_v43 = vld [vmem:[#allocation8 + $0x44] ss:$28 sps:$4 sm:$0xff]  }
 0x212   :  { %3080 = vmatpush1.bf16.msra.mxu0 %v8879_v44  ;;  %5830 = vmatpush1.bf16.msra.mxu1 %v8918_v46  ;;  %v8954_v44 = vld [vmem:[#allocation8 + $0x3f0] ss:$28 sps:$4 sm:$0xff]   ;;  %v8957_v46 = vld [vmem:[#allocation8 + $0x40] ss:$28 sps:$4 sm:$0xff]  }
 0x213   :  { %3081 = vmatprep.subr.bf16.mxu0 %v8887_v45  ;;  %5831 = vmatprep.subr.bf16.mxu1 %v8926_v47  ;;  %v8962_v45 = vld [vmem:[#allocation8 + $0x42c] ss:$28 sps:$4 sm:$0xff]  }
 0x214   :  { %v8960_v47 = vld [vmem:[#allocation8 + $0x428] ss:$28 sps:$4 sm:$0xff]  }
 0x216   :  { %3082 = vmatpush1.bf16.msra.mxu0 %v8885_v49  ;;  %5832 = vmatpush1.bf16.msra.mxu1 %v8924_v51  ;;  %v8965_v49 = vld [vmem:[#allocation8 + $0x7c] ss:$28 sps:$4 sm:$0xff]  }
 0x217   :  { %3083 = vmatprep.subr.bf16.mxu0 %v8893_v50  ;;  %5833 = vmatprep.subr.bf16.mxu1 %v8932_v52  ;;  %v8968_v50 = vld [vmem:[#allocation8 + $0x464] ss:$28 sps:$4 sm:$0xff]   ;;  %v8963_v51 = vld [vmem:[#allocation8 + $0x78] ss:$28 sps:$4 sm:$0xff]  }
 0x218   :  { %v8966_v52 = vld [vmem:[#allocation8 + $0x460] ss:$28 sps:$4 sm:$0xff]  }
 0x21a   :  { %3084 = vmatpush1.bf16.msra.mxu0 %v8891_v53  ;;  %5834 = vmatpush1.bf16.msra.mxu1 %v8930_v55  ;;  %v8971_v53 = vld [vmem:[#allocation8 + $0xb4] ss:$28 sps:$4 sm:$0xff]  }
 0x21b   :  { %3085 = vmatprep.subr.bf16.mxu0 %v8899_v54  ;;  %5835 = vmatprep.subr.bf16.mxu1 %v8938_v56  ;;  %v8974_v54 = vld [vmem:[#allocation8 + $0x49c] ss:$28 sps:$4 sm:$0xff]   ;;  %v8977_v56 = vld [vmem:[#allocation8 + $0xec] ss:$28 sps:$4 sm:$0xff]  }
 0x21c   :  { %v8972_v55 = vld [vmem:[#allocation8 + $0x498] ss:$28 sps:$4 sm:$0xff]  }
 0x21e   :  { %3086 = vmatpush1.bf16.msra.mxu0 %v8897_v57  ;;  %5836 = vmatpush1.bf16.msra.mxu1 %v8936_v59  ;;  %v8980_v57 = vld [vmem:[#allocation8 + $0x4d4] ss:$28 sps:$4 sm:$0xff]  }
 0x21f   :  { %3096 = vmatprep.subr.bf16.mxu0 %v8905_v58  ;;  %5846 = vmatprep.subr.bf16.mxu1 %v8944_v60  ;;  %v8975_v58 = vld [vmem:[#allocation8 + $0xe8] ss:$28 sps:$4 sm:$0xff]   ;;  %v8978_v59 = vld [vmem:[#allocation8 + $0x4d0] ss:$28 sps:$4 sm:$0xff]  }
 0x220   :  { %v8983_v60 = vld [vmem:[#allocation8 + $0x124] ss:$28 sps:$4 sm:$0xff]  }
 0x221   :  { %3088 = vmatmul.mubr.bf16.vlgmr.msra.gmra.mrb[4].mxu0 %v9872_v19  ;;  %v571_v19 = vsub.s32 0, %v9904_v6 }
 0x222   :  { %3097 = vmatpush1.bf16.msra.mxu0 %v8903_v61  ;;  %3128 = vmatprep.mubr.bf16.mxu0 %v9712_v27  ;;  %v8986_v61 = vld [vmem:[#allocation8 + $0x50c] ss:$28 sps:$4 sm:$0xff]  }
 0x223   :  { %3098 = vmatprep.subr.bf16.mxu0 %v8911_v62  ;;  %v572_v12 = vrot.slane %v9906_v5, %v571_v19  ;;  %v8981_v62 = vld [vmem:[#allocation8 + $0x120] ss:$28 sps:$4 sm:$0xff]  }
 0x226   :  { %3099 = vmatpush1.bf16.msra.mxu0 %v8909_v63  ;;  %v8984_v63 = vld [vmem:[#allocation8 + $0x508] ss:$28 sps:$4 sm:$0xff]  }
 0x227   :  { %3100 = vmatprep.subr.bf16.mxu0 %v8917_v1  ;;  %v8989_v1 = vld [vmem:[#allocation8 + $0x15c] ss:$28 sps:$4 sm:$0xff]  }
 0x22a   :  { %3101 = vmatpush1.bf16.msra.mxu0 %v8915_v3 }
 0x22b   :  { %3102 = vmatprep.subr.bf16.mxu0 %v8923_v4 }
 0x22e   :  { %3103 = vmatpush1.bf16.msra.mxu0 %v8921_v10  ;;  %v8987_v10 = vld [vmem:[#allocation8 + $0x158] ss:$28 sps:$4 sm:$0xff]  }
 0x22f   :  { %3104 = vmatprep.subr.bf16.mxu0 %v8929_v7  ;;  %v8990_v7 = vld [vmem:[#allocation8 + $0x540] ss:$28 sps:$4 sm:$0xff]  }
 0x232   :  { %3105 = vmatpush1.bf16.msra.mxu0 %v8927_v8 }
 0x233   :  { %3106 = vmatprep.subr.bf16.mxu0 %v8935_v11 }
 0x234   :  { %v2802_v17 = vpop.f32.mrb[0].mxu0  ;;  %v9920_v18 = vpop.f32.mrb[0].mxu1 }
 0x235   :  { %v8231_v21 = vadd.f32 %v2802_v17, %v572_v12  ;;  %v2804_v22 = vpop.f32.mrb[1].mxu0  ;;  %v2968_v23 = vpop.f32.mrb[1].mxu1  ;;  %v8995_v12 = vld [vmem:[#allocation8 + $0x194] ss:$28 sps:$4 sm:$0xff]   ;;  %v9001_v17 = vld [vmem:[#allocation8 + $0x1cc] ss:$28 sps:$4 sm:$0xff]  }
 0x236   :  { %v8232_v24 = vadd.f32 %v2804_v22, %v576_v15  ;;  %v8234_v25 = vadd.f32 %v2968_v23, %v584_v14  ;;  %v2806_v13 = vpop.f32.mrb[2].mxu0  ;;  %v2970_v26 = vpop.f32.mrb[2].mxu1  ;;  %3107 = vmatpush1.bf16.msra.mxu0 %v8933_v30  ;;  %v8998_v15 = vld [vmem:[#allocation8 + $0x57c] ss:$28 sps:$4 sm:$0xff]   ;;  %v8993_v30 = vld [vmem:[#allocation8 + $0x190] ss:$28 sps:$4 sm:$0xff]  }
 0x237   :  { %v2807_v31 = vpop.f32.mrb[3].mxu0  ;;  %v2971_v32 = vpop.f32.mrb[3].mxu1  ;;  %3108 = vmatprep.subr.bf16.mxu0 %v8941_v16  ;;  %v9924_v37 = vpack.c.bf16 %v8231_v21, %v8231_v21  ;;  %v8996_v16 = vld [vmem:[#allocation8 + $0x578] ss:$28 sps:$4 sm:$0xff]   ;;  %v8999_v21 = vld [vmem:[#allocation8 + $0x1c8] ss:$28 sps:$4 sm:$0xff]  }
 0x238   :  { %v9922_v35 = vpack.c.bf16 %v8232_v24, %v8232_v24  ;;  %v9926_v38 = vpack.c.bf16 %v8234_v25, %v8234_v25  ;;  %v9002_v22 = vld [vmem:[#allocation8 + $0x5b0] ss:$28 sps:$4 sm:$0xff]   ;;  %v9007_v23 = vld [vmem:[#allocation8 + $0x204] ss:$28 sps:$4 sm:$0xff]   ;;  %v9013_v26 = vld [vmem:[#allocation8 + $0x23c] ss:$28 sps:$4 sm:$0xff]  }
 0x239   :  { %v9010_v24 = vld [vmem:[#allocation8 + $0x5ec] ss:$28 sps:$4 sm:$0xff]   ;;  %v9005_v25 = vld [vmem:[#allocation8 + $0x200] ss:$28 sps:$4 sm:$0xff]   ;;  %v9019_v32 = vld [vmem:[#allocation8 + $0x274] ss:$28 sps:$4 sm:$0xff]  }
 0x23a   :  { %3109 = vmatpush1.bf16.msra.mxu0 %v8939_v20  ;;  %5837 = vmatprep.mubr.bf16.mxu1 %v9922_v35  ;;  %v9004_v20 = vld [vmem:[#allocation8 + $0x5b4] ss:$28 sps:$4 sm:$0xff]   ;;  %v9008_v13 = vld [vmem:[#allocation8 + $0x5e8] ss:$28 sps:$4 sm:$0xff]   ;;  %v9014_v31 = vld [vmem:[#allocation8 + $0x620] ss:$28 sps:$4 sm:$0xff]  }
 0x23b   :  { %5838 = vmatmul.mubr.bf16.vlgmr.msra.gmra.mrb[20].mxu1 %v9924_v37  ;;  %3110 = vmatprep.subr.bf16.mxu0 %v8947_v29  ;;  %v9011_v29 = vld [vmem:[#allocation8 + $0x238] ss:$28 sps:$4 sm:$0xff]  }
 0x23c   :  { %5847 = vmatpush1.bf16.msra.mxu1 %v8942_v28  ;;  %5878 = vmatprep.mubr.bf16.mxu1 %v9926_v38  ;;  %v9016_v28 = vld [vmem:[#allocation8 + $0x624] ss:$28 sps:$4 sm:$0xff]  }
 0x23d   :  { %5848 = vmatprep.subr.bf16.mxu1 %v8950_v34  ;;  %v9022_v34 = vld [vmem:[#allocation8 + $0x65c] ss:$28 sps:$4 sm:$0xff]  }
 0x23e   :  { %3111 = vmatpush1.bf16.msra.mxu0 %v8945_v36  ;;  %v9017_v36 = vld [vmem:[#allocation8 + $0x270] ss:$28 sps:$4 sm:$0xff]  }
 0x23f   :  { %5969 = vmatprep.subr.bf16.mxu0 %v8953_v40  ;;  %v9025_v40 = vld [vmem:[#allocation8 + $0x2ac] ss:$28 sps:$4 sm:$0xff]  }
 0x240   :  { %5849 = vmatpush1.bf16.msra.mxu1 %v8948_v39  ;;  %v9020_v39 = vld [vmem:[#allocation8 + $0x658] ss:$28 sps:$4 sm:$0xff]  }
 0x241   :  { %3129 = vmatmul.mubr.bf16.vlgmr.msra.gmra.mrb[4].mxu0 %v9898_v0  ;;  %5850 = vmatprep.subr.bf16.mxu1 %v8956_v41  ;;  %v8969_v0 = vld [vmem:[#allocation8 + $0xb0] ss:$28 sps:$4 sm:$0xff]  }
 0x242   :  { %5970 = vmatpush1.bf16.msra.mxu0 %v8951_v42  ;;  %6001 = vmatprep.mubr.bf16.mxu0 %v9922_v35  ;;  %v9028_v41 = vld [vmem:[#allocation8 + $0x694] ss:$28 sps:$4 sm:$0xff]   ;;  %v579_v42 = vsub.s32 2, %v9904_v6 }
 0x243   :  { %5971 = vmatprep.subr.bf16.mxu0 %v8959_v43  ;;  %v595_v43 = vsub.s32 6, %v9904_v6 }
 0x244   :  { %5851 = vmatpush1.bf16.msra.mxu1 %v8954_v44  ;;  %v9023_v44 = vld [vmem:[#allocation8 + $0x2a8] ss:$28 sps:$4 sm:$0xff]  }
 0x245   :  { %5852 = vmatprep.subr.bf16.mxu1 %v8962_v45  ;;  %v9026_v45 = vld [vmem:[#allocation8 + $0x690] ss:$28 sps:$4 sm:$0xff]  }
 0x246   :  { %5972 = vmatpush1.bf16.msra.mxu0 %v8957_v46  ;;  %v9031_v46 = vld [vmem:[#allocation8 + $0x2e4] ss:$28 sps:$4 sm:$0xff]  }
 0x247   :  { %5973 = vmatprep.subr.bf16.mxu0 %v8965_v49  ;;  %v596_v49 = vrot.slane %v9906_v5, %v595_v43 }
 0x248   :  { %5853 = vmatpush1.bf16.msra.mxu1 %v8960_v47  ;;  %v9034_v47 = vld [vmem:[#allocation8 + $0x6cc] ss:$28 sps:$4 sm:$0xff]  }
 0x249   :  { %5854 = vmatprep.subr.bf16.mxu1 %v8968_v50  ;;  %v580_v50 = vrot.slane %v9906_v5, %v579_v42 }
 0x24a   :  { %5974 = vmatpush1.bf16.msra.mxu0 %v8963_v51  ;;  %v9029_v51 = vld [vmem:[#allocation8 + $0x2e0] ss:$28 sps:$4 sm:$0xff]  }
 0x24b   :  { %5975 = vmatprep.subr.bf16.mxu0 %v8971_v53  ;;  %v9037_v53 = vld [vmem:[#allocation8 + $0x31c] ss:$28 sps:$4 sm:$0xff]  }
 0x24c   :  { %5855 = vmatpush1.bf16.msra.mxu1 %v8966_v52  ;;  %v9032_v52 = vld [vmem:[#allocation8 + $0x6c8] ss:$28 sps:$4 sm:$0xff]  }
 0x24d   :  { %5856 = vmatprep.subr.bf16.mxu1 %v8974_v54  ;;  %v9091_v54 = vld [vmem:[#allocation8 + $0x704] ss:$28 sps:$4 sm:$0xff]  }
 0x24e   :  { %5976 = vmatpush1.bf16.msra.mxu0 %v8969_v0 }
 0x24f   :  { %5977 = vmatprep.subr.bf16.mxu0 %v8977_v56  ;;  %v8233_v56 = vadd.f32 %v9920_v18, %v580_v50  ;;  %v9095_v18 = vld [vmem:[#allocation8 + $0x738] ss:$28 sps:$4 sm:$0xff]  }
 0x250   :  { %5857 = vmatpush1.bf16.msra.mxu1 %v8972_v55 }
 0x251   :  { %5858 = vmatprep.subr.bf16.mxu1 %v8980_v57 }
 0x252   :  { %5978 = vmatpush1.bf16.msra.mxu0 %v8975_v58  ;;  %v9035_v58 = vld [vmem:[#allocation8 + $0x318] ss:$28 sps:$4 sm:$0xff]  }
 0x253   :  { %5979 = vmatprep.subr.bf16.mxu0 %v8983_v60 }
 0x254   :  { %5859 = vmatpush1.bf16.msra.mxu1 %v8978_v59  ;;  %v7962_v3 = vpop.f32.mrb[4].mxu1  ;;  %v9040_v59 = vld [vmem:[#allocation8 + $0x354] ss:$28 sps:$4 sm:$0xff]  }
 0x255   :  { %5860 = vmatprep.subr.bf16.mxu1 %v8986_v61  ;;  %v7963_v4 = vpop.f32.mrb[5].mxu1 }
 0x256   :  { %5980 = vmatpush1.bf16.msra.mxu0 %v8981_v62  ;;  %v9933_v8 = vadd.f32 %v7963_v4, %v7962_v3  ;;  %v7965_v11 = vpop.f32.mrb[6].mxu1  ;;  %v9089_v62 = vld [vmem:[#allocation8 + $0x700] ss:$28 sps:$4 sm:$0xff]   ;;  %v9947_v3 = vpack.c.bf16 %v8233_v56, %v8233_v56  ;;  %v9043_v4 = vld [vmem:[#allocation8 + $0x38c] ss:$28 sps:$4 sm:$0xff]  }
 0x257   :  { %5981 = vmatprep.subr.bf16.mxu0 %v8989_v1  ;;  %v7966_v14 = vpop.f32.mrb[7].mxu1  ;;  %v9038_v1 = vld [vmem:[#allocation8 + $0x350] ss:$28 sps:$4 sm:$0xff]   ;;  %v9065_v56 = vld [vmem:[#allocation8 + $0x548] ss:$28 sps:$4 sm:$0xff]  }
 0x258   :  { %5861 = vmatpush1.bf16.msra.mxu1 %v8984_v63  ;;  %v3172_v0 = vadd.f32 %v9933_v8, %v596_v49  ;;  %v9097_v63 = vld [vmem:[#allocation8 + $0x73c] ss:$28 sps:$4 sm:$0xff]   ;;  %v9046_v8 = vld [vmem:[#allocation8 + $0x3c4] ss:$28 sps:$4 sm:$0xff]   ;;  %v9101_v11 = vld [vmem:[#allocation8 + $0x770] ss:$28 sps:$4 sm:$0xff]  }
 0x259   :  { %5862 = vmatprep.subr.bf16.mxu1 %v8992_v2  ;;  %v9049_v14 = vld [vmem:[#allocation8 + $0x3fc] ss:$28 sps:$4 sm:$0xff]  }
 0x25a   :  { %5982 = vmatpush1.bf16.msra.mxu0 %v8987_v10  ;;  %v9103_v10 = vld [vmem:[#allocation8 + $0x774] ss:$28 sps:$4 sm:$0xff]  }
 0x25b   :  { %5983 = vmatprep.subr.bf16.mxu0 %v8995_v12  ;;  %v9109_v12 = vld [vmem:[#allocation8 + $0x7ac] ss:$28 sps:$4 sm:$0xff]  }
 0x25c   :  { %5863 = vmatpush1.bf16.msra.mxu1 %v8990_v7  ;;  %v9041_v7 = vld [vmem:[#allocation8 + $0x388] ss:$28 sps:$4 sm:$0xff]  }
 0x25d   :  { %5864 = vmatprep.subr.bf16.mxu1 %v8998_v15  ;;  %v9044_v15 = vld [vmem:[#allocation8 + $0x3c0] ss:$28 sps:$4 sm:$0xff]  }
 0x25e   :  { %5984 = vmatpush1.bf16.msra.mxu0 %v8993_v30  ;;  %v9107_v30 = vld [vmem:[#allocation8 + $0x7a8] ss:$28 sps:$4 sm:$0xff]  }
 0x25f   :  { %5985 = vmatprep.subr.bf16.mxu0 %v9001_v17  ;;  %v9047_v17 = vld [vmem:[#allocation8 + $0x3f8] ss:$28 sps:$4 sm:$0xff]  }
 0x260   :  { %5865 = vmatpush1.bf16.msra.mxu1 %v8996_v16  ;;  %v9115_v16 = vld [vmem:[#allocation8 + $0x7e4] ss:$28 sps:$4 sm:$0xff]  }
 0x261   :  { %5866 = vmatprep.subr.bf16.mxu1 %v9004_v20  ;;  %v9052_v20 = vld [vmem:[#allocation8 + $0x434] ss:$28 sps:$4 sm:$0xff]  }
 0x262   :  { %5986 = vmatpush1.bf16.msra.mxu0 %v8999_v21  ;;  %v9113_v21 = vld [vmem:[#allocation8 + $0x7e0] ss:$28 sps:$4 sm:$0xff]  }
 0x263   :  { %5987 = vmatprep.subr.bf16.mxu0 %v9007_v23  ;;  %v9050_v23 = vld [vmem:[#allocation8 + $0x430] ss:$28 sps:$4 sm:$0xff]  }
 0x264   :  { %5867 = vmatpush1.bf16.msra.mxu1 %v9002_v22  ;;  %v9121_v22 = vld [vmem:[#allocation8 + $0x81c] ss:$28 sps:$4 sm:$0xff]  }
 0x265   :  { %5868 = vmatprep.subr.bf16.mxu1 %v9010_v24  ;;  %v9055_v24 = vld [vmem:[#allocation8 + $0x46c] ss:$28 sps:$4 sm:$0xff]  }
 0x266   :  { %5988 = vmatpush1.bf16.msra.mxu0 %v9005_v25  ;;  %v9119_v25 = vld [vmem:[#allocation8 + $0x818] ss:$28 sps:$4 sm:$0xff]  }
 0x267   :  { %5989 = vmatprep.subr.bf16.mxu0 %v9013_v26  ;;  %v9053_v26 = vld [vmem:[#allocation8 + $0x468] ss:$28 sps:$4 sm:$0xff]  }
 0x268   :  { %5869 = vmatpush1.bf16.msra.mxu1 %v9008_v13  ;;  %v9127_v13 = vld [vmem:[#allocation8 + $0x854] ss:$28 sps:$4 sm:$0xff]  }
 0x269   :  { %5870 = vmatprep.subr.bf16.mxu1 %v9016_v28  ;;  %v9058_v28 = vld [vmem:[#allocation8 + $0x4a4] ss:$28 sps:$4 sm:$0xff]  }
 0x26a   :  { %5990 = vmatpush1.bf16.msra.mxu0 %v9011_v29  ;;  %v9125_v29 = vld [vmem:[#allocation8 + $0x850] ss:$28 sps:$4 sm:$0xff]  }
 0x26b   :  { %5991 = vmatprep.subr.bf16.mxu0 %v9019_v32  ;;  %v9056_v32 = vld [vmem:[#allocation8 + $0x4a0] ss:$28 sps:$4 sm:$0xff]  }
 0x26c   :  { %5871 = vmatpush1.bf16.msra.mxu1 %v9014_v31  ;;  %v9133_v31 = vld [vmem:[#allocation8 + $0x88c] ss:$28 sps:$4 sm:$0xff]  }
 0x26d   :  { %5872 = vmatprep.subr.bf16.mxu1 %v9022_v34  ;;  %v9061_v34 = vld [vmem:[#allocation8 + $0x4dc] ss:$28 sps:$4 sm:$0xff]  }
 0x26e   :  { %5992 = vmatpush1.bf16.msra.mxu0 %v9017_v36 }
 0x26f   :  { %5993 = vmatprep.subr.bf16.mxu0 %v9025_v40 }
 0x270   :  { %5873 = vmatpush1.bf16.msra.mxu1 %v9020_v39  ;;  %v9131_v39 = vld [vmem:[#allocation8 + $0x888] ss:$28 sps:$4 sm:$0xff]  }
 0x271   :  { %5874 = vmatprep.subr.bf16.mxu1 %v9028_v41  ;;  %v9139_v41 = vld [vmem:[#allocation8 + $0x8c4] ss:$28 sps:$4 sm:$0xff]  }
 0x272   :  { %5994 = vmatpush1.bf16.msra.mxu0 %v9023_v44  ;;  %v9059_v44 = vld [vmem:[#allocation8 + $0x4d8] ss:$28 sps:$4 sm:$0xff]  }
 0x273   :  { %5995 = vmatprep.subr.bf16.mxu0 %v9031_v46 }
 0x274   :  { %5875 = vmatpush1.bf16.msra.mxu1 %v9026_v45  ;;  %v7984_v55 = vpop.f32.mrb[8].mxu1 }
 0x275   :  { %5876 = vmatprep.subr.bf16.mxu1 %v9034_v47  ;;  %v7985_v57 = vpop.f32.mrb[9].mxu1  ;;  %v9064_v47 = vld [vmem:[#allocation8 + $0x514] ss:$28 sps:$4 sm:$0xff]  }
 0x276   :  { %5996 = vmatpush1.bf16.msra.mxu0 %v9029_v51  ;;  %v7986_v60 = vadd.f32 %v7985_v57, %v7984_v55  ;;  %v7987_v5 = vpop.f32.mrb[10].mxu1  ;;  %v9137_v51 = vld [vmem:[#allocation8 + $0x8c0] ss:$28 sps:$4 sm:$0xff]   ;;  %v9151_v55 = vld [vmem:[#allocation8 + $0x934] ss:$28 sps:$4 sm:$0xff]  }
 0x277   :  { %5997 = vmatprep.subr.bf16.mxu0 %v9037_v53  ;;  %v7988_v61 = vpop.f32.mrb[11].mxu1  ;;  %v9062_v53 = vld [vmem:[#allocation8 + $0x510] ss:$28 sps:$4 sm:$0xff]   ;;  %v9070_v57 = vld [vmem:[#allocation8 + $0x584] ss:$28 sps:$4 sm:$0xff]  }
 0x278   :  { %5877 = vmatpush1.bf16.msra.mxu1 %v9032_v52  ;;  %v9945_v2 = vadd.f32 %v7986_v60, %v3172_v0  ;;  %v9145_v52 = vld [vmem:[#allocation8 + $0x8fc] ss:$28 sps:$4 sm:$0xff]   ;;  %v9155_v61 = vld [vmem:[#allocation8 + $0x968] ss:$28 sps:$4 sm:$0xff]  }
 0x279   :  { %5887 = vmatprep.subr.bf16.mxu1 %v9091_v54  ;;  %v9067_v54 = vld [vmem:[#allocation8 + $0x54c] ss:$28 sps:$4 sm:$0xff]   ;;  %v9143_v0 = vld [vmem:[#allocation8 + $0x8f8] ss:$28 sps:$4 sm:$0xff]   ;;  %v9068_v60 = vld [vmem:[#allocation8 + $0x580] ss:$28 sps:$4 sm:$0xff]  }
 0x27a   :  { %5998 = vmatpush1.bf16.msra.mxu0 %v9035_v58  ;;  %v9149_v58 = vld [vmem:[#allocation8 + $0x930] ss:$28 sps:$4 sm:$0xff]   ;;  %v9073_v5 = vld [vmem:[#allocation8 + $0x5bc] ss:$28 sps:$4 sm:$0xff]  }
 0x27b   :  { %5879 = vmatmul.mubr.bf16.vlgmr.msra.gmra.mrb[20].mxu1 %v9947_v3  ;;  %5999 = vmatprep.subr.bf16.mxu0 %v9040_v59  ;;  %v9157_v59 = vld [vmem:[#allocation8 + $0x96c] ss:$28 sps:$4 sm:$0xff]  }
 0x27c   :  { %5888 = vmatpush1.bf16.msra.mxu1 %v9089_v62  ;;  %v9163_v62 = vld [vmem:[#allocation8 + $0x9a4] ss:$28 sps:$4 sm:$0xff]  }
 0x27d   :  { %5889 = vmatprep.subr.bf16.mxu1 %v9097_v63  ;;  %v9071_v63 = vld [vmem:[#allocation8 + $0x5b8] ss:$28 sps:$4 sm:$0xff]  }
 0x27e   :  { %6000 = vmatpush1.bf16.msra.mxu0 %v9038_v1  ;;  %v9076_v1 = vld [vmem:[#allocation8 + $0x5f4] ss:$28 sps:$4 sm:$0xff]  }
 0x27f   :  { %6010 = vmatprep.subr.bf16.mxu0 %v9043_v4  ;;  %v9169_v4 = vld [vmem:[#allocation8 + $0x9dc] ss:$28 sps:$4 sm:$0xff]  }
 0x280   :  { %5890 = vmatpush1.bf16.msra.mxu1 %v9095_v18  ;;  %v9074_v18 = vld [vmem:[#allocation8 + $0x5f0] ss:$28 sps:$4 sm:$0xff]  }
 0x281   :  { %6002 = vmatmul.mubr.bf16.vlgmr.msra.gmra.mrb[8].mxu0 %v9924_v37  ;;  %5891 = vmatprep.subr.bf16.mxu1 %v9103_v10  ;;  %v9079_v10 = vld [vmem:[#allocation8 + $0x62c] ss:$28 sps:$4 sm:$0xff]  }
 0x282   :  { %6011 = vmatpush1.bf16.msra.mxu0 %v9041_v7  ;;  %6042 = vmatprep.mubr.bf16.mxu0 %v9926_v38  ;;  %v9167_v7 = vld [vmem:[#allocation8 + $0x9d8] ss:$28 sps:$4 sm:$0xff]  }
 0x283   :  { %6012 = vmatprep.subr.bf16.mxu0 %v9046_v8  ;;  %v9175_v8 = vld [vmem:[#allocation8 + $0xa14] ss:$28 sps:$4 sm:$0xff]  }
 0x284   :  { %5892 = vmatpush1.bf16.msra.mxu1 %v9101_v11  ;;  %v9077_v11 = vld [vmem:[#allocation8 + $0x628] ss:$28 sps:$4 sm:$0xff]  }
 0x285   :  { %5893 = vmatprep.subr.bf16.mxu1 %v9109_v12  ;;  %v9082_v12 = vld [vmem:[#allocation8 + $0x664] ss:$28 sps:$4 sm:$0xff]  }
 0x286   :  { %6013 = vmatpush1.bf16.msra.mxu0 %v9044_v15  ;;  %v9173_v15 = vld [vmem:[#allocation8 + $0xa10] ss:$28 sps:$4 sm:$0xff]  }
 0x287   :  { %6014 = vmatprep.subr.bf16.mxu0 %v9049_v14  ;;  %v9181_v14 = vld [vmem:[#allocation8 + $0xa4c] ss:$28 sps:$4 sm:$0xff]  }
 0x288   :  { %5894 = vmatpush1.bf16.msra.mxu1 %v9107_v30  ;;  %v9080_v30 = vld [vmem:[#allocation8 + $0x660] ss:$28 sps:$4 sm:$0xff]  }
 0x289   :  { %5895 = vmatprep.subr.bf16.mxu1 %v9115_v16  ;;  %v9085_v16 = vld [vmem:[#allocation8 + $0x69c] ss:$28 sps:$4 sm:$0xff]  }
 0x28a   :  { %6015 = vmatpush1.bf16.msra.mxu0 %v9047_v17 }
 0x28b   :  { %6016 = vmatprep.subr.bf16.mxu0 %v9052_v20  ;;  %v9179_v20 = vld [vmem:[#allocation8 + $0xa48] ss:$28 sps:$4 sm:$0xff]  }
 0x28c   :  { %5896 = vmatpush1.bf16.msra.mxu1 %v9113_v21 }
 0x28d   :  { %5897 = vmatprep.subr.bf16.mxu1 %v9121_v22  ;;  %v9187_v22 = vld [vmem:[#allocation8 + $0xa84] ss:$28 sps:$4 sm:$0xff]  }
 0x28e   :  { %6017 = vmatpush1.bf16.msra.mxu0 %v9050_v23 }
 0x28f   :  { %6018 = vmatprep.subr.bf16.mxu0 %v9055_v24  ;;  %v9083_v24 = vld [vmem:[#allocation8 + $0x698] ss:$28 sps:$4 sm:$0xff]  }
 0x290   :  { %5898 = vmatpush1.bf16.msra.mxu1 %v9119_v25 }
 0x291   :  { %5899 = vmatprep.subr.bf16.mxu1 %v9127_v13  ;;  %v9088_v13 = vld [vmem:[#allocation8 + $0x6d4] ss:$28 sps:$4 sm:$0xff]  }
 0x292   :  { %6019 = vmatpush1.bf16.msra.mxu0 %v9053_v26 }
 0x293   :  { %6020 = vmatprep.subr.bf16.mxu0 %v9058_v28  ;;  %v9086_v28 = vld [vmem:[#allocation8 + $0x6d0] ss:$28 sps:$4 sm:$0xff]  }
 0x294   :  { %v8006_v36 = vpop.f32.mrb[12].mxu1  ;;  %5900 = vmatpush1.bf16.msra.mxu1 %v9125_v29  ;;  %v9094_v29 = vld [vmem:[#allocation8 + $0x70c] ss:$28 sps:$4 sm:$0xff]  }
 0x295   :  { %v8007_v40 = vpop.f32.mrb[13].mxu1  ;;  %5901 = vmatprep.subr.bf16.mxu1 %v9133_v31  ;;  %v9092_v31 = vld [vmem:[#allocation8 + $0x708] ss:$28 sps:$4 sm:$0xff]  }
 0x296   :  { %6021 = vmatpush1.bf16.msra.mxu0 %v9056_v32  ;;  %v8008_v45 = vadd.f32 %v8007_v40, %v8006_v36  ;;  %v8009_v46 = vpop.f32.mrb[14].mxu1  ;;  %v9100_v32 = vld [vmem:[#allocation8 + $0x744] ss:$28 sps:$4 sm:$0xff]   ;;  %v9106_v36 = vld [vmem:[#allocation8 + $0x77c] ss:$28 sps:$4 sm:$0xff]  }
 0x297   :  { %6022 = vmatprep.subr.bf16.mxu0 %v9061_v34  ;;  %v8010_v49 = vpop.f32.mrb[15].mxu1  ;;  %v9098_v34 = vld [vmem:[#allocation8 + $0x740] ss:$28 sps:$4 sm:$0xff]   ;;  %v9112_v40 = vld [vmem:[#allocation8 + $0x7b4] ss:$28 sps:$4 sm:$0xff]  }
 0x298   :  { %v3252_v50 = vadd.f32 %v8008_v45, %v9945_v2  ;;  %5902 = vmatpush1.bf16.msra.mxu1 %v9131_v39  ;;  %v9161_v2 = vld [vmem:[#allocation8 + $0x9a0] ss:$28 sps:$4 sm:$0xff]   ;;  %v9104_v39 = vld [vmem:[#allocation8 + $0x778] ss:$28 sps:$4 sm:$0xff]   ;;  %v9116_v45 = vld [vmem:[#allocation8 + $0x7e8] ss:$28 sps:$4 sm:$0xff]  }
 0x299   :  { %5903 = vmatprep.subr.bf16.mxu1 %v9139_v41  ;;  %v9110_v41 = vld [vmem:[#allocation8 + $0x7b0] ss:$28 sps:$4 sm:$0xff]   ;;  %v9124_v46 = vld [vmem:[#allocation8 + $0x824] ss:$28 sps:$4 sm:$0xff]   ;;  %v9130_v49 = vld [vmem:[#allocation8 + $0x85c] ss:$28 sps:$4 sm:$0xff]  }
 0x29a   :  { %6023 = vmatpush1.bf16.msra.mxu0 %v9059_v44  ;;  %v9118_v44 = vld [vmem:[#allocation8 + $0x7ec] ss:$28 sps:$4 sm:$0xff]  }
 0x29b   :  { %6024 = vmatprep.subr.bf16.mxu0 %v9064_v47  ;;  %v9122_v47 = vld [vmem:[#allocation8 + $0x820] ss:$28 sps:$4 sm:$0xff]  }
 0x29c   :  { %5904 = vmatpush1.bf16.msra.mxu1 %v9137_v51  ;;  %v9136_v51 = vld [vmem:[#allocation8 + $0x894] ss:$28 sps:$4 sm:$0xff]  }
 0x29d   :  { %5905 = vmatprep.subr.bf16.mxu1 %v9145_v52  ;;  %v9134_v52 = vld [vmem:[#allocation8 + $0x890] ss:$28 sps:$4 sm:$0xff]  }
 0x29e   :  { %6025 = vmatpush1.bf16.msra.mxu0 %v9062_v53  ;;  %v9142_v53 = vld [vmem:[#allocation8 + $0x8cc] ss:$28 sps:$4 sm:$0xff]  }
 0x29f   :  { %6026 = vmatprep.subr.bf16.mxu0 %v9067_v54  ;;  %v9140_v54 = vld [vmem:[#allocation8 + $0x8c8] ss:$28 sps:$4 sm:$0xff]  }
 0x2a0   :  { %5906 = vmatpush1.bf16.msra.mxu1 %v9143_v0  ;;  %v9148_v0 = vld [vmem:[#allocation8 + $0x904] ss:$28 sps:$4 sm:$0xff]  }
 0x2a1   :  { %5907 = vmatprep.subr.bf16.mxu1 %v9151_v55  ;;  %v9146_v55 = vld [vmem:[#allocation8 + $0x900] ss:$28 sps:$4 sm:$0xff]  }
 0x2a2   :  { %6027 = vmatpush1.bf16.msra.mxu0 %v9065_v56  ;;  %v9154_v56 = vld [vmem:[#allocation8 + $0x93c] ss:$28 sps:$4 sm:$0xff]  }
 0x2a3   :  { %6028 = vmatprep.subr.bf16.mxu0 %v9070_v57  ;;  %v9152_v57 = vld [vmem:[#allocation8 + $0x938] ss:$28 sps:$4 sm:$0xff]  }
 0x2a4   :  { %5908 = vmatpush1.bf16.msra.mxu1 %v9149_v58  ;;  %v9160_v58 = vld [vmem:[#allocation8 + $0x974] ss:$28 sps:$4 sm:$0xff]  }
 0x2a5   :  { %5909 = vmatprep.subr.bf16.mxu1 %v9157_v59  ;;  %v9158_v59 = vld [vmem:[#allocation8 + $0x970] ss:$28 sps:$4 sm:$0xff]  }
 0x2a6   :  { %6029 = vmatpush1.bf16.msra.mxu0 %v9068_v60  ;;  %v9166_v60 = vld [vmem:[#allocation8 + $0x9ac] ss:$28 sps:$4 sm:$0xff]  }
 0x2a7   :  { %6030 = vmatprep.subr.bf16.mxu0 %v9073_v5  ;;  %v9164_v5 = vld [vmem:[#allocation8 + $0x9a8] ss:$28 sps:$4 sm:$0xff]  }
 0x2a8   :  { %5910 = vmatpush1.bf16.msra.mxu1 %v9155_v61  ;;  %v9172_v61 = vld [vmem:[#allocation8 + $0x9e4] ss:$28 sps:$4 sm:$0xff]  }
 0x2a9   :  { %5911 = vmatprep.subr.bf16.mxu1 %v9163_v62  ;;  %v9170_v62 = vld [vmem:[#allocation8 + $0x9e0] ss:$28 sps:$4 sm:$0xff]  }
 0x2aa   :  { %6031 = vmatpush1.bf16.msra.mxu0 %v9071_v63  ;;  %v9178_v63 = vld [vmem:[#allocation8 + $0xa1c] ss:$28 sps:$4 sm:$0xff]  }
 0x2ab   :  { %6032 = vmatprep.subr.bf16.mxu0 %v9076_v1  ;;  %v9176_v1 = vld [vmem:[#allocation8 + $0xa18] ss:$28 sps:$4 sm:$0xff]  }
 0x2ac   :  { %5912 = vmatpush1.bf16.msra.mxu1 %v9161_v2  ;;  %v9184_v2 = vld [vmem:[#allocation8 + $0xa54] ss:$28 sps:$4 sm:$0xff]  }
 0x2ad   :  { %5913 = vmatprep.subr.bf16.mxu1 %v9169_v4  ;;  %v9182_v4 = vld [vmem:[#allocation8 + $0xa50] ss:$28 sps:$4 sm:$0xff]  }
 0x2ae   :  { %6033 = vmatpush1.bf16.msra.mxu0 %v9074_v18  ;;  %v9190_v18 = vld [vmem:[#allocation8 + $0xa8c] ss:$28 sps:$4 sm:$0xff]  }
 0x2af   :  { %6034 = vmatprep.subr.bf16.mxu0 %v9079_v10  ;;  %v587_v10 = vsub.s32 4, %v9904_v6 }
 0x2b0   :  { %5914 = vmatpush1.bf16.msra.mxu1 %v9167_v7  ;;  %v591_v7 = vsub.s32 5, %v9904_v6 }
 0x2b1   :  { %5915 = vmatprep.subr.bf16.mxu1 %v9175_v8  ;;  %v9514_v8 = vld [vmem:[#allocation7] sm:$0xff] }
 0x2b2   :  { %6035 = vmatpush1.bf16.msra.mxu0 %v9077_v11  ;;  %v588_v11 = vrot.slane %v9514_v8, %v587_v10 }
 0x2b3   :  { %6036 = vmatprep.subr.bf16.mxu0 %v9082_v12  ;;  %v592_v12 = vrot.slane %v9514_v8, %v591_v7  ;;  %v9242_v8 = vld [vmem:[#allocation8 + $0x50] ss:$28 sps:$4 sm:$0xff]  }
 0x2b4   :  { %v3291_v17 = vpop.f32.mrb[16].mxu1  ;;  %5916 = vmatpush1.bf16.msra.mxu1 %v9173_v15 }
 0x2b5   :  { %v9953_v21 = vadd.f32 %v3291_v17, %v3252_v50  ;;  %5917 = vmatprep.subr.bf16.mxu1 %v9181_v14  ;;  %v8189_v23 = vpop.f32.mrb[17].mxu1  ;;  %v9128_v50 = vld [vmem:[#allocation8 + $0x858] ss:$28 sps:$4 sm:$0xff]  }
 0x2b6   :  { %6037 = vmatpush1.bf16.msra.mxu0 %v9080_v30  ;;  %v3294_v25 = vpop.f32.mrb[18].mxu1  ;;  %v9185_v23 = vld [vmem:[#allocation8 + $0xa80] ss:$28 sps:$4 sm:$0xff]  }
 0x2b7   :  { %6038 = vmatprep.subr.bf16.mxu0 %v9085_v16  ;;  %v8190_v26 = vpop.f32.mrb[19].mxu1 }
 0x2b8   :  { %5918 = vmatpush1.bf16.msra.mxu1 %v9179_v20  ;;  %v9196_v26 = vld [vmem:[#allocation8 + $0xac4] ss:$28 sps:$4 sm:$0xff]  }
 0x2b9   :  { %5928 = vmatprep.subr.bf16.mxu1 %v9187_v22 }
 0x2ba   :  { %6039 = vmatpush1.bf16.msra.mxu0 %v9083_v24  ;;  %v9188_v24 = vld [vmem:[#allocation8 + $0xa88] ss:$28 sps:$4 sm:$0xff]  }
 0x2bb   :  { %6040 = vmatprep.subr.bf16.mxu0 %v9088_v13  ;;  %v9193_v13 = vld [vmem:[#allocation8 + $0xabc] ss:$28 sps:$4 sm:$0xff]  }
 0x2be   :  { %6041 = vmatpush1.bf16.msra.mxu0 %v9086_v28  ;;  %v9191_v28 = vld [vmem:[#allocation8 + $0xab8] ss:$28 sps:$4 sm:$0xff]  }
 0x2bf   :  { %6051 = vmatprep.subr.bf16.mxu0 %v9094_v29  ;;  %v9194_v29 = vld [vmem:[#allocation8 + $0xac0] ss:$28 sps:$4 sm:$0xff]  }
 0x2c1   :  { %6043 = vmatmul.mubr.bf16.vlgmr.msra.gmra.mrb[8].mxu0 %v9947_v3 }
 0x2c2   :  { %6052 = vmatpush1.bf16.msra.mxu0 %v9092_v31  ;;  %v9199_v31 = vld [vmem:[#allocation8 + $0xaf4] ss:$28 sps:$4 sm:$0xff]  }
 0x2c3   :  { %6053 = vmatprep.subr.bf16.mxu0 %v9100_v32  ;;  %v9202_v32 = vld [vmem:[#allocation8 + $0xafc] ss:$28 sps:$4 sm:$0xff]  }
 0x2c6   :  { %6054 = vmatpush1.bf16.msra.mxu0 %v9098_v34  ;;  %v9197_v34 = vld [vmem:[#allocation8 + $0xaf0] ss:$28 sps:$4 sm:$0xff]  }
 0x2c7   :  { %6055 = vmatprep.subr.bf16.mxu0 %v9106_v36  ;;  %v9200_v36 = vld [vmem:[#allocation8 + $0xaf8] ss:$28 sps:$4 sm:$0xff]  }
 0x2ca   :  { %6056 = vmatpush1.bf16.msra.mxu0 %v9104_v39  ;;  %v9205_v39 = vld [vmem:[#allocation8 + $0xb2c] ss:$28 sps:$4 sm:$0xff]  }
 0x2cb   :  { %6057 = vmatprep.subr.bf16.mxu0 %v9112_v40  ;;  %v9208_v40 = vld [vmem:[#allocation8 + $0xb34] ss:$28 sps:$4 sm:$0xff]  }
 0x2ce   :  { %6058 = vmatpush1.bf16.msra.mxu0 %v9110_v41  ;;  %v9203_v41 = vld [vmem:[#allocation8 + $0xb28] ss:$28 sps:$4 sm:$0xff]  }
 0x2cf   :  { %6059 = vmatprep.subr.bf16.mxu0 %v9118_v44  ;;  %v9206_v44 = vld [vmem:[#allocation8 + $0xb30] ss:$28 sps:$4 sm:$0xff]  }
 0x2d2   :  { %6060 = vmatpush1.bf16.msra.mxu0 %v9116_v45  ;;  %v9211_v45 = vld [vmem:[#allocation8 + $0xb64] ss:$28 sps:$4 sm:$0xff]  }
 0x2d3   :  { %6061 = vmatprep.subr.bf16.mxu0 %v9124_v46  ;;  %v9214_v46 = vld [vmem:[#allocation8 + $0xb6c] ss:$28 sps:$4 sm:$0xff]  }
 0x2d6   :  { %6062 = vmatpush1.bf16.msra.mxu0 %v9122_v47  ;;  %v9209_v47 = vld [vmem:[#allocation8 + $0xb60] ss:$28 sps:$4 sm:$0xff]  }
 0x2d7   :  { %6063 = vmatprep.subr.bf16.mxu0 %v9130_v49  ;;  %v9212_v49 = vld [vmem:[#allocation8 + $0xb68] ss:$28 sps:$4 sm:$0xff]  }
 0x2da   :  { %6064 = vmatpush1.bf16.msra.mxu0 %v9128_v50  ;;  %v9217_v50 = vld [vmem:[#allocation8 + $0xb9c] ss:$28 sps:$4 sm:$0xff]  }
 0x2db   :  { %6065 = vmatprep.subr.bf16.mxu0 %v9136_v51  ;;  %v9220_v51 = vld [vmem:[#allocation8 + $0xba4] ss:$28 sps:$4 sm:$0xff]  }
 0x2de   :  { %6066 = vmatpush1.bf16.msra.mxu0 %v9134_v52  ;;  %v9215_v52 = vld [vmem:[#allocation8 + $0xb98] ss:$28 sps:$4 sm:$0xff]  }
 0x2df   :  { %6067 = vmatprep.subr.bf16.mxu0 %v9142_v53  ;;  %v9218_v53 = vld [vmem:[#allocation8 + $0xba0] ss:$28 sps:$4 sm:$0xff]  }
 0x2e2   :  { %6068 = vmatpush1.bf16.msra.mxu0 %v9140_v54  ;;  %v9223_v54 = vld [vmem:[#allocation8 + $0xbd4] ss:$28 sps:$4 sm:$0xff]  }
 0x2e3   :  { %6069 = vmatprep.subr.bf16.mxu0 %v9148_v0  ;;  %v9226_v0 = vld [vmem:[#allocation8 + $0xbdc] ss:$28 sps:$4 sm:$0xff]  }
 0x2e6   :  { %6070 = vmatpush1.bf16.msra.mxu0 %v9146_v55  ;;  %v9221_v55 = vld [vmem:[#allocation8 + $0xbd0] ss:$28 sps:$4 sm:$0xff]  }
 0x2e7   :  { %6071 = vmatprep.subr.bf16.mxu0 %v9154_v56  ;;  %v9224_v56 = vld [vmem:[#allocation8 + $0xbd8] ss:$28 sps:$4 sm:$0xff]  }
 0x2ea   :  { %6072 = vmatpush1.bf16.msra.mxu0 %v9152_v57  ;;  %v9229_v57 = vld [vmem:[#allocation8 + $0xc0c] ss:$28 sps:$4 sm:$0xff]  }
 0x2eb   :  { %6073 = vmatprep.subr.bf16.mxu0 %v9160_v58  ;;  %v9232_v58 = vld [vmem:[#allocation8 + $0xc14] ss:$28 sps:$4 sm:$0xff]  }
 0x2ee   :  { %6074 = vmatpush1.bf16.msra.mxu0 %v9158_v59  ;;  %v9227_v59 = vld [vmem:[#allocation8 + $0xc08] ss:$28 sps:$4 sm:$0xff]  }
 0x2ef   :  { %6075 = vmatprep.subr.bf16.mxu0 %v9166_v60  ;;  %v9230_v60 = vld [vmem:[#allocation8 + $0xc10] ss:$28 sps:$4 sm:$0xff]  }
 0x2f2   :  { %6076 = vmatpush1.bf16.msra.mxu0 %v9164_v5  ;;  %v9235_v5 = vld [vmem:[#allocation8 + $0x14] ss:$28 sps:$4 sm:$0xff]  }
 0x2f3   :  { %6077 = vmatprep.subr.bf16.mxu0 %v9172_v61  ;;  %v9236_v61 = vld [vmem:[#allocation8 + $0x1d8] ss:$28 sps:$4 sm:$0xff]  }
 0x2f6   :  { %6078 = vmatpush1.bf16.msra.mxu0 %v9170_v62  ;;  %v9233_v62 = vld [vmem:[#allocation8 + $0x10] ss:$28 sps:$4 sm:$0xff]  }
 0x2f7   :  { %6079 = vmatprep.subr.bf16.mxu0 %v9178_v63  ;;  %v9974_v63 = vpack.c.bf16 %v9953_v21, %v9953_v21  ;;  %v9246_v21 = vld [vmem:[#allocation8 + $0x248] ss:$28 sps:$4 sm:$0xff]  }
 0x2fa   :  { %6080 = vmatpush1.bf16.msra.mxu0 %v9176_v1  ;;  %v9237_v1 = vld [vmem:[#allocation8 + $0x18] ss:$28 sps:$4 sm:$0xff]  }
 0x2fb   :  { %6081 = vmatprep.subr.bf16.mxu0 %v9184_v2  ;;  %v9240_v2 = vld [vmem:[#allocation8 + $0x4c] ss:$28 sps:$4 sm:$0xff]  }
 0x2fe   :  { %6082 = vmatpush1.bf16.msra.mxu0 %v9182_v4  ;;  %v9241_v4 = vld [vmem:[#allocation8 + $0x210] ss:$28 sps:$4 sm:$0xff]  }
 0x2ff   :  { %6092 = vmatprep.subr.bf16.mxu0 %v9190_v18  ;;  %v9238_v18 = vld [vmem:[#allocation8 + $0x48] ss:$28 sps:$4 sm:$0xff]  }
 0x314   :  { %v3130_v15 = vpop.f32.mrb[4].mxu0 }
 0x315   :  { %v8235_v14 = vadd.f32 %v3130_v15, %v588_v11  ;;  %v3132_v30 = vpop.f32.mrb[5].mxu0  ;;  %v9245_v11 = vld [vmem:[#allocation8 + $0x84] ss:$28 sps:$4 sm:$0xff]  }
 0x316   :  { %v8236_v16 = vadd.f32 %v3132_v30, %v592_v12  ;;  %v3134_v17 = vpop.f32.mrb[6].mxu0  ;;  %v9243_v12 = vld [vmem:[#allocation8 + $0x80] ss:$28 sps:$4 sm:$0xff]   ;;  %v9247_v15 = vld [vmem:[#allocation8 + $0x88] ss:$28 sps:$4 sm:$0xff]  }
 0x317   :  { %v3135_v20 = vpop.f32.mrb[7].mxu0  ;;  %v9964_v25 = vpack.c.bf16 %v8235_v14, %v8235_v14  ;;  %v9250_v14 = vld [vmem:[#allocation8 + $0xbc] ss:$28 sps:$4 sm:$0xff]  }
 0x318   :  { %v9962_v22 = vpack.c.bf16 %v8236_v16, %v8236_v16  ;;  %v9251_v30 = vld [vmem:[#allocation8 + $0x280] ss:$28 sps:$4 sm:$0xff]   ;;  %v9248_v16 = vld [vmem:[#allocation8 + $0xb8] ss:$28 sps:$4 sm:$0xff]  }
 0x319   :  { %v9252_v17 = vld [vmem:[#allocation8 + $0xc0] ss:$28 sps:$4 sm:$0xff]   ;;  %v9255_v20 = vld [vmem:[#allocation8 + $0xf4] ss:$28 sps:$4 sm:$0xff]  }
 0x31a   :  { %5919 = vmatprep.mubr.bf16.mxu1 %v9962_v22  ;;  %6083 = vmatprep.mubr.bf16.mxu0 %v9962_v22 }
 0x31b   :  { %5920 = vmatmul.mubr.bf16.vlgmr.msra.gmra.mrb[20].mxu1 %v9964_v25  ;;  %6084 = vmatmul.mubr.bf16.vlgmr.msra.gmra.mrb[8].mxu0 %v9964_v25 }
 0x31c   :  { %5929 = vmatpush1.bf16.msra.mxu1 %v9185_v23  ;;  %6093 = vmatpush1.bf16.msra.mxu0 %v9188_v24  ;;  %v9253_v23 = vld [vmem:[#allocation8 + $0xf0] ss:$28 sps:$4 sm:$0xff]   ;;  %v9257_v24 = vld [vmem:[#allocation8 + $0xf8] ss:$28 sps:$4 sm:$0xff]  }
 0x31d   :  { %5930 = vmatprep.subr.bf16.mxu1 %v9193_v13  ;;  %6094 = vmatprep.subr.bf16.mxu0 %v9196_v26  ;;  %v9260_v13 = vld [vmem:[#allocation8 + $0x12c] ss:$28 sps:$4 sm:$0xff]  }
 0x31e   :  { %5960 = vmatprep.mubr.bf16.mxu1 %v9712_v27  ;;  %6124 = vmatprep.mubr.bf16.mxu0 %v9712_v27  ;;  %v9261_v26 = vld [vmem:[#allocation8 + $0x2f0] ss:$28 sps:$4 sm:$0xff]  }
 0x320   :  { %5931 = vmatpush1.bf16.msra.mxu1 %v9191_v28  ;;  %6095 = vmatpush1.bf16.msra.mxu0 %v9194_v29  ;;  %v9258_v28 = vld [vmem:[#allocation8 + $0x128] ss:$28 sps:$4 sm:$0xff]   ;;  %v9262_v29 = vld [vmem:[#allocation8 + $0x130] ss:$28 sps:$4 sm:$0xff]  }
 0x321   :  { %5932 = vmatprep.subr.bf16.mxu1 %v9199_v31  ;;  %6096 = vmatprep.subr.bf16.mxu0 %v9202_v32  ;;  %v9265_v31 = vld [vmem:[#allocation8 + $0x164] ss:$28 sps:$4 sm:$0xff]  }
 0x322   :  { %v9266_v32 = vld [vmem:[#allocation8 + $0x328] ss:$28 sps:$4 sm:$0xff]  }
 0x324   :  { %5933 = vmatpush1.bf16.msra.mxu1 %v9197_v34  ;;  %6097 = vmatpush1.bf16.msra.mxu0 %v9200_v36  ;;  %v9263_v34 = vld [vmem:[#allocation8 + $0x160] ss:$28 sps:$4 sm:$0xff]   ;;  %v9267_v36 = vld [vmem:[#allocation8 + $0x168] ss:$28 sps:$4 sm:$0xff]  }
 0x325   :  { %5934 = vmatprep.subr.bf16.mxu1 %v9205_v39  ;;  %6098 = vmatprep.subr.bf16.mxu0 %v9208_v40  ;;  %v9270_v39 = vld [vmem:[#allocation8 + $0x19c] ss:$28 sps:$4 sm:$0xff]  }
 0x326   :  { %v9271_v40 = vld [vmem:[#allocation8 + $0x360] ss:$28 sps:$4 sm:$0xff]  }
 0x328   :  { %5935 = vmatpush1.bf16.msra.mxu1 %v9203_v41  ;;  %6099 = vmatpush1.bf16.msra.mxu0 %v9206_v44  ;;  %v9268_v41 = vld [vmem:[#allocation8 + $0x198] ss:$28 sps:$4 sm:$0xff]   ;;  %v9272_v44 = vld [vmem:[#allocation8 + $0x1a0] ss:$28 sps:$4 sm:$0xff]  }
 0x329   :  { %5936 = vmatprep.subr.bf16.mxu1 %v9211_v45  ;;  %6100 = vmatprep.subr.bf16.mxu0 %v9214_v46  ;;  %v9275_v45 = vld [vmem:[#allocation8 + $0x1d4] ss:$28 sps:$4 sm:$0xff]  }
 0x32a   :  { %v9276_v46 = vld [vmem:[#allocation8 + $0x558] ss:$28 sps:$4 sm:$0xff]  }
 0x32c   :  { %5937 = vmatpush1.bf16.msra.mxu1 %v9209_v47  ;;  %6101 = vmatpush1.bf16.msra.mxu0 %v9212_v49  ;;  %v9273_v47 = vld [vmem:[#allocation8 + $0x1d0] ss:$28 sps:$4 sm:$0xff]   ;;  %v9277_v49 = vld [vmem:[#allocation8 + $0x398] ss:$28 sps:$4 sm:$0xff]  }
 0x32d   :  { %5938 = vmatprep.subr.bf16.mxu1 %v9217_v50  ;;  %6102 = vmatprep.subr.bf16.mxu0 %v9220_v51  ;;  %v9280_v50 = vld [vmem:[#allocation8 + $0x20c] ss:$28 sps:$4 sm:$0xff]  }
 0x32e   :  { %v9281_v51 = vld [vmem:[#allocation8 + $0x590] ss:$28 sps:$4 sm:$0xff]  }
 0x330   :  { %5939 = vmatpush1.bf16.msra.mxu1 %v9215_v52  ;;  %6103 = vmatpush1.bf16.msra.mxu0 %v9218_v53  ;;  %v9278_v52 = vld [vmem:[#allocation8 + $0x208] ss:$28 sps:$4 sm:$0xff]   ;;  %v9282_v53 = vld [vmem:[#allocation8 + $0x3d0] ss:$28 sps:$4 sm:$0xff]  }
 0x331   :  { %5940 = vmatprep.subr.bf16.mxu1 %v9223_v54  ;;  %6104 = vmatprep.subr.bf16.mxu0 %v9226_v0  ;;  %v9285_v54 = vld [vmem:[#allocation8 + $0x244] ss:$28 sps:$4 sm:$0xff]  }
 0x332   :  { %v9286_v0 = vld [vmem:[#allocation8 + $0x5c8] ss:$28 sps:$4 sm:$0xff]  }
 0x334   :  { %5941 = vmatpush1.bf16.msra.mxu1 %v9221_v55  ;;  %6105 = vmatpush1.bf16.msra.mxu0 %v9224_v56  ;;  %v9283_v55 = vld [vmem:[#allocation8 + $0x240] ss:$28 sps:$4 sm:$0xff]   ;;  %v9287_v56 = vld [vmem:[#allocation8 + $0x408] ss:$28 sps:$4 sm:$0xff]  }
 0x335   :  { %5942 = vmatprep.subr.bf16.mxu1 %v9229_v57  ;;  %6106 = vmatprep.subr.bf16.mxu0 %v9232_v58  ;;  %v9290_v57 = vld [vmem:[#allocation8 + $0x27c] ss:$28 sps:$4 sm:$0xff]  }
 0x336   :  { %v9291_v58 = vld [vmem:[#allocation8 + $0x600] ss:$28 sps:$4 sm:$0xff]  }
 0x338   :  { %5943 = vmatpush1.bf16.msra.mxu1 %v9227_v59  ;;  %6107 = vmatpush1.bf16.msra.mxu0 %v9230_v60  ;;  %v9288_v59 = vld [vmem:[#allocation8 + $0x278] ss:$28 sps:$4 sm:$0xff]   ;;  %v9292_v60 = vld [vmem:[#allocation8 + $0x440] ss:$28 sps:$4 sm:$0xff]  }
 0x339   :  { %6133 = vmatprep.subr.bf16.mxu1 %v9235_v5  ;;  %8021 = vmatprep.subr.bf16.mxu0 %v9236_v61  ;;  %v9295_v5 = vld [vmem:[#allocation8 + $0x2b4] ss:$28 sps:$4 sm:$0xff]  }
 0x33a   :  { %v9296_v61 = vld [vmem:[#allocation8 + $0x638] ss:$28 sps:$4 sm:$0xff]  }
 0x33b   :  { %5961 = vmatmul.mubr.bf16.vlgmr.msra.gmra.mrb[20].mxu1 %v9974_v63  ;;  %6125 = vmatmul.mubr.bf16.vlgmr.msra.gmra.mrb[8].mxu0 %v9974_v63 }
 0x33c   :  { %6134 = vmatpush1.bf16.msra.mxu1 %v9233_v62  ;;  %6165 = vmatprep.mubr.bf16.mxu1 %v9922_v35  ;;  %v9293_v62 = vld [vmem:[#allocation8 + $0x2b0] ss:$28 sps:$4 sm:$0xff]  }
 0x33d   :  { %8022 = vmatpush3.bf16.msra.mxu0 %v9237_v1  ;;  %6329 = vmatprep.mubr.bf16.mxu0 %v9922_v35  ;;  %v9256_v35 = vld [vmem:[#allocation8 + $0x2b8] ss:$28 sps:$4 sm:$0xff]  }
 0x33e   :  { %6135 = vmatprep.subr.bf16.mxu1 %v9240_v2  ;;  %8023 = vmatprep.subr.bf16.mxu0 %v9241_v4  ;;  %v9297_v1 = vld [vmem:[#allocation8 + $0x478] ss:$28 sps:$4 sm:$0xff]   ;;  %v9300_v2 = vld [vmem:[#allocation8 + $0x2ec] ss:$28 sps:$4 sm:$0xff]  }
 0x33f   :  { %v9301_v4 = vld [vmem:[#allocation8 + $0x670] ss:$28 sps:$4 sm:$0xff]  }
 0x340   :  { %6136 = vmatpush1.bf16.msra.mxu1 %v9238_v18  ;;  %v9298_v18 = vld [vmem:[#allocation8 + $0x2e8] ss:$28 sps:$4 sm:$0xff]  }
 0x341   :  { %8024 = vmatpush3.bf16.msra.mxu0 %v9242_v8  ;;  %6137 = vmatprep.subr.bf16.mxu1 %v9245_v11  ;;  %v9302_v8 = vld [vmem:[#allocation8 + $0x4b0] ss:$28 sps:$4 sm:$0xff]   ;;  %v9305_v11 = vld [vmem:[#allocation8 + $0x324] ss:$28 sps:$4 sm:$0xff]  }
 0x342   :  { %8025 = vmatprep.subr.bf16.mxu0 %v9246_v21  ;;  %v9306_v21 = vld [vmem:[#allocation8 + $0x6a8] ss:$28 sps:$4 sm:$0xff]  }
 0x344   :  { %6138 = vmatpush1.bf16.msra.mxu1 %v9243_v12  ;;  %v9303_v12 = vld [vmem:[#allocation8 + $0x320] ss:$28 sps:$4 sm:$0xff]  }
 0x345   :  { %8026 = vmatpush3.bf16.msra.mxu0 %v9247_v15  ;;  %6139 = vmatprep.subr.bf16.mxu1 %v9250_v14  ;;  %v9307_v15 = vld [vmem:[#allocation8 + $0x4e8] ss:$28 sps:$4 sm:$0xff]   ;;  %v9310_v14 = vld [vmem:[#allocation8 + $0x35c] ss:$28 sps:$4 sm:$0xff]  }
 0x346   :  { %8027 = vmatprep.subr.bf16.mxu0 %v9251_v30  ;;  %v9311_v30 = vld [vmem:[#allocation8 + $0x6e0] ss:$28 sps:$4 sm:$0xff]  }
 0x348   :  { %6140 = vmatpush1.bf16.msra.mxu1 %v9248_v16  ;;  %v9308_v16 = vld [vmem:[#allocation8 + $0x358] ss:$28 sps:$4 sm:$0xff]  }
 0x349   :  { %8028 = vmatpush3.bf16.msra.mxu0 %v9252_v17  ;;  %6141 = vmatprep.subr.bf16.mxu1 %v9255_v20  ;;  %v9312_v17 = vld [vmem:[#allocation8 + $0x520] ss:$28 sps:$4 sm:$0xff]   ;;  %v9315_v20 = vld [vmem:[#allocation8 + $0x394] ss:$28 sps:$4 sm:$0xff]  }
 0x34a   :  { %8029 = vmatprep.subr.bf16.mxu0 %v9256_v35  ;;  %v9316_v35 = vld [vmem:[#allocation8 + $0x8d8] ss:$28 sps:$4 sm:$0xff]  }
 0x34c   :  { %6142 = vmatpush1.bf16.msra.mxu1 %v9253_v23  ;;  %v9313_v23 = vld [vmem:[#allocation8 + $0x390] ss:$28 sps:$4 sm:$0xff]  }
 0x34d   :  { %8030 = vmatpush3.bf16.msra.mxu0 %v9257_v24  ;;  %6143 = vmatprep.subr.bf16.mxu1 %v9260_v13  ;;  %v9317_v24 = vld [vmem:[#allocation8 + $0x718] ss:$28 sps:$4 sm:$0xff]   ;;  %v9320_v13 = vld [vmem:[#allocation8 + $0x3cc] ss:$28 sps:$4 sm:$0xff]  }
 0x34e   :  { %8031 = vmatprep.subr.bf16.mxu0 %v9261_v26  ;;  %v9321_v26 = vld [vmem:[#allocation8 + $0x910] ss:$28 sps:$4 sm:$0xff]  }
 0x350   :  { %6144 = vmatpush1.bf16.msra.mxu1 %v9258_v28  ;;  %v9318_v28 = vld [vmem:[#allocation8 + $0x3c8] ss:$28 sps:$4 sm:$0xff]  }
 0x351   :  { %8032 = vmatpush3.bf16.msra.mxu0 %v9262_v29  ;;  %6145 = vmatprep.subr.bf16.mxu1 %v9265_v31  ;;  %v9322_v29 = vld [vmem:[#allocation8 + $0x750] ss:$28 sps:$4 sm:$0xff]   ;;  %v9325_v31 = vld [vmem:[#allocation8 + $0x404] ss:$28 sps:$4 sm:$0xff]  }
 0x352   :  { %8033 = vmatprep.subr.bf16.mxu0 %v9266_v32  ;;  %v9326_v32 = vld [vmem:[#allocation8 + $0x948] ss:$28 sps:$4 sm:$0xff]  }
 0x354   :  { %6146 = vmatpush1.bf16.msra.mxu1 %v9263_v34  ;;  %v9323_v34 = vld [vmem:[#allocation8 + $0x400] ss:$28 sps:$4 sm:$0xff]  }
 0x355   :  { %8034 = vmatpush3.bf16.msra.mxu0 %v9267_v36  ;;  %6147 = vmatprep.subr.bf16.mxu1 %v9270_v39  ;;  %v9330_v36 = vld [vmem:[#allocation8 + $0x43c] ss:$28 sps:$4 sm:$0xff]  }
 0x356   :  { %8035 = vmatprep.subr.bf16.mxu0 %v9271_v40  ;;  %v9331_v39 = vld [vmem:[#allocation8 + $0x980] ss:$28 sps:$4 sm:$0xff]   ;;  %v9328_v40 = vld [vmem:[#allocation8 + $0x438] ss:$28 sps:$4 sm:$0xff]  }
 0x358   :  { %6148 = vmatpush1.bf16.msra.mxu1 %v9268_v41  ;;  %v9335_v41 = vld [vmem:[#allocation8 + $0x474] ss:$28 sps:$4 sm:$0xff]  }
 0x359   :  { %8036 = vmatpush3.bf16.msra.mxu0 %v9272_v44  ;;  %6149 = vmatprep.subr.bf16.mxu1 %v9275_v45  ;;  %v9336_v44 = vld [vmem:[#allocation8 + $0x9b8] ss:$28 sps:$4 sm:$0xff]   ;;  %v9333_v45 = vld [vmem:[#allocation8 + $0x470] ss:$28 sps:$4 sm:$0xff]  }
 0x35a   :  { %8043 = vmatprep.subr.bf16.mxu0 %v9276_v46  ;;  %v9337_v46 = vld [vmem:[#allocation8 + $0x7f8] ss:$28 sps:$4 sm:$0xff]  }
 0x35c   :  { %6330 = vmatmul.mubr.bf16.vlgmr.msra.gmra.mrb[12].mxu0 %v9924_v37  ;;  %6150 = vmatpush1.bf16.msra.mxu1 %v9273_v47  ;;  %v9340_v47 = vld [vmem:[#allocation8 + $0x4ac] ss:$28 sps:$4 sm:$0xff]  }
 0x35d   :  { %8044 = vmatpush3.bf16.msra.mxu0 %v9277_v49  ;;  %6369 = vmatprep.mubr.bf16.mxu0 %v9926_v38  ;;  %v9341_v49 = vld [vmem:[#allocation8 + $0x9f0] ss:$28 sps:$4 sm:$0xff]  }
 0x35e   :  { %6151 = vmatprep.subr.bf16.mxu1 %v9280_v50  ;;  %8045 = vmatprep.subr.bf16.mxu0 %v9281_v51  ;;  %v9338_v50 = vld [vmem:[#allocation8 + $0x4a8] ss:$28 sps:$4 sm:$0xff]   ;;  %v9342_v51 = vld [vmem:[#allocation8 + $0x830] ss:$28 sps:$4 sm:$0xff]  }
 0x360   :  { %6152 = vmatpush1.bf16.msra.mxu1 %v9278_v52  ;;  %v9345_v52 = vld [vmem:[#allocation8 + $0x4e4] ss:$28 sps:$4 sm:$0xff]  }
 0x361   :  { %8046 = vmatpush3.bf16.msra.mxu0 %v9282_v53  ;;  %6153 = vmatprep.subr.bf16.mxu1 %v9285_v54  ;;  %v9346_v53 = vld [vmem:[#allocation8 + $0xa28] ss:$28 sps:$4 sm:$0xff]   ;;  %v9343_v54 = vld [vmem:[#allocation8 + $0x4e0] ss:$28 sps:$4 sm:$0xff]  }
 0x362   :  { %8047 = vmatprep.subr.bf16.mxu0 %v9286_v0  ;;  %v9347_v0 = vld [vmem:[#allocation8 + $0x868] ss:$28 sps:$4 sm:$0xff]  }
 0x364   :  { %6154 = vmatpush1.bf16.msra.mxu1 %v9283_v55  ;;  %v9350_v55 = vld [vmem:[#allocation8 + $0x51c] ss:$28 sps:$4 sm:$0xff]  }
 0x365   :  { %8048 = vmatpush3.bf16.msra.mxu0 %v9287_v56  ;;  %6155 = vmatprep.subr.bf16.mxu1 %v9290_v57  ;;  %v9351_v56 = vld [vmem:[#allocation8 + $0xa60] ss:$28 sps:$4 sm:$0xff]   ;;  %v9348_v57 = vld [vmem:[#allocation8 + $0x518] ss:$28 sps:$4 sm:$0xff]  }
 0x366   :  { %8049 = vmatprep.subr.bf16.mxu0 %v9291_v58  ;;  %v9352_v58 = vld [vmem:[#allocation8 + $0x8a0] ss:$28 sps:$4 sm:$0xff]  }
 0x368   :  { %6156 = vmatpush1.bf16.msra.mxu1 %v9288_v59  ;;  %v9355_v59 = vld [vmem:[#allocation8 + $0x554] ss:$28 sps:$4 sm:$0xff]  }
 0x369   :  { %8050 = vmatpush3.bf16.msra.mxu0 %v9292_v60  ;;  %6157 = vmatprep.subr.bf16.mxu1 %v9295_v5  ;;  %v9353_v60 = vld [vmem:[#allocation8 + $0x550] ss:$28 sps:$4 sm:$0xff]   ;;  %v9356_v5 = vld [vmem:[#allocation8 + $0xa98] ss:$28 sps:$4 sm:$0xff]  }
 0x36a   :  { %8051 = vmatprep.subr.bf16.mxu0 %v9296_v61  ;;  %v9359_v61 = vld [vmem:[#allocation8 + $0x58c] ss:$28 sps:$4 sm:$0xff]  }
 0x36c   :  { %6158 = vmatpush1.bf16.msra.mxu1 %v9293_v62  ;;  %v9357_v62 = vld [vmem:[#allocation8 + $0x588] ss:$28 sps:$4 sm:$0xff]  }
 0x36d   :  { %8052 = vmatpush3.bf16.msra.mxu0 %v9297_v1  ;;  %6159 = vmatprep.subr.bf16.mxu1 %v9300_v2  ;;  %v9360_v1 = vld [vmem:[#allocation8 + $0xad0] ss:$28 sps:$4 sm:$0xff]   ;;  %v9363_v2 = vld [vmem:[#allocation8 + $0x5c4] ss:$28 sps:$4 sm:$0xff]  }
 0x36e   :  { %8053 = vmatprep.subr.bf16.mxu0 %v9301_v4  ;;  %v9361_v4 = vld [vmem:[#allocation8 + $0x5c0] ss:$28 sps:$4 sm:$0xff]  }
 0x370   :  { %6160 = vmatpush1.bf16.msra.mxu1 %v9298_v18  ;;  %v9364_v18 = vld [vmem:[#allocation8 + $0xb08] ss:$28 sps:$4 sm:$0xff]  }
 0x371   :  { %8054 = vmatpush3.bf16.msra.mxu0 %v9302_v8  ;;  %6161 = vmatprep.subr.bf16.mxu1 %v9305_v11  ;;  %v9367_v8 = vld [vmem:[#allocation8 + $0x5fc] ss:$28 sps:$4 sm:$0xff]  }
 0x372   :  { %8055 = vmatprep.subr.bf16.mxu0 %v9306_v21  ;;  %v9365_v11 = vld [vmem:[#allocation8 + $0x5f8] ss:$28 sps:$4 sm:$0xff]   ;;  %v9368_v21 = vld [vmem:[#allocation8 + $0xb40] ss:$28 sps:$4 sm:$0xff]  }
 0x374   :  { %6162 = vmatpush1.bf16.msra.mxu1 %v9303_v12  ;;  %v9371_v12 = vld [vmem:[#allocation8 + $0x634] ss:$28 sps:$4 sm:$0xff]  }
 0x375   :  { %8056 = vmatpush3.bf16.msra.mxu0 %v9307_v15  ;;  %6163 = vmatprep.subr.bf16.mxu1 %v9310_v14  ;;  %v9369_v15 = vld [vmem:[#allocation8 + $0x630] ss:$28 sps:$4 sm:$0xff]   ;;  %v9372_v14 = vld [vmem:[#allocation8 + $0xb78] ss:$28 sps:$4 sm:$0xff]  }
 0x376   :  { %8057 = vmatprep.subr.bf16.mxu0 %v9311_v30  ;;  %v9375_v30 = vld [vmem:[#allocation8 + $0x66c] ss:$28 sps:$4 sm:$0xff]  }
 0x378   :  { %6164 = vmatpush1.bf16.msra.mxu1 %v9308_v16  ;;  %v9373_v16 = vld [vmem:[#allocation8 + $0x668] ss:$28 sps:$4 sm:$0xff]  }
 0x379   :  { %8058 = vmatpush3.bf16.msra.mxu0 %v9312_v17  ;;  %6174 = vmatprep.subr.bf16.mxu1 %v9315_v20  ;;  %v9376_v17 = vld [vmem:[#allocation8 + $0xbb0] ss:$28 sps:$4 sm:$0xff]   ;;  %v9379_v20 = vld [vmem:[#allocation8 + $0x6a4] ss:$28 sps:$4 sm:$0xff]  }
 0x37a   :  { %8065 = vmatprep.subr.bf16.mxu0 %v9316_v35  ;;  %v9377_v35 = vld [vmem:[#allocation8 + $0x6a0] ss:$28 sps:$4 sm:$0xff]  }
 0x37b   :  { %6166 = vmatmul.mubr.bf16.vlgmr.msra.gmra.mrb[24].mxu1 %v9924_v37  ;;  %v9327_v37 = vld [vmem:[#allocation8 + $0x788] ss:$28 sps:$4 sm:$0xff]  }
 0x37c   :  { %6370 = vmatmul.mubr.bf16.vlgmr.msra.gmra.mrb[16].mxu0 %v9947_v3  ;;  %6175 = vmatpush1.bf16.msra.mxu1 %v9313_v23  ;;  %v9380_v23 = vld [vmem:[#allocation8 + $0xbe8] ss:$28 sps:$4 sm:$0xff]  }
 0x37d   :  { %6206 = vmatprep.mubr.bf16.mxu1 %v9926_v38  ;;  %8066 = vmatpush3.bf16.msra.mxu0 %v9317_v24  ;;  %v9332_v38 = vld [vmem:[#allocation8 + $0x7c0] ss:$28 sps:$4 sm:$0xff]  }
 0x37e   :  { %6409 = vmatprep.mubr.bf16.mxu0 %v9962_v22  ;;  %6176 = vmatprep.subr.bf16.mxu1 %v9320_v13  ;;  %v9383_v24 = vld [vmem:[#allocation8 + $0x6dc] ss:$28 sps:$4 sm:$0xff]  }
 0x37f   :  { %8067 = vmatprep.subr.bf16.mxu0 %v9321_v26  ;;  %v9381_v13 = vld [vmem:[#allocation8 + $0x6d8] ss:$28 sps:$4 sm:$0xff]   ;;  %v9384_v26 = vld [vmem:[#allocation8 + $0xc20] ss:$28 sps:$4 sm:$0xff]  }
 0x380   :  { %6177 = vmatpush1.bf16.msra.mxu1 %v9318_v28  ;;  %v9387_v28 = vld [vmem:[#allocation8 + $0x714] ss:$28 sps:$4 sm:$0xff]  }
 0x381   :  { %8068 = vmatpush3.bf16.msra.mxu0 %v9322_v29  ;;  %6178 = vmatprep.subr.bf16.mxu1 %v9325_v31  ;;  %v9430_v29 = vld [vmem:[#allocation11 + $0x40] sm:$0xff]  }
 0x382   :  { %8069 = vmatprep.subr.bf16.mxu0 %v9326_v32  ;;  %v9385_v31 = vld [vmem:[#allocation8 + $0x710] ss:$28 sps:$4 sm:$0xff]  }
 0x383   :  { %v9390_v32 = vld [vmem:[#allocation8 + $0x74c] ss:$28 sps:$4 sm:$0xff]  }
 0x384   :  { %6179 = vmatpush1.bf16.msra.mxu1 %v9323_v34  ;;  %v9431_v34 = vld [vmem:[#allocation11] sm:$0xff]  }
 0x385   :  { %8070 = vmatpush3.bf16.msra.mxu0 %v9327_v37  ;;  %6180 = vmatprep.subr.bf16.mxu1 %v9330_v36  ;;  %v9435_v37 = vld [vmem:[#allocation11 + $0x48] sm:$0xff]   ;;  %v9388_v36 = vld [vmem:[#allocation8 + $0x748] ss:$28 sps:$4 sm:$0xff]  }
 0x386   :  { %8071 = vmatprep.subr.bf16.mxu0 %v9331_v39  ;;  %v9393_v39 = vld [vmem:[#allocation8 + $0x784] ss:$28 sps:$4 sm:$0xff]  }
 0x388   :  { %6181 = vmatpush1.bf16.msra.mxu1 %v9328_v40  ;;  %v9436_v40 = vld [vmem:[#allocation11 + $0x8] sm:$0xff]  }
 0x389   :  { %8072 = vmatpush3.bf16.msra.mxu0 %v9332_v38  ;;  %6182 = vmatprep.subr.bf16.mxu1 %v9335_v41  ;;  %v9440_v38 = vld [vmem:[#allocation11 + $0x50] sm:$0xff]  }
 0x38a   :  { %8073 = vmatprep.subr.bf16.mxu0 %v9336_v44  ;;  %v9391_v41 = vld [vmem:[#allocation8 + $0x780] ss:$28 sps:$4 sm:$0xff]  }
 0x38b   :  { %v9396_v44 = vld [vmem:[#allocation8 + $0x7bc] ss:$28 sps:$4 sm:$0xff]  }
 0x38c   :  { %6183 = vmatpush1.bf16.msra.mxu1 %v9333_v45  ;;  %v9441_v45 = vld [vmem:[#allocation11 + $0x10] sm:$0xff]  }
 0x38d   :  { %8074 = vmatpush3.bf16.msra.mxu0 %v9337_v46  ;;  %6184 = vmatprep.subr.bf16.mxu1 %v9340_v47  ;;  %v9394_v46 = vld [vmem:[#allocation8 + $0x7b8] ss:$28 sps:$4 sm:$0xff]  }
 0x38e   :  { %8075 = vmatprep.subr.bf16.mxu0 %v9341_v49  ;;  %v9399_v47 = vld [vmem:[#allocation8 + $0x7f4] ss:$28 sps:$4 sm:$0xff]   ;;  %v9450_v49 = vld [vmem:[#allocation11 + $0x60] sm:$0xff]  }
 0x390   :  { %6185 = vmatpush1.bf16.msra.mxu1 %v9338_v50  ;;  %v9397_v50 = vld [vmem:[#allocation8 + $0x7f0] ss:$28 sps:$4 sm:$0xff]  }
 0x391   :  { %8076 = vmatpush3.bf16.msra.mxu0 %v9342_v51  ;;  %6186 = vmatprep.subr.bf16.mxu1 %v9345_v52  ;;  %v9402_v51 = vld [vmem:[#allocation8 + $0x82c] ss:$28 sps:$4 sm:$0xff]  }
 0x392   :  { %8077 = vmatprep.subr.bf16.mxu0 %v9346_v53  ;;  %v9451_v52 = vld [vmem:[#allocation11 + $0x20] sm:$0xff]   ;;  %v9455_v53 = vld [vmem:[#allocation11 + $0x68] sm:$0xff]  }
 0x394   :  { %6187 = vmatpush1.bf16.msra.mxu1 %v9343_v54  ;;  %v9400_v54 = vld [vmem:[#allocation8 + $0x828] ss:$28 sps:$4 sm:$0xff]  }
 0x395   :  { %8078 = vmatpush3.bf16.msra.mxu0 %v9347_v0  ;;  %6188 = vmatprep.subr.bf16.mxu1 %v9350_v55  ;;  %v9405_v0 = vld [vmem:[#allocation8 + $0x864] ss:$28 sps:$4 sm:$0xff]   ;;  %v9456_v55 = vld [vmem:[#allocation11 + $0x28] sm:$0xff]  }
 0x396   :  { %8079 = vmatprep.subr.bf16.mxu0 %v9351_v56  ;;  %v9460_v56 = vld [vmem:[#allocation11 + $0x70] sm:$0xff]  }
 0x398   :  { %6189 = vmatpush1.bf16.msra.mxu1 %v9348_v57  ;;  %v9403_v57 = vld [vmem:[#allocation8 + $0x860] ss:$28 sps:$4 sm:$0xff]  }
 0x399   :  { %8080 = vmatpush3.bf16.msra.mxu0 %v9352_v58  ;;  %6190 = vmatprep.subr.bf16.mxu1 %v9355_v59  ;;  %v9408_v58 = vld [vmem:[#allocation8 + $0x89c] ss:$28 sps:$4 sm:$0xff]  }
 0x39a   :  { %8191 = vmatprep.subr.bf16.mxu0 %v9713_v33  ;;  %v9461_v59 = vld [vmem:[#allocation11 + $0x30] sm:$0xff]  }
 0x39c   :  { %6410 = vmatmul.mubr.bf16.vlgmr.msra.gmra.mrb[20].mxu0 %v9964_v25  ;;  %6191 = vmatpush1.bf16.msra.mxu1 %v9353_v60  ;;  %v9465_v60 = vld [vmem:[#allocation11 + $0x78] sm:$0xff]  }
 0x39d   :  { %8192 = vmatpush3.bf16.msra.mxu0 %v9356_v5  ;;  %6192 = vmatprep.subr.bf16.mxu1 %v9359_v61  ;;  %v9406_v5 = vld [vmem:[#allocation8 + $0x898] ss:$28 sps:$4 sm:$0xff]  }
 0x39e   :  { %8193 = vmatprep.subr.bf16.mxu0 %v9713_v33  ;;  %8207 = vmatprep.mubr.msk.bf16.mxu0 %vm9714_vm0, %v9713_v33  ;;  %v9411_v61 = vld [vmem:[#allocation8 + $0x8d4] ss:$28 sps:$4 sm:$0xff]  }
 0x3a0   :  { %6193 = vmatpush1.bf16.msra.mxu1 %v9357_v62  ;;  %v9466_v62 = vld [vmem:[#allocation11 + $0x38] sm:$0xff]  }
 0x3a1   :  { %8194 = vmatpush3.bf16.msra.mxu0 %v9360_v1  ;;  %6194 = vmatprep.subr.bf16.mxu1 %v9363_v2  ;;  %v9409_v1 = vld [vmem:[#allocation8 + $0x8d0] ss:$28 sps:$4 sm:$0xff]  }
 0x3a2   :  { %8195 = vmatprep.subr.bf16.mxu0 %v9713_v33  ;;  %v9414_v2 = vld [vmem:[#allocation8 + $0x90c] ss:$28 sps:$4 sm:$0xff]  }
 0x3a4   :  { %6195 = vmatpush1.bf16.msra.mxu1 %v9361_v4  ;;  %v9412_v4 = vld [vmem:[#allocation8 + $0x908] ss:$28 sps:$4 sm:$0xff]  }
 0x3a5   :  { %8196 = vmatpush3.bf16.msra.mxu0 %v9364_v18  ;;  %6196 = vmatprep.subr.bf16.mxu1 %v9367_v8  ;;  %v9417_v18 = vld [vmem:[#allocation8 + $0x944] ss:$28 sps:$4 sm:$0xff]  }
 0x3a6   :  { %8197 = vmatprep.subr.bf16.mxu0 %v9713_v33  ;;  %v9415_v8 = vld [vmem:[#allocation8 + $0x940] ss:$28 sps:$4 sm:$0xff]  }
 0x3a8   :  { %6197 = vmatpush1.bf16.msra.mxu1 %v9365_v11  ;;  %v9420_v11 = vld [vmem:[#allocation8 + $0x97c] ss:$28 sps:$4 sm:$0xff]  }
 0x3a9   :  { %8198 = vmatpush3.bf16.msra.mxu0 %v9368_v21  ;;  %6198 = vmatprep.subr.bf16.mxu1 %v9371_v12  ;;  %v9418_v21 = vld [vmem:[#allocation8 + $0x978] ss:$28 sps:$4 sm:$0xff]  }
 0x3aa   :  { %8199 = vmatprep.subr.bf16.mxu0 %v9713_v33  ;;  %v9423_v12 = vld [vmem:[#allocation8 + $0x9b4] ss:$28 sps:$4 sm:$0xff]  }
 0x3ac   :  { %6199 = vmatpush1.bf16.msra.mxu1 %v9369_v15  ;;  %v9421_v15 = vld [vmem:[#allocation8 + $0x9b0] ss:$28 sps:$4 sm:$0xff]  }
 0x3ad   :  { %8200 = vmatpush3.bf16.msra.mxu0 %v9372_v14  ;;  %6200 = vmatprep.subr.bf16.mxu1 %v9375_v30  ;;  %v9426_v14 = vld [vmem:[#allocation8 + $0x9ec] ss:$28 sps:$4 sm:$0xff]  }
 0x3ae   :  { %8201 = vmatprep.subr.bf16.mxu0 %v9713_v33  ;;  %v9424_v30 = vld [vmem:[#allocation8 + $0x9e8] ss:$28 sps:$4 sm:$0xff]  }
 0x3b0   :  { %6201 = vmatpush1.bf16.msra.mxu1 %v9373_v16  ;;  %v9429_v16 = vld [vmem:[#allocation8 + $0xa24] ss:$28 sps:$4 sm:$0xff]  }
 0x3b1   :  { %8202 = vmatpush3.bf16.msra.mxu0 %v9376_v17  ;;  %6202 = vmatprep.subr.bf16.mxu1 %v9379_v20  ;;  %v9427_v17 = vld [vmem:[#allocation8 + $0xa20] ss:$28 sps:$4 sm:$0xff]  }
 0x3b2   :  { %8203 = vmatprep.subr.bf16.mxu0 %v9713_v33  ;;  %v9434_v20 = vld [vmem:[#allocation8 + $0xa5c] ss:$28 sps:$4 sm:$0xff]  }
 0x3b4   :  { %6203 = vmatpush1.bf16.msra.mxu1 %v9377_v35  ;;  %v9432_v35 = vld [vmem:[#allocation8 + $0xa58] ss:$28 sps:$4 sm:$0xff]  }
 0x3b5   :  { %8204 = vmatpush3.bf16.msra.mxu0 %v9380_v23  ;;  %6204 = vmatprep.subr.bf16.mxu1 %v9383_v24  ;;  %v9439_v23 = vld [vmem:[#allocation8 + $0xa94] ss:$28 sps:$4 sm:$0xff]  }
 0x3b6   :  { %8205 = vmatprep.subr.bf16.mxu0 %v9713_v33  ;;  %v9437_v24 = vld [vmem:[#allocation8 + $0xa90] ss:$28 sps:$4 sm:$0xff]  }
 0x3b8   :  { %6205 = vmatpush1.bf16.msra.mxu1 %v9381_v13  ;;  %v9444_v13 = vld [vmem:[#allocation8 + $0xacc] ss:$28 sps:$4 sm:$0xff]  }
 0x3b9   :  { %8206 = vmatpush3.bf16.msra.mxu0 %v9384_v26  ;;  %6215 = vmatprep.subr.bf16.mxu1 %v9387_v28  ;;  %v9442_v26 = vld [vmem:[#allocation8 + $0xac8] ss:$28 sps:$4 sm:$0xff]  }
 0x3ba   :  { %8096 = vmatprep.subr.bf16.mxu0 %v9430_v29  ;;  %v9449_v28 = vld [vmem:[#allocation8 + $0xb04] ss:$28 sps:$4 sm:$0xff]  }
 0x3bb   :  { %6207 = vmatmul.mubr.bf16.vlgmr.msra.gmra.mrb[24].mxu1 %v9947_v3  ;;  %v9445_v3 = vld [vmem:[#allocation11 + $0x58] sm:$0xff]  }
 0x3bc   :  { %8208 = vmatmul.mubr.bf16.vlgmr.msra.gmra.mrb[24].mxu0 %v9974_v63  ;;  %6216 = vmatpush1.bf16.msra.mxu1 %v9385_v31  ;;  %v9447_v29 = vld [vmem:[#allocation8 + $0xb00] ss:$28 sps:$4 sm:$0xff]  }
 0x3bd   :  { %6247 = vmatprep.mubr.bf16.mxu1 %v9962_v22  ;;  %6217 = vmatprep.subr.bf16.mxu1 %v9390_v32  ;;  %v9446_v22 = vld [vmem:[#allocation11 + $0x18] sm:$0xff]   ;;  %v9454_v31 = vld [vmem:[#allocation8 + $0xb3c] ss:$28 sps:$4 sm:$0xff]  }
 0x3be   :  { %8097 = vmatpush3.bf16.msra.mxu0 %v9431_v34  ;;  %v9452_v32 = vld [vmem:[#allocation8 + $0xb38] ss:$28 sps:$4 sm:$0xff]  }
 0x3bf   :  { %8098 = vmatprep.subr.bf16.mxu0 %v9435_v37  ;;  %v9459_v34 = vld [vmem:[#allocation8 + $0xb74] ss:$28 sps:$4 sm:$0xff]  }
 0x3c0   :  { %6218 = vmatpush1.bf16.msra.mxu1 %v9388_v36  ;;  %v9457_v37 = vld [vmem:[#allocation8 + $0xb70] ss:$28 sps:$4 sm:$0xff]   ;;  %v10002_v36 = vld [vmem:[#allocation10] sm:$0xff] }
 0x3c1   :  { %6219 = vmatprep.subr.bf16.mxu1 %v9393_v39  ;;  %v3761_v39 = vrot.slane %v10002_v36, %v575_v48  ;;  %v3769_v48 = vrot.slane %v10002_v36, %v583_v9  ;;  %v9501_v9 = vld [vmem:[#allocation11 + $0x150] sm:$0xff]  }
 0x3c2   :  { %8099 = vmatpush3.bf16.msra.mxu0 %v9436_v40  ;;  %v9462_v40 = vld [vmem:[#allocation8 + $0xba8] ss:$28 sps:$4 sm:$0xff]  }
 0x3c3   :  { %8100 = vmatprep.subr.bf16.mxu0 %v9440_v38  ;;  %v9469_v38 = vld [vmem:[#allocation8 + $0xbe4] ss:$28 sps:$4 sm:$0xff]  }
 0x3c4   :  { %6220 = vmatpush1.bf16.msra.mxu1 %v9391_v41 }
 0x3c5   :  { %6221 = vmatprep.subr.bf16.mxu1 %v9396_v44 }
 0x3c6   :  { %8101 = vmatpush3.bf16.msra.mxu0 %v9441_v45 }
 0x3c7   :  { %8102 = vmatprep.subr.bf16.mxu0 %v9445_v3 }
 0x3c8   :  { %6222 = vmatpush1.bf16.msra.mxu1 %v9394_v46 }
 0x3c9   :  { %6223 = vmatprep.subr.bf16.mxu1 %v9399_v47 }
 0x3ca   :  { %8103 = vmatpush3.bf16.msra.mxu0 %v9446_v22 }
 0x3cb   :  { %8104 = vmatprep.subr.bf16.mxu0 %v9450_v49 }
 0x3cc   :  { %6224 = vmatpush1.bf16.msra.mxu1 %v9397_v50  ;;  %v9467_v50 = vld [vmem:[#allocation8 + $0xbe0] ss:$28 sps:$4 sm:$0xff]  }
 0x3cd   :  { %6225 = vmatprep.subr.bf16.mxu1 %v9402_v51 }
 0x3ce   :  { %8105 = vmatpush3.bf16.msra.mxu0 %v9451_v52  ;;  %v9472_v52 = vld [vmem:[#allocation8 + $0xc1c] ss:$28 sps:$4 sm:$0xff]  }
 0x3cf   :  { %8106 = vmatprep.subr.bf16.mxu0 %v9455_v53 }
 0x3d0   :  { %6226 = vmatpush1.bf16.msra.mxu1 %v9400_v54 }
 0x3d1   :  { %6227 = vmatprep.subr.bf16.mxu1 %v9405_v0  ;;  %v9470_v0 = vld [vmem:[#allocation8 + $0xc18] ss:$28 sps:$4 sm:$0xff]  }
 0x3d2   :  { %8107 = vmatpush3.bf16.msra.mxu0 %v9456_v55  ;;  %v9497_v55 = vld [vmem:[#allocation11 + $0x140] sm:$0xff]  }
 0x3d3   :  { %8108 = vmatprep.subr.bf16.mxu0 %v9460_v56  ;;  %v9498_v56 = vld [vmem:[#allocation11 + $0x100] sm:$0xff]  }
 0x3d4   :  { %6228 = vmatpush1.bf16.msra.mxu1 %v9403_v57  ;;  %v9499_v57 = vld [vmem:[#allocation11 + $0x148] sm:$0xff]  }
 0x3d5   :  { %6229 = vmatprep.subr.bf16.mxu1 %v9408_v58  ;;  %v9473_v58 = vld [vmem:[#allocation11 + $0xc0] sm:$0xff]  }
 0x3d6   :  { %8109 = vmatpush3.bf16.msra.mxu0 %v9461_v59 }
 0x3d7   :  { %8110 = vmatprep.subr.bf16.mxu0 %v9465_v60  ;;  %v9500_v60 = vld [vmem:[#allocation11 + $0x108] sm:$0xff]  }
 0x3d8   :  { %6230 = vmatpush1.bf16.msra.mxu1 %v9406_v5  ;;  %v9474_v5 = vld [vmem:[#allocation11 + $0x80] sm:$0xff]  }
 0x3d9   :  { %6231 = vmatprep.subr.bf16.mxu1 %v9411_v61  ;;  %v9475_v61 = vld [vmem:[#allocation11 + $0xc8] sm:$0xff]  }
 0x3da   :  { %8111 = vmatpush3.bf16.msra.mxu0 %v9466_v62 }
 0x3db   :  { %8140 = vmatprep.subr.bf16.mxu0 %v9497_v55 }
 0x3dc   :  { %6232 = vmatpush1.bf16.msra.mxu1 %v9409_v1  ;;  %v9502_v1 = vld [vmem:[#allocation11 + $0x110] sm:$0xff]  }
 0x3dd   :  { %6233 = vmatprep.subr.bf16.mxu1 %v9414_v2  ;;  %v9476_v2 = vld [vmem:[#allocation11 + $0x88] sm:$0xff]  }
 0x3e0   :  { %6234 = vmatpush1.bf16.msra.mxu1 %v9412_v4  ;;  %v9503_v4 = vld [vmem:[#allocation11 + $0x158] sm:$0xff]  }
 0x3e1   :  { %6235 = vmatprep.subr.bf16.mxu1 %v9417_v18  ;;  %v9477_v18 = vld [vmem:[#allocation11 + $0xd0] sm:$0xff]  }
 0x3e4   :  { %6236 = vmatpush1.bf16.msra.mxu1 %v9415_v8  ;;  %v9504_v8 = vld [vmem:[#allocation11 + $0x118] sm:$0xff]  }
 0x3e5   :  { %6237 = vmatprep.subr.bf16.mxu1 %v9420_v11  ;;  %v9478_v11 = vld [vmem:[#allocation11 + $0x90] sm:$0xff]  }
 0x3e8   :  { %6238 = vmatpush1.bf16.msra.mxu1 %v9418_v21  ;;  %v9505_v21 = vld [vmem:[#allocation11 + $0x160] sm:$0xff]  }
 0x3e9   :  { %6239 = vmatprep.subr.bf16.mxu1 %v9423_v12  ;;  %v9479_v12 = vld [vmem:[#allocation11 + $0xd8] sm:$0xff]  }
 0x3ec   :  { %6240 = vmatpush1.bf16.msra.mxu1 %v9421_v15  ;;  %v9506_v15 = vld [vmem:[#allocation11 + $0x120] sm:$0xff]  }
 0x3ed   :  { %6241 = vmatprep.subr.bf16.mxu1 %v9426_v14  ;;  %v9481_v14 = vld [vmem:[#allocation11 + $0xe0] sm:$0xff]  }
 0x3f0   :  { %6242 = vmatpush1.bf16.msra.mxu1 %v9424_v30  ;;  %v9482_v30 = vld [vmem:[#allocation11 + $0xa0] sm:$0xff]  }
 0x3f1   :  { %6243 = vmatprep.subr.bf16.mxu1 %v9429_v16  ;;  %v9483_v16 = vld [vmem:[#allocation11 + $0xe8] sm:$0xff]  }
 0x3f4   :  { %6244 = vmatpush1.bf16.msra.mxu1 %v9427_v17  ;;  %v9484_v17 = vld [vmem:[#allocation11 + $0xa8] sm:$0xff]  }
 0x3f5   :  { %6245 = vmatprep.subr.bf16.mxu1 %v9434_v20  ;;  %v9485_v20 = vld [vmem:[#allocation11 + $0xf0] sm:$0xff]  }
 0x3f8   :  { %6246 = vmatpush1.bf16.msra.mxu1 %v9432_v35 }
 0x3f9   :  { %6256 = vmatprep.subr.bf16.mxu1 %v9439_v23 }
 0x3fb   :  { %6248 = vmatmul.mubr.bf16.vlgmr.msra.gmra.mrb[24].mxu1 %v9964_v25  ;;  %v9464_v25 = vld [vmem:[#allocation8 + $0xbac] ss:$28 sps:$4 sm:$0xff]  }
 0x3fc   :  { %6257 = vmatpush1.bf16.msra.mxu1 %v9437_v24  ;;  %6288 = vmatprep.mubr.bf16.mxu1 %v9712_v27  ;;  %v3757_v27 = vrot.slane %v10002_v36, %v571_v19  ;;  %v9486_v24 = vld [vmem:[#allocation11 + $0xb0] sm:$0xff]  }
 0x3fd   :  { %6258 = vmatprep.subr.bf16.mxu1 %v9444_v13  ;;  %v3765_v13 = vrot.slane %v10002_v36, %v579_v42  ;;  %v9491_v42 = vld [vmem:[#allocation11 + $0x190] sm:$0xff]  }
 0x400   :  { %6259 = vmatpush1.bf16.msra.mxu1 %v9442_v26 }
 0x401   :  { %6260 = vmatprep.subr.bf16.mxu1 %v9449_v28 }
 0x404   :  { %6261 = vmatpush1.bf16.msra.mxu1 %v9447_v29  ;;  %v9487_v29 = vld [vmem:[#allocation11 + $0xf8] sm:$0xff]  }
 0x405   :  { %6262 = vmatprep.subr.bf16.mxu1 %v9454_v31 }
 0x408   :  { %6263 = vmatpush1.bf16.msra.mxu1 %v9452_v32  ;;  %v9488_v32 = vld [vmem:[#allocation11 + $0xb8] sm:$0xff]  }
 0x409   :  { %6264 = vmatprep.subr.bf16.mxu1 %v9459_v34 }
 0x40c   :  { %6265 = vmatpush1.bf16.msra.mxu1 %v9457_v37  ;;  %v9489_v37 = vld [vmem:[#allocation11 + $0x180] sm:$0xff]  }
 0x40d   :  { %6266 = vmatprep.subr.bf16.mxu1 %v9464_v25 }
 0x40e   :  { %v5962_v41 = vpop.f32.mrb[20].mxu1  ;;  %v10010_v44 = vpop.f32.mrb[8].mxu0 }
 0x40f   :  { %v8237_v45 = vadd.f32 %v5962_v41, %v3757_v27  ;;  %v5964_v3 = vpop.f32.mrb[21].mxu1  ;;  %v6128_v46 = vpop.f32.mrb[9].mxu0  ;;  %v8239_v34 = vadd.f32 %v10010_v44, %v3765_v13  ;;  %v9490_v27 = vld [vmem:[#allocation11 + $0x188] sm:$0xff]   ;;  %v3781_v41 = vrot.slane %v10002_v36, %v595_v43 }
 0x410   :  { %v8238_v47 = vadd.f32 %v5964_v3, %v3761_v39  ;;  %v5966_v22 = vpop.f32.mrb[22].mxu1  ;;  %v6130_v49 = vpop.f32.mrb[10].mxu0  ;;  %6267 = vmatpush1.bf16.msra.mxu1 %v9462_v40  ;;  %v8240_v59 = vadd.f32 %v6128_v46, %v3769_v48  ;;  %v9492_v39 = vld [vmem:[#allocation11 + $0x198] sm:$0xff]   ;;  %v9493_v40 = vld [vmem:[#allocation11 + $0x1a0] sm:$0xff]   ;;  %v9495_v3 = vld [vmem:[#allocation11 + $0x1b0] sm:$0xff]  }
 0x411   :  { %v5967_v19 = vpop.f32.mrb[23].mxu1  ;;  %v6131_v51 = vpop.f32.mrb[11].mxu0  ;;  %6268 = vmatprep.subr.bf16.mxu1 %v9469_v38  ;;  %v6457_v54 = vpack.c.bf16 %v8237_v45, %v8237_v45  ;;  %v6459_v25 = vpack.c.bf16 %v8239_v34, %v8239_v34  ;;  %v9494_v38 = vld [vmem:[#allocation11 + $0x1a8] sm:$0xff]  }
 0x412   :  { %v6458_v53 = vpack.c.bf16 %v8238_v47, %v8238_v47  ;;  %v6460_v62 = vpack.c.bf16 %v8240_v59, %v8240_v59  ;;  %v9496_v19 = vld [vmem:[#allocation11 + $0x1b8] sm:$0xff]   ;;  %v9507_v51 = vld [vmem:[#allocation11 + $0x168] sm:$0xff]  }
 0x413   :  { %v9508_v43 = vld [vmem:[#allocation11 + $0x128] sm:$0xff]  }
 0x414   :  { %6269 = vmatpush1.bf16.msra.mxu1 %v9467_v50  ;;  %6951 = vmatprep.mubr.bf16.mxu0 %v6458_v53  ;;  %v9510_v53 = vld [vmem:[#allocation11 + $0x130] sm:$0xff]  }
 0x415   :  { %6952 = vmatmul.mubr.bf16.vlgmr.msra.gmra.mrb[28].mxu0 %v6457_v54  ;;  %6270 = vmatprep.subr.bf16.mxu1 %v9472_v52  ;;  %v9509_v52 = vld [vmem:[#allocation11 + $0x170] sm:$0xff]  }
 0x416   :  { %8141 = vmatpush3.bf16.msra.mxu0 %v9498_v56  ;;  %v9511_v56 = vld [vmem:[#allocation11 + $0x178] sm:$0xff]  }
 0x417   :  { %8142 = vmatprep.subr.bf16.mxu0 %v9499_v57 }
 0x418   :  { %6271 = vmatpush1.bf16.msra.mxu1 %v9470_v0 }
 0x419   :  { %8118 = vmatprep.subr.bf16.mxu1 %v9473_v58  ;;  %v9512_v58 = vld [vmem:[#allocation11 + $0x138] sm:$0xff]  }
 0x41a   :  { %8143 = vmatpush3.bf16.msra.mxu0 %v9500_v60 }
 0x41b   :  { %6289 = vmatmul.mubr.bf16.vlgmr.msra.gmra.mrb[24].mxu1 %v9974_v63  ;;  %8144 = vmatprep.subr.bf16.mxu0 %v9501_v9  ;;  %v9480_v63 = vld [vmem:[#allocation11 + $0x98] sm:$0xff]  }
 0x41c   :  { %8119 = vmatpush3.bf16.msra.mxu1 %v9474_v5  ;;  %6991 = vmatprep.mubr.bf16.mxu1 %v6460_v62 }
 0x41d   :  { %8120 = vmatprep.subr.bf16.mxu1 %v9475_v61 }
 0x41e   :  { %8145 = vmatpush3.bf16.msra.mxu0 %v9502_v1 }
 0x41f   :  { %8146 = vmatprep.subr.bf16.mxu0 %v9503_v4 }
 0x420   :  { %8121 = vmatpush3.bf16.msra.mxu1 %v9476_v2 }
 0x421   :  { %8122 = vmatprep.subr.bf16.mxu1 %v9477_v18 }
 0x422   :  { %8147 = vmatpush3.bf16.msra.mxu0 %v9504_v8 }
 0x423   :  { %8148 = vmatprep.subr.bf16.mxu0 %v9505_v21  ;;  %v3777_v21 = vrot.slane %v10002_v36, %v591_v7 }
 0x424   :  { %8123 = vmatpush3.bf16.msra.mxu1 %v9478_v11  ;;  %v3773_v11 = vrot.slane %v10002_v36, %v587_v10 }
 0x425   :  { %8124 = vmatprep.subr.bf16.mxu1 %v9479_v12 }
 0x426   :  { %8149 = vmatpush3.bf16.msra.mxu0 %v9506_v15 }
 0x427   :  { %8150 = vmatprep.subr.bf16.mxu0 %v9507_v51 }
 0x428   :  { %8125 = vmatpush3.bf16.msra.mxu1 %v9480_v63 }
 0x429   :  { %8126 = vmatprep.subr.bf16.mxu1 %v9481_v14 }
 0x42a   :  { %8151 = vmatpush3.bf16.msra.mxu0 %v9508_v43 }
 0x42b   :  { %8152 = vmatprep.subr.bf16.mxu0 %v9509_v52 }
 0x42c   :  { %8127 = vmatpush3.bf16.msra.mxu1 %v9482_v30 }
 0x42d   :  { %8128 = vmatprep.subr.bf16.mxu1 %v9483_v16 }
 0x42e   :  { %8153 = vmatpush3.bf16.msra.mxu0 %v9510_v53 }
 0x42f   :  { %v8037_v35 = vpop.f32.mrb[12].mxu0  ;;  %8154 = vmatprep.subr.bf16.mxu0 %v9511_v56 }
 0x430   :  { %v8038_v23 = vpop.f32.mrb[13].mxu0  ;;  %8129 = vmatpush3.bf16.msra.mxu1 %v9484_v17 }
 0x431   :  { %v8039_v26 = vadd.f32 %v8038_v23, %v8037_v35  ;;  %v8040_v28 = vpop.f32.mrb[14].mxu0  ;;  %8130 = vmatprep.subr.bf16.mxu1 %v9485_v20  ;;  %v7889_v35 = vld [vmem:[#allocation13] ss:$0 sm:$0xff] }
 0x432   :  { %v8041_v31 = vpop.f32.mrb[15].mxu0  ;;  %8155 = vmatpush3.bf16.msra.mxu0 %v9512_v58 }
 0x433   :  { %v6332_v46 = vadd.f32 %v8039_v26, %v3781_v41 }
 0x434   :  { %8131 = vmatpush3.bf16.msra.mxu1 %v9486_v24 }
 0x435   :  { %8132 = vmatprep.subr.bf16.mxu1 %v9487_v29 }
 0x438   :  { %8133 = vmatpush3.bf16.msra.mxu1 %v9488_v32 }
 0x439   :  { %8211 = vmatprep.subr.bf16.mxu1 %v9713_v33 }
 0x43b   :  { %6992 = vmatmul.mubr.bf16.vlgmr.msra.gmra.mrb[28].mxu1 %v6459_v25 }
 0x43c   :  { %8212 = vmatpush3.bf16.msra.mxu1 %v9489_v37  ;;  %8227 = vmatprep.mubr.msk.bf16.mxu1 %vm9714_vm0, %v9713_v33 }
 0x43d   :  { %8213 = vmatprep.subr.bf16.mxu1 %v9713_v33 }
 0x440   :  { %8214 = vmatpush3.bf16.msra.mxu1 %v9490_v27 }
 0x441   :  { %8215 = vmatprep.subr.bf16.mxu1 %v9713_v33 }
 0x444   :  { %8216 = vmatpush3.bf16.msra.mxu1 %v9491_v42 }
 0x445   :  { %8217 = vmatprep.subr.bf16.mxu1 %v9713_v33 }
 0x448   :  { %8218 = vmatpush3.bf16.msra.mxu1 %v9492_v39 }
 0x449   :  { %8219 = vmatprep.subr.bf16.mxu1 %v9713_v33 }
 0x44c   :  { %8220 = vmatpush3.bf16.msra.mxu1 %v9493_v40 }
 0x44d   :  { %8221 = vmatprep.subr.bf16.mxu1 %v9713_v33 }
 0x44f   :  { %v8059_v44 = vpop.f32.mrb[16].mxu0 }
 0x450   :  { %v8060_v45 = vpop.f32.mrb[17].mxu0  ;;  %8222 = vmatpush3.bf16.msra.mxu1 %v9494_v38 }
 0x451   :  { %v8061_v47 = vadd.f32 %v8060_v45, %v8059_v44  ;;  %v8062_v22 = vpop.f32.mrb[18].mxu0  ;;  %8223 = vmatprep.subr.bf16.mxu1 %v9713_v33 }
 0x452   :  { %v8063_v49 = vpop.f32.mrb[19].mxu0 }
 0x453   :  { %v6372_v50 = vadd.f32 %v8061_v47, %v6332_v46 }
 0x454   :  { %8224 = vmatpush3.bf16.msra.mxu1 %v9495_v3 }
 0x455   :  { %8225 = vmatprep.subr.bf16.mxu1 %v9713_v33 }
 0x458   :  { %8226 = vmatpush3.bf16.msra.mxu1 %v9496_v19 }
 0x46f   :  { %v8081_v48 = vpop.f32.mrb[20].mxu0 }
 0x470   :  { %v8082_v54 = vpop.f32.mrb[21].mxu0 }
 0x471   :  { %v8083_v0 = vadd.f32 %v8082_v54, %v8081_v48  ;;  %v8084_v55 = vpop.f32.mrb[22].mxu0 }
 0x472   :  { %v8085_v57 = vpop.f32.mrb[23].mxu0 }
 0x473   :  { %v6412_v59 = vadd.f32 %v8083_v0, %v6372_v50 }
 0x48f   :  { %v6451_v33 = vpop.f32.mrb[24].mxu0 }
 0x490   :  { %v6452_v60 = vadd.f32 %v6451_v33, %v6412_v59  ;;  %v8209_v5 = vpop.f32.mrb[25].mxu0 }
 0x491   :  { %v6454_v61 = vpop.f32.mrb[26].mxu0 }
 0x492   :  { %v6463_v9 = vpack.c.bf16 %v6452_v60, %v6452_v60  ;;  %v8210_v62 = vpop.f32.mrb[27].mxu0 }
 0x494   :  { %8228 = vmatmul.mubr.bf16.vlgmr.msra.gmra.mrb[32].mxu1 %v6463_v9 }
 0x4e8   :  { %v8112_v1 = vpop.f32.mrb[28].mxu0 }
 0x4e9   :  { %v8113_v2 = vpop.f32.mrb[29].mxu0 }
 0x4ea   :  { %v8114_v4 = vadd.f32 %v8113_v2, %v8112_v1  ;;  %v8115_v18 = vpop.f32.mrb[30].mxu0 }
 0x4eb   :  { %v8116_v8 = vpop.f32.mrb[31].mxu0 }
 0x4ec   :  { %v6954_v13 = vadd.f32 %v8114_v4, %v7889_v35 }
 0x4ee   :  { %v6290_v12 = vpop.f32.mrb[24].mxu1 }
 0x4ef   :  { %v8241_v15 = vadd.f32 %v6290_v12, %v3773_v11  ;;  %v6292_v63 = vpop.f32.mrb[25].mxu1 }
 0x4f0   :  { %v8242_v14 = vadd.f32 %v6292_v63, %v3777_v21  ;;  %v6294_v30 = vpop.f32.mrb[26].mxu1 }
 0x4f1   :  { %v6295_v16 = vpop.f32.mrb[27].mxu1  ;;  %v6461_v20 = vpack.c.bf16 %v8241_v15, %v8241_v15 }
 0x4f2   :  { %v6462_v17 = vpack.c.bf16 %v8242_v14, %v8242_v14 }
 0x4f4   :  { %7031 = vmatprep.mubr.bf16.mxu0 %v6462_v17 }
 0x4f5   :  { %7032 = vmatmul.mubr.bf16.vlgmr.msra.gmra.mrb[32].mxu0 %v6461_v20 }
 0x50e   :  { %v8134_v23 = vpop.f32.mrb[28].mxu1 }
 0x50f   :  { %v8135_v24 = vpop.f32.mrb[29].mxu1 }
 0x510   :  { %v8136_v26 = vadd.f32 %v8135_v24, %v8134_v23  ;;  %v8137_v10 = vpop.f32.mrb[30].mxu1 }
 0x511   :  { %v8138_v28 = vpop.f32.mrb[31].mxu1 }
 0x512   :  { %v6994_v6 = vadd.f32 %v8136_v26, %v6954_v13 }
 0x567   :  { %v7073_v29 = vpop.f32.mrb[32].mxu1 }
 0x568   :  { %v8229_v7 = vpop.f32.mrb[33].mxu1 }
 0x569   :  { %v7076_v36 = vpop.f32.mrb[34].mxu1 }
 0x56a   :  { %v8230_v31 = vpop.f32.mrb[35].mxu1 }
 0x5c8   :  { %v8156_v32 = vpop.f32.mrb[32].mxu0 }
 0x5c9   :  { %v8157_v34 = vpop.f32.mrb[33].mxu0 }
 0x5ca   :  { %v8158_v37 = vadd.f32 %v8157_v34, %v8156_v32  ;;  %v8159_v25 = vpop.f32.mrb[34].mxu0 }
 0x5cb   :  { %v8160_v27 = vpop.f32.mrb[35].mxu0 }
 0x5cc   :  { %v7034_v42 = vadd.f32 %v8158_v37, %v6994_v6 }
 0x5ce   :  { %v7074_v39 = vadd.f32 %v7073_v29, %v7034_v42 }
 0x5d0   :  { %7079 = vst [vmem:[#allocation14] sm:$0xff] %v7074_v39 }
 0x5d1   :  { %9680 = shalt.err (!%p9677_p4)
}
 0x5d2   :  { %s9681_s15 = scalar_lea.hbm %s10058_s7, 128 }
 0x5d3   :  { %p9682_p5 = scmp.ne.s32.totalorder %s10058_s7, %s9681_s15  ;;  %p9685_p6 = scmp.lt.u32.totalorder %s9681_s15, %s10058_s7 }
 0x5d5   :  { %p9687_p7 = pnand %p9685_p6, %p9682_p5 }
 0x5d7   :  { %9690 = shalt.err (!%p9687_p7)
}
 0x5d8   :  { %7089 = dma.vmem_to_hbm [thread:$0]  %s7087_s3, 128, %s10058_s7, [#allocation4]  }
 0x5d9   :  { %9699 = dma.done.wait [#allocation4], 128  }
 0x5da   :  { %9700 = vsyncadd [#allocation4], 4294967168 }
 0x5db   :  { %7093 = vsyncpa [#allocation3], 1 }
 0x5dc   :  { %7094 = vsyncpa [#allocation6], 1 }
 0x5dd   :  { %7095 = vsyncpa [#allocation9], 1 }
 0x5de   :  { %7096 = vsyncpa [#allocation12], 1 }
 0x5df   :  { %7097 = vsyncpa [#allocation4], 1 }

</bundles_post_ra>
